<compile_context>
chip_gen: v7x
topology: tpu7x:2x2x1
jax: 0.10.0
libtpu: 0.0.40
codegen_flags: <defaults>
</compile_context>

<pallas_src>
import jax
import jax.numpy as jnp
from jax.experimental import pallas as pl
from jax.experimental.pallas import tpu as pltpu


def _softmax_kernel(x_ref, o_ref):
    # x_ref / o_ref: (tile_rows, N) in VMEM
    x = x_ref[...]
    if x.dtype != jnp.float32:
        x = x.astype(jnp.float32)
    m = jnp.max(x, axis=-1, keepdims=True)
    e = jnp.exp(x - m)                      # EUP (the dominant compute, still
    s = jnp.sum(e, axis=-1, keepdims=True)  # free under the HBM roofline)
    inv = 1.0 / s                           # exact; only tile_rows values
    o_ref[...] = (e * inv).astype(o_ref.dtype)


def _tpu_config():
    """(num_tensorcores, per-step VMEM working-set budget in bytes).

    Budgets stay under each generation's *default scoped* VMEM limit
    (v5e 16 MiB, v6e/v7x 32 MiB) so we never need vmem_limit_bytes."""
    num_cores = 1
    vmem_budget = 12 << 20          # safe everywhere (v5e default is 16 MiB)
    try:
        kind = jax.devices()[0].device_kind.lower()
    except Exception:
        kind = ""
    if "v7" in kind or "7x" in kind:
        num_cores = 2               # 2 TensorCores per chip
        vmem_budget = 24 << 20
    elif "v6" in kind:
        vmem_budget = 24 << 20
    return num_cores, vmem_budget


def _pick_tile_rows(rows, n, itemsize, *, num_cores, vmem_budget_bytes):
    """Largest row tile (multiple of 8, divides `rows`) that
       (a) fits the VMEM working-set budget:
           ~6x tile bytes = in + out double-buffered + f32 intermediates,
       (b) leaves >= 2 pipelined steps per TensorCore on multi-core chips."""
    bytes_per_row = n * max(itemsize, 4)          # f32 intermediates dominate
    max_rows_by_vmem = max(8, vmem_budget_bytes // (6 * bytes_per_row))
    cap = min(rows, max_rows_by_vmem)

    min_steps = 4 if num_cores >= 2 else 1        # 2 pipelined steps per core
    if rows >= 8 * min_steps:
        cap = min(cap, max(8, rows // min_steps))
    cap = max(8, (cap // 8) * 8)

    for cand in range(min(cap, (rows // 8) * 8) or 8, 7, -8):
        if rows % cand == 0:
            return cand

    # Ragged row count (rows not a multiple of 8): single full-extent block —
    # block dims equal to the full array dims are always legal, no pad/slice.
    # TODO(synk): very large ragged row counts would need a masked tail tile
    # (num_scalar_prefetch row count + pl.when) instead of one giant block.
    return rows


def softmax_last_dim(x):
    orig_shape = x.shape
    n = orig_shape[-1]
    x2 = x.reshape(-1, n)
    rows = x2.shape[0]
    itemsize = jnp.dtype(x.dtype).itemsize

    num_cores, vmem_budget = _tpu_config()
    tile_rows = _pick_tile_rows(rows, n, itemsize,
                                num_cores=num_cores,
                                vmem_budget_bytes=vmem_budget)
    grid = pl.cdiv(rows, tile_rows)   # exact division except ragged fallback
    assert grid * tile_rows == rows or tile_rows == rows

    cost = pl.CostEstimate(
        flops=5 * rows * n,
        transcendentals=rows * n,
        bytes_accessed=2 * rows * n * itemsize,
    )

    out = pl.pallas_call(
        _softmax_kernel,
        out_shape=jax.ShapeDtypeStruct((rows, n), x.dtype),
        grid_spec=pltpu.PrefetchScalarGridSpec(
            num_scalar_prefetch=0,
            grid=(grid,),
            in_specs=[pl.BlockSpec((tile_rows, n), lambda i: (i, 0))],
            out_specs=pl.BlockSpec((tile_rows, n), lambda i: (i, 0)),
        ),
        compiler_params=pltpu.CompilerParams(
            dimension_semantics=("parallel",)
        ),
        cost_estimate=cost,
    )(x2)

    return out.reshape(orig_shape)


if __name__ == "__main__":
    key = jax.random.PRNGKey(0)
    # Shape from the module's forward: softmax over the last dim of [1,4,384,384]
    x514 = jax.random.normal(key, (1, 4, 384, 384), dtype=jnp.float32)

    y = softmax_last_dim(x514)
    jax.block_until_ready(y)

    # Sanity check against the pure-JAX reference (exact reciprocal now).
    ref = jax.nn.softmax(x514, axis=-1)
    assert jnp.allclose(y, ref, atol=1e-5, rtol=1e-5)
    assert jnp.allclose(jnp.sum(y, axis=-1), 1.0, atol=1e-5)

    # Small extra shape exercising the non-default tile path.
    x_small = jax.random.normal(jax.random.PRNGKey(1), (2, 4, 16, 128),
                                dtype=jnp.float32)
    y_small = softmax_last_dim(x_small)
    jax.block_until_ready(y_small)
    assert jnp.allclose(y_small, jax.nn.softmax(x_small, axis=-1),
                        atol=1e-5, rtol=1e-5)

    print("KERNEL_OK")
</pallas_src>

<mosaic_0001>
module attributes {stable_mosaic.version = 11 : i64} {
  func.func @_softmax_kernel(%arg0: i32, %arg1: memref<768x384xf32, #tpu.memory_space<vmem>>, %arg2: memref<768x384xf32, #tpu.memory_space<vmem>>) attributes {dimension_semantics = [#tpu.dimension_semantics<parallel>], iteration_bounds = array<i64: 2>, scalar_prefetch = 0 : i64, scratch_operands = 0 : i64, tpu.core_type = #tpu.core_type<tc>, window_params = [{transform_indices = @transform_0, window_bounds = array<i64: 768, 384>}, {transform_indices = @transform_1, window_bounds = array<i64: 768, 384>}]} {
    %c0 = arith.constant 0 : index
    %c0_0 = arith.constant 0 : index
    %0 = vector.load %arg1[%c0, %c0_0] : memref<768x384xf32, #tpu.memory_space<vmem>>, vector<768x384xf32>
    %cst = arith.constant dense<0xFF800000> : vector<768xf32>
    %1 = vector.multi_reduction <maximumf>, %0, %cst [1] : vector<768x384xf32> to vector<768xf32>
    %2 = vector.shape_cast %1 : vector<768xf32> to vector<768x1xf32>
    %3 = vector.broadcast %2 : vector<768x1xf32> to vector<768x384xf32>
    %4 = arith.subf %0, %3 : vector<768x384xf32>
    %5 = math.exp %4 : vector<768x384xf32>
    %cst_1 = arith.constant dense<0.000000e+00> : vector<768xf32>
    %6 = vector.multi_reduction <add>, %5, %cst_1 [1] : vector<768x384xf32> to vector<768xf32>
    %7 = vector.shape_cast %6 : vector<768xf32> to vector<768x1xf32>
    %cst_2 = arith.constant 1.000000e+00 : f32
    %8 = vector.broadcast %cst_2 : f32 to vector<768x1xf32>
    %9 = arith.divf %8, %7 : vector<768x1xf32>
    %10 = vector.broadcast %9 : vector<768x1xf32> to vector<768x384xf32>
    %11 = arith.mulf %5, %10 : vector<768x384xf32>
    %c0_3 = arith.constant 0 : index
    %c0_4 = arith.constant 0 : index
    %12 = vector.load %arg2[%c0_3, %c0_4] : memref<768x384xf32, #tpu.memory_space<vmem>>, vector<768x384xf32>
    tpu.vector_store %arg2[%c0_3, %c0_4], %11 {strides = array<i32>} : memref<768x384xf32, #tpu.memory_space<vmem>>, vector<768x384xf32>,
    return
  }
  func.func @transform_0(%arg0: i32) -> (i32, i32) {
    %c0_i32 = arith.constant 0 : i32
    %c0_i32_0 = arith.constant 0 : i32
    return %arg0, %c0_i32 : i32, i32
  }
  func.func @transform_1(%arg0: i32) -> (i32, i32) {
    %c0_i32 = arith.constant 0 : i32
    %c0_i32_0 = arith.constant 0 : i32
    return %arg0, %c0_i32 : i32, i32
  }
}

</mosaic_0001>

<bundles_post_ra>
// kernel: tpu_custom_call.1
= control target key start
LH: loop header
LB: loop body
LE: loop exit
PB: predicated region body
PF: predicated region fallthrough
CT: control target
= control target key end

     0   :  { %6 = vsyncpa [#allocation3], 0  ;;  %s6987_s0 = inlined_call_operand.hbm [shape: f32[1536,384], index: 0, kind: input, shape index: {}]   ;;  %s6988_s1 = inlined_call_operand.hbm [shape: f32[1536,384], index: 1, kind: output, shape index: {}]  }
   0x1   :  { %8 = vsyncpa [#allocation3 + $0x1], 0 }
   0x2   :  { %9 = vsyncpa [#allocation4], 0 }
   0x3   :  { %11 = vsyncpa [#allocation4 + $0x1], 0  ;;  %s4130_s6 = smov 0   ;;  %s4132_s7 = smov 0  }
   0x4   :  { %s4134_s8 = smov 0   ;;  %s4136_s9 = smov 0  }
   0x5 LB: > { %s4151_s10 = sadd.s32 4294967295, %s4112_s9   ;;  %s2914_s11 = sadd.s32 4294967294, %s4112_s9   ;;  %s4112_s9 = sphi %s4136_s9, %s7866_s9   ;;  %s4108_s8 = sphi %s4134_s8, %s7865_s8   ;;  %s4104_s7 = sphi %s4132_s7, %s7864_s7   ;;  %s4100_s6 = sphi %s4130_s6, %s7863_s6  }
   0x6   : > { %s4155_s12 = sadd.s32 1, %s4112_s9   ;;  %s24_s13 = sadd.s32 1, %s4108_s8 }
   0x7   : > { %s21_s14 = ssub.s32 %s4112_s9, %s4155_s12  ;;  %p31_p0 = scmp.ne.s32.totalorder %s4108_s8, %s4104_s7 }
   0x8   : > { %p22_p1 = scmp.eq.s32.totalorder %s21_s14, 0  ;;  %p32_p2 = scmp.eq.s32.totalorder %s4112_s9, 0 }
   0x9   : > { %p37_p3 = scmp.ne.s32.totalorder %s4104_s7, %s4100_s6  ;;  %p38_p4 = scmp.eq.s32.totalorder %s4151_s10, 0 }
   0xa   : > { %s4167_s15 = scalar_select %p22_p1, %s4108_s8, %s24_s13  }
   0xb   : > { %p33_p5 = por %p32_p2, %p31_p0  ;;  %p4169_p6 = por %p38_p4, %p37_p3 }
   0xc   : > { %p61_p7 = scmp.eq.s32.totalorder %s4151_s10, 1  ;;  %p67_p8 = scmp.eq.s32.totalorder %s2914_s11, 1 }
   0xd   : > { %p2938_p10 = scmp.lt.s32.totalorder %s4112_s9, 2  ;;  %s87_s19 = sand.u32 1, %s4108_s8  }
   0xe   : > { %p4176_p11 = por %p61_p7, %p31_p0  ;;  %p4180_p12 = por %p67_p8, %p37_p3 }
   0xf   : > { %s2922_s20 = smul.u32 2304, %s87_s19  ;;  %p4186_p13 = pnand %p2938_p10, %p33_p5 }
  0x10   : > { %s7277_s17 = scalar_select %p4176_p11, 1, 0 }
  0x11   : > { %s7278_s18 = scalar_select %p4180_p12, 1, 0 }
  0x12   : > { %s2939_s21 = smul.u32 36864, %s4112_s9  ;;  %s91_s26 = scalar_lea.vmem [#allocation2], %s2922_s20 }
  0x13   : > { %s99_s27 = sshll.u32 %s91_s26, 4  ;;  %s4198_s28 = scalar_lea.sflag [#allocation3], %s87_s19  ;;  %s4195_s27 = int_to_ptr.vmem [resolvable:$true] %s99_s27 }
  0x14   : > { %s4193_s25 = scalar_lea.hbm %s6987_s0, %s2939_s21  ;;  %p4018_p2 = pneg %p4186_p13 }
  0x15   : > { %s4016_s29 = scalar_lea.hbm %s4193_s25, 36864  ;;  %s4021_s3 = scalar_lea.hbm %s6987_s0, 73728 }
  0x16   : > { %p4017_p1 = scmp.ne.s32.totalorder %s4193_s25, %s4016_s29  ;;  %p4022_p5 = scmp.lt.u32.totalorder %s4193_s25, %s6987_s0 }
  0x17   : > { %p4023_p7 = scmp.lt.u32.totalorder %s4021_s3, %s4016_s29  ;;  %p4025_p10 = scmp.lt.u32.totalorder %s4016_s29, %s4193_s25 }
  0x18   : > { %p4019_p3 = pnand %p4018_p2, %p4017_p1 }
  0x19   : > { %p4024_p8 = por %p4023_p7, %p4022_p5 }
  0x1a   : > { %p4020_p4 = pneg %p4019_p3 }
  0x1b   : > { %p4026_p9 = por %p4025_p10, %p4024_p8 }
  0x1d   : > { %p4027_p0 = pnand %p4026_p9, %p4020_p4 }
  0x1f   : > { %4030 = shalt.err (!%p4027_p0)
}
  0x20   : > { %s4031_s11 = scalar_lea.vmem %s4195_s27, 36864  ;;  %s4114_s13 = smov [#allocation2]  }
  0x21   : > { %p4032_p1 = scmp.ne.s32.totalorder %s4195_s27, %s4031_s11  ;;  %s4036_s14 = sshll.u32 %s4114_s13, 4  ;;  %s4037_s14 = int_to_ptr.vmem [resolvable:$false] %s4036_s14 }
  0x22   : > { %s4038_s19 = scalar_lea.vmem %s4037_s14, 73728  ;;  %p4039_p11 = scmp.lt.s32.totalorder %s4195_s27, %s4037_s14 }
  0x23   : > { %p4034_p3 = pnand %p4032_p1, %p4018_p2  ;;  %p4040_p5 = scmp.lt.s32.totalorder %s4038_s19, %s4031_s11 }
  0x25   : > { %p4035_p12 = pneg %p4034_p3  ;;  %p4041_p7 = por %p4040_p5, %p4039_p11 }
  0x27   : > { %p4042_p8 = pnand %p4041_p7, %p4035_p12 }
  0x29   : > { %4045 = shalt.err (!%p4042_p8)
}
  0x2a   : > { %s4115_s20 = smov 384   ;;  %s4116_s21 = smov 24  }
  0x2b   : > { %2933 = dma.hbm_to_vmem [thread:$0]  (!%p4186_p13), %s4193_s25, 36864, %s4195_s27, %s4198_s28, %s4115_s20, %s4115_s20, %s4116_s21  }
  0x2c   : > { %p107_p9 = scmp.lt.s32.totalorder %s4112_s9, 3  ;;  %p7280_p0 = scmp.ge.s32.totalorder %s4112_s9, 1 }
  0x2e   : > { %p108_p2 = pnand %p7280_p0, %p107_p9 }
  0x30   : > { %111 = sbr.rel (%p108_p2) target bundleno = 700 (0x2bc), region = 24 }
  0x37   : > { %s4230_s23 = sand.u32 1, %s4104_s7  }
  0x38   : > { %s2924_s24 = smul.u32 2304, %s4230_s23  ;;  %s114_s26 = scalar_lea.sflag [#allocation3], %s4230_s23 }
  0x3a   : > { %s4236_s29 = scalar_lea.vmem [#allocation2], %s2924_s24 }
  0x3b   : > { %4091 = dma.done.wait (%p4169_p6), %s114_s26, 36864  }
  0x3c   : > { %4093 = vsyncadd (%p4169_p6), %s114_s26, 4294930432  ;;  %v4243_v0 = vld [vmem:[%s4236_s29 + $0x30] sm:$0xff]  ;;  %v4246_v1 = vld [vmem:[%s4236_s29 + $0x38] sm:$0xff]  ;;  %s6297_s16 = scalar_lea.vmem [#allocation5], %s2924_s24  ;;  %s2940_s22 = smul.u32 36864, %s4151_s10 }
  0x3d   : > { %v4249_v2 = vld [vmem:[%s4236_s29 + $0x40] sm:$0xff]  ;;  %v434_v3 = vmax.f32 %v4243_v0, %v4246_v1  ;;  %v4257_v5 = vld [vmem:[%s4236_s29 + $0x8] sm:$0xff]  ;;  %v4260_v6 = vld [vmem:[%s4236_s29 + $0x10] sm:$0xff]  ;;  %s2841_s25 = sshll.u32 %s6297_s16, 4  ;;  %s2827_s10 = scalar_lea.sflag [#allocation4], %s4230_s23  ;;  %s6940_s25 = int_to_ptr.vmem [resolvable:$true] %s2841_s25 }
  0x3e   : > { %v4254_v4 = vld [vmem:[%s4236_s29] sm:$0xff]  ;;  %v4265_v8 = vld [vmem:[%s4236_s29 + $0x48] sm:$0xff]  ;;  %v4268_v9 = vld [vmem:[%s4236_s29 + $0x50] sm:$0xff]  ;;  %s6935_s30 = scalar_lea.hbm %s6988_s1, %s2940_s22  ;;  %s4046_s2 = scalar_lea.vmem %s6940_s25, 36864 }
  0x3f   : > { %v426_v7 = vmax.f32 %v4254_v4, %v4257_v5  ;;  %v4271_v10 = vld [vmem:[%s4236_s29 + $0x58] sm:$0xff]  ;;  %v435_v11 = vmax.f32 %v434_v3, %v4249_v2  ;;  %v438_v12 = vmax.f32 %v4265_v8, %v4268_v9  ;;  %v4280_v14 = vld [vmem:[%s4236_s29 + $0x20] sm:$0xff]  ;;  %v4283_v15 = vld [vmem:[%s4236_s29 + $0x28] sm:$0xff]  ;;  %p4047_p6 = scmp.ne.s32.totalorder %s6940_s25, %s4046_s2  ;;  %p7860_p11 = scmp.ne.s32.totalorder %s7277_s17, 0 }
  0x40   : > { %v4277_v13 = vld [vmem:[%s4236_s29 + $0x18] sm:$0xff]  ;;  %v4292_v19 = vld [vmem:[%s4236_s29 + $0x80] sm:$0xff]  ;;  %v4301_v23 = vld [vmem:[%s4236_s29 + $0x68] sm:$0xff]  ;;  %s4117_s3 = smov [#allocation5]  }
  0x41   : > { %v427_v16 = vmax.f32 %v426_v7, %v4260_v6  ;;  %v430_v17 = vmax.f32 %v4277_v13, %v4280_v14  ;;  %v4289_v18 = vld [vmem:[%s4236_s29 + $0x78] sm:$0xff]  ;;  %436 = vmax.xlane.f32.xlu1 %v435_v11  ;;  %v439_v20 = vmax.f32 %v438_v12, %v4271_v10  ;;  %v4298_v22 = vld [vmem:[%s4236_s29 + $0x60] sm:$0xff]  ;;  %v4305_v25 = vld [vmem:[%s4236_s29 + $0x88] sm:$0xff]  ;;  %p4048_p12 = pnand %p4047_p6, %p7860_p11  ;;  %s4050_s4 = sshll.u32 %s4117_s3, 4  ;;  %s4051_s4 = int_to_ptr.vmem [resolvable:$false] %s4050_s4 }
  0x42   : > { %v446_v21 = vmax.f32 %v4289_v18, %v4292_v19  ;;  %v442_v26 = vmax.f32 %v4298_v22, %v4301_v23  ;;  %v159_v27 = vld [vmem:[%s4236_s29 + $0xa8] sm:$0xff]  ;;  %v160_v28 = vld [vmem:[%s4236_s29 + $0xb0] sm:$0xff]  ;;  %v157_v31 = vld [vmem:[%s4236_s29 + $0x98] sm:$0xff]  ;;  %s4052_s5 = scalar_lea.vmem %s4051_s4, 73728  ;;  %p4053_p4 = scmp.lt.s32.totalorder %s6940_s25, %s4051_s4 }
  0x43   : > { %428 = vmax.xlane.f32.xlu0 %v427_v16  ;;  %v431_v24 = vmax.f32 %v430_v17, %v4283_v15  ;;  %v4312_v29 = vld [vmem:[%s4236_s29 + $0x70] sm:$0xff]  ;;  %v454_v33 = vmax.f32 %v159_v27, %v160_v28  ;;  %v161_v35 = vld [vmem:[%s4236_s29 + $0xb8] sm:$0xff]  ;;  %v166_v38 = vld [vmem:[%s4236_s29 + $0xe0] sm:$0xff]  ;;  %p4049_p13 = pneg %p4048_p12  ;;  %p4054_p10 = scmp.lt.s32.totalorder %s4052_s5, %s4046_s2 }
  0x44   : > { %v156_v30 = vld [vmem:[%s4236_s29 + $0x90] sm:$0xff]  ;;  %v447_v32 = vmax.f32 %v446_v21, %v4305_v25  ;;  %v443_v34 = vmax.f32 %v442_v26, %v4312_v29  ;;  %v165_v37 = vld [vmem:[%s4236_s29 + $0xd8] sm:$0xff]  ;;  %v158_v39 = vld [vmem:[%s4236_s29 + $0xa0] sm:$0xff] }
  0x45   : > { %440 = vmax.xlane.f32.xlu1 %v439_v20  ;;  %v450_v36 = vmax.f32 %v156_v30, %v157_v31  ;;  %v162_v40 = vld [vmem:[%s4236_s29 + $0xc0] sm:$0xff]  ;;  %v163_v41 = vld [vmem:[%s4236_s29 + $0xc8] sm:$0xff]  ;;  %v455_v42 = vmax.f32 %v454_v33, %v161_v35  ;;  %v462_v43 = vmax.f32 %v165_v37, %v166_v38  ;;  %v172_v48 = vld [vmem:[%s4236_s29 + $0x110] sm:$0xff]  ;;  %p4055_p1 = por %p4054_p10, %p4053_p4 }
  0x46   : > { %v167_v45 = vld [vmem:[%s4236_s29 + $0xe8] sm:$0xff]  ;;  %v458_v46 = vmax.f32 %v162_v40, %v163_v41  ;;  %v164_v49 = vld [vmem:[%s4236_s29 + $0xd0] sm:$0xff]  ;;  %v169_v51 = vld [vmem:[%s4236_s29 + $0xf8] sm:$0xff] }
  0x47   : > { %432 = vmax.xlane.f32.xlu0 %v431_v24  ;;  %v451_v44 = vmax.f32 %v450_v36, %v158_v39  ;;  %v171_v47 = vld [vmem:[%s4236_s29 + $0x108] sm:$0xff]  ;;  %v168_v50 = vld [vmem:[%s4236_s29 + $0xf0] sm:$0xff]  ;;  %v463_v52 = vmax.f32 %v462_v43, %v167_v45  ;;  %v173_v55 = vld [vmem:[%s4236_s29 + $0x118] sm:$0xff]  ;;  %p4056_p3 = pnand %p4055_p1, %p4049_p13 }
  0x48   : > { %v470_v53 = vmax.f32 %v171_v47, %v172_v48  ;;  %v459_v54 = vmax.f32 %v458_v46, %v164_v49  ;;  %v466_v56 = vmax.f32 %v168_v50, %v169_v51  ;;  %v177_v57 = vld [vmem:[%s4236_s29 + $0x138] sm:$0xff]  ;;  %v178_v58 = vld [vmem:[%s4236_s29 + $0x140] sm:$0xff]  ;;  %v175_v61 = vld [vmem:[%s4236_s29 + $0x128] sm:$0xff] }
  0x49   : > { %448 = vmax.xlane.f32.xlu1 %v447_v32  ;;  %v170_v59 = vld [vmem:[%s4236_s29 + $0x100] sm:$0xff]  ;;  %v478_v63 = vmax.f32 %v177_v57, %v178_v58  ;;  %v179_v7 = vld [vmem:[%s4236_s29 + $0x148] sm:$0xff]  ;;  %v184_v16 = vld [vmem:[%s4236_s29 + $0x170] sm:$0xff] }
  0x4a   : > { %v174_v60 = vld [vmem:[%s4236_s29 + $0x120] sm:$0xff]  ;;  %v471_v62 = vmax.f32 %v470_v53, %v173_v55  ;;  %v467_v3 = vmax.f32 %v466_v56, %v170_v59  ;;  %v183_v12 = vld [vmem:[%s4236_s29 + $0x168] sm:$0xff]  ;;  %v176_v17 = vld [vmem:[%s4236_s29 + $0x130] sm:$0xff] }
  0x4b   : > { %444 = vmax.xlane.f32.xlu0 %v443_v34  ;;  %v474_v11 = vmax.f32 %v174_v60, %v175_v61  ;;  %v180_v20 = vld [vmem:[%s4236_s29 + $0x150] sm:$0xff]  ;;  %v181_v21 = vld [vmem:[%s4236_s29 + $0x158] sm:$0xff]  ;;  %v479_v24 = vmax.f32 %v478_v63, %v179_v7  ;;  %v486_v26 = vmax.f32 %v183_v12, %v184_v16  ;;  %v190_v32 = vld [vmem:[%s4236_s29 + $0x1a0] sm:$0xff] }
  0x4c   : > { %v185_v28 = vld [vmem:[%s4236_s29 + $0x178] sm:$0xff]  ;;  %v482_v30 = vmax.f32 %v180_v20, %v181_v21  ;;  %v182_v33 = vld [vmem:[%s4236_s29 + $0x160] sm:$0xff]  ;;  %v187_v35 = vld [vmem:[%s4236_s29 + $0x188] sm:$0xff] }
  0x4d   : > { %456 = vmax.xlane.f32.xlu1 %v455_v42  ;;  %v475_v27 = vmax.f32 %v474_v11, %v176_v17  ;;  %v189_v31 = vld [vmem:[%s4236_s29 + $0x198] sm:$0xff]  ;;  %v186_v34 = vld [vmem:[%s4236_s29 + $0x180] sm:$0xff]  ;;  %v487_v36 = vmax.f32 %v486_v26, %v185_v28  ;;  %v191_v39 = vld [vmem:[%s4236_s29 + $0x1a8] sm:$0xff] }
  0x4e   : > { %v494_v37 = vmax.f32 %v189_v31, %v190_v32  ;;  %v483_v38 = vmax.f32 %v482_v30, %v182_v33  ;;  %v490_v40 = vmax.f32 %v186_v34, %v187_v35  ;;  %v195_v41 = vld [vmem:[%s4236_s29 + $0x1c8] sm:$0xff]  ;;  %v196_v42 = vld [vmem:[%s4236_s29 + $0x1d0] sm:$0xff]  ;;  %v193_v45 = vld [vmem:[%s4236_s29 + $0x1b8] sm:$0xff] }
  0x4f   : > { %452 = vmax.xlane.f32.xlu0 %v451_v44  ;;  %v188_v43 = vld [vmem:[%s4236_s29 + $0x190] sm:$0xff]  ;;  %v502_v47 = vmax.f32 %v195_v41, %v196_v42  ;;  %v197_v49 = vld [vmem:[%s4236_s29 + $0x1d8] sm:$0xff]  ;;  %v194_v53 = vld [vmem:[%s4236_s29 + $0x1c0] sm:$0xff] }
  0x50   : > { %v192_v44 = vld [vmem:[%s4236_s29 + $0x1b0] sm:$0xff]  ;;  %v495_v46 = vmax.f32 %v494_v37, %v191_v39  ;;  %v491_v48 = vmax.f32 %v490_v40, %v188_v43  ;;  %v201_v51 = vld [vmem:[%s4236_s29 + $0x1f8] sm:$0xff]  ;;  %v199_v55 = vld [vmem:[%s4236_s29 + $0x1e8] sm:$0xff] }
  0x51   : > { %464 = vmax.xlane.f32.xlu1 %v463_v52  ;;  %v498_v50 = vmax.f32 %v192_v44, %v193_v45  ;;  %v202_v52 = vld [vmem:[%s4236_s29 + $0x200] sm:$0xff]  ;;  %v503_v56 = vmax.f32 %v502_v47, %v197_v49  ;;  %v203_v59 = vld [vmem:[%s4236_s29 + $0x208] sm:$0xff]  ;;  %v200_v63 = vld [vmem:[%s4236_s29 + $0x1f0] sm:$0xff] }
  0x52   : > { %v510_v57 = vmax.f32 %v201_v51, %v202_v52  ;;  %v207_v61 = vld [vmem:[%s4236_s29 + $0x228] sm:$0xff]  ;;  %v205_v7 = vld [vmem:[%s4236_s29 + $0x218] sm:$0xff]  ;;  %v206_v26 = vld [vmem:[%s4236_s29 + $0x220] sm:$0xff] }
  0x53   : > { %460 = vmax.xlane.f32.xlu0 %v459_v54  ;;  %v198_v54 = vld [vmem:[%s4236_s29 + $0x1e0] sm:$0xff]  ;;  %v499_v58 = vmax.f32 %v498_v50, %v194_v53  ;;  %v209_v17 = vld [vmem:[%s4236_s29 + $0x238] sm:$0xff]  ;;  %v211_v28 = vld [vmem:[%s4236_s29 + $0x248] sm:$0xff] }
  0x54   : > { %v506_v60 = vmax.f32 %v198_v54, %v199_v55  ;;  %v511_v11 = vmax.f32 %v510_v57, %v203_v59  ;;  %v213_v21 = vld [vmem:[%s4236_s29 + $0x258] sm:$0xff]  ;;  %v215_v33 = vld [vmem:[%s4236_s29 + $0x268] sm:$0xff]  ;;  %v212_v37 = vld [vmem:[%s4236_s29 + $0x250] sm:$0xff] }
  0x55   : > { %472 = vmax.xlane.f32.xlu1 %v471_v62  ;;  %v208_v62 = vld [vmem:[%s4236_s29 + $0x230] sm:$0xff]  ;;  %v219_v35 = vld [vmem:[%s4236_s29 + $0x288] sm:$0xff]  ;;  %v217_v39 = vld [vmem:[%s4236_s29 + $0x278] sm:$0xff] }
  0x56   : > { %v518_v12 = vmax.f32 %v207_v61, %v208_v62  ;;  %v507_v16 = vmax.f32 %v506_v60, %v200_v63  ;;  %v221_v43 = vld [vmem:[%s4236_s29 + $0x298] sm:$0xff]  ;;  %v218_v47 = vld [vmem:[%s4236_s29 + $0x280] sm:$0xff]  ;;  %v223_v49 = vld [vmem:[%s4236_s29 + $0x2a8] sm:$0xff] }
  0x57   : > { %468 = vmax.xlane.f32.xlu0 %v467_v3  ;;  %v204_v3 = vld [vmem:[%s4236_s29 + $0x210] sm:$0xff]  ;;  %v225_v45 = vld [vmem:[%s4236_s29 + $0x2b8] sm:$0xff]  ;;  %v227_v53 = vld [vmem:[%s4236_s29 + $0x2c8] sm:$0xff] }
  0x58   : > { %v514_v20 = vmax.f32 %v204_v3, %v205_v7  ;;  %v519_v30 = vmax.f32 %v518_v12, %v209_v17  ;;  %v231_v55 = vld [vmem:[%s4236_s29 + $0x2e8] sm:$0xff]  ;;  %v224_v57 = vld [vmem:[%s4236_s29 + $0x2b0] sm:$0xff]  ;;  %v229_v59 = vld [vmem:[%s4236_s29 + $0x2d8] sm:$0xff] }
  0x59   : > { %480 = vmax.xlane.f32.xlu1 %v479_v24  ;;  %v214_v24 = vld [vmem:[%s4236_s29 + $0x260] sm:$0xff]  ;;  %v233_v63 = vld [vmem:[%s4236_s29 + $0x2f8] sm:$0xff]  ;;  %v235_v17 = vld [vmem:[%s4236_s29 + $0x308] sm:$0xff] }
  0x5a   : > { %v526_v31 = vmax.f32 %v213_v21, %v214_v24  ;;  %v515_v32 = vmax.f32 %v514_v20, %v206_v26  ;;  %v237_v7 = vld [vmem:[%s4236_s29 + $0x318] sm:$0xff]  ;;  %v230_v12 = vld [vmem:[%s4236_s29 + $0x2e0] sm:$0xff]  ;;  %v239_v26 = vld [vmem:[%s4236_s29 + $0x328] sm:$0xff] }
  0x5b   : > { %476 = vmax.xlane.f32.xlu0 %v475_v27  ;;  %v210_v27 = vld [vmem:[%s4236_s29 + $0x240] sm:$0xff] }
  0x5c   : > { %v522_v34 = vmax.f32 %v210_v27, %v211_v28  ;;  %v527_v40 = vmax.f32 %v526_v31, %v215_v33  ;;  %v243_v28 = vld [vmem:[%s4236_s29 + $0x348] sm:$0xff]  ;;  %v236_v31 = vld [vmem:[%s4236_s29 + $0x310] sm:$0xff]  ;;  %v241_v33 = vld [vmem:[%s4236_s29 + $0x338] sm:$0xff] }
  0x5d   : > { %488 = vmax.xlane.f32.xlu1 %v487_v36  ;;  %v220_v36 = vld [vmem:[%s4236_s29 + $0x290] sm:$0xff] }
  0x5e   : > { %v534_v41 = vmax.f32 %v219_v35, %v220_v36  ;;  %v523_v42 = vmax.f32 %v522_v34, %v212_v37  ;;  %v245_v37 = vld [vmem:[%s4236_s29 + $0x358] sm:$0xff] }
  0x5f   : > { %484 = vmax.xlane.f32.xlu0 %v483_v38  ;;  %v216_v38 = vld [vmem:[%s4236_s29 + $0x270] sm:$0xff] }
  0x60   : > { %v530_v44 = vmax.f32 %v216_v38, %v217_v39  ;;  %v535_v50 = vmax.f32 %v534_v41, %v221_v43  ;;  %v249_v39 = vld [vmem:[%s4236_s29 + $0x378] sm:$0xff]  ;;  %v242_v41 = vld [vmem:[%s4236_s29 + $0x340] sm:$0xff]  ;;  %v247_v43 = vld [vmem:[%s4236_s29 + $0x368] sm:$0xff] }
  0x61   : > { %496 = vmax.xlane.f32.xlu1 %v495_v46  ;;  %v226_v46 = vld [vmem:[%s4236_s29 + $0x2c0] sm:$0xff] }
  0x62   : > { %v542_v51 = vmax.f32 %v225_v45, %v226_v46  ;;  %v531_v52 = vmax.f32 %v530_v44, %v218_v47  ;;  %v251_v47 = vld [vmem:[%s4236_s29 + $0x388] sm:$0xff] }
  0x63   : > { %492 = vmax.xlane.f32.xlu0 %v491_v48  ;;  %v222_v48 = vld [vmem:[%s4236_s29 + $0x2a0] sm:$0xff] }
  0x64   : > { %v538_v54 = vmax.f32 %v222_v48, %v223_v49  ;;  %v543_v60 = vmax.f32 %v542_v51, %v227_v53  ;;  %v255_v49 = vld [vmem:[%s4236_s29 + $0x3a8] sm:$0xff]  ;;  %v248_v51 = vld [vmem:[%s4236_s29 + $0x370] sm:$0xff]  ;;  %v253_v53 = vld [vmem:[%s4236_s29 + $0x398] sm:$0xff] }
  0x65   : > { %504 = vmax.xlane.f32.xlu1 %v503_v56  ;;  %v232_v56 = vld [vmem:[%s4236_s29 + $0x2f0] sm:$0xff] }
  0x66   : > { %v550_v61 = vmax.f32 %v231_v55, %v232_v56  ;;  %v539_v62 = vmax.f32 %v538_v54, %v224_v57  ;;  %v257_v57 = vld [vmem:[%s4236_s29 + $0x3b8] sm:$0xff] }
  0x67   : > { %500 = vmax.xlane.f32.xlu0 %v499_v58  ;;  %v228_v58 = vld [vmem:[%s4236_s29 + $0x2d0] sm:$0xff] }
  0x68   : > { %v546_v3 = vmax.f32 %v228_v58, %v229_v59  ;;  %v551_v20 = vmax.f32 %v550_v61, %v233_v63  ;;  %v261_v59 = vld [vmem:[%s4236_s29 + $0x3d8] sm:$0xff]  ;;  %v254_v61 = vld [vmem:[%s4236_s29 + $0x3a0] sm:$0xff]  ;;  %v259_v63 = vld [vmem:[%s4236_s29 + $0x3c8] sm:$0xff] }
  0x69   : > { %512 = vmax.xlane.f32.xlu1 %v511_v11  ;;  %v238_v11 = vld [vmem:[%s4236_s29 + $0x320] sm:$0xff] }
  0x6a   : > { %v558_v21 = vmax.f32 %v237_v7, %v238_v11  ;;  %v547_v24 = vmax.f32 %v546_v3, %v230_v12  ;;  %v263_v12 = vld [vmem:[%s4236_s29 + $0x3e8] sm:$0xff] }
  0x6b   : > { %508 = vmax.xlane.f32.xlu0 %v507_v16  ;;  %v234_v16 = vld [vmem:[%s4236_s29 + $0x300] sm:$0xff] }
  0x6c   : > { %v554_v27 = vmax.f32 %v234_v16, %v235_v17  ;;  %v559_v34 = vmax.f32 %v558_v21, %v239_v26  ;;  %v267_v17 = vld [vmem:[%s4236_s29 + $0x408] sm:$0xff]  ;;  %v260_v21 = vld [vmem:[%s4236_s29 + $0x3d0] sm:$0xff]  ;;  %v265_v26 = vld [vmem:[%s4236_s29 + $0x3f8] sm:$0xff] }
  0x6d   : > { %520 = vmax.xlane.f32.xlu1 %v519_v30  ;;  %v244_v30 = vld [vmem:[%s4236_s29 + $0x350] sm:$0xff] }
  0x6e   : > { %v566_v35 = vmax.f32 %v243_v28, %v244_v30  ;;  %v555_v36 = vmax.f32 %v554_v27, %v236_v31  ;;  %v269_v31 = vld [vmem:[%s4236_s29 + $0x418] sm:$0xff] }
  0x6f   : > { %516 = vmax.xlane.f32.xlu0 %v515_v32  ;;  %v240_v32 = vld [vmem:[%s4236_s29 + $0x330] sm:$0xff] }
  0x70   : > { %v562_v38 = vmax.f32 %v240_v32, %v241_v33  ;;  %v567_v44 = vmax.f32 %v566_v35, %v245_v37  ;;  %v273_v33 = vld [vmem:[%s4236_s29 + $0x438] sm:$0xff]  ;;  %v266_v35 = vld [vmem:[%s4236_s29 + $0x400] sm:$0xff]  ;;  %v271_v37 = vld [vmem:[%s4236_s29 + $0x428] sm:$0xff] }
  0x71   : > { %528 = vmax.xlane.f32.xlu1 %v527_v40  ;;  %v250_v40 = vld [vmem:[%s4236_s29 + $0x380] sm:$0xff] }
  0x72   : > { %v574_v45 = vmax.f32 %v249_v39, %v250_v40  ;;  %v563_v46 = vmax.f32 %v562_v38, %v242_v41  ;;  %v275_v41 = vld [vmem:[%s4236_s29 + $0x448] sm:$0xff] }
  0x73   : > { %524 = vmax.xlane.f32.xlu0 %v523_v42  ;;  %v246_v42 = vld [vmem:[%s4236_s29 + $0x360] sm:$0xff] }
  0x74   : > { %v570_v48 = vmax.f32 %v246_v42, %v247_v43  ;;  %v575_v54 = vmax.f32 %v574_v45, %v251_v47  ;;  %v279_v43 = vld [vmem:[%s4236_s29 + $0x468] sm:$0xff]  ;;  %v272_v45 = vld [vmem:[%s4236_s29 + $0x430] sm:$0xff]  ;;  %v277_v47 = vld [vmem:[%s4236_s29 + $0x458] sm:$0xff] }
  0x75   : > { %536 = vmax.xlane.f32.xlu1 %v535_v50  ;;  %v256_v50 = vld [vmem:[%s4236_s29 + $0x3b0] sm:$0xff] }
  0x76   : > { %v582_v55 = vmax.f32 %v255_v49, %v256_v50  ;;  %v571_v56 = vmax.f32 %v570_v48, %v248_v51  ;;  %v281_v51 = vld [vmem:[%s4236_s29 + $0x478] sm:$0xff] }
  0x77   : > { %532 = vmax.xlane.f32.xlu0 %v531_v52  ;;  %v252_v52 = vld [vmem:[%s4236_s29 + $0x390] sm:$0xff] }
  0x78   : > { %v578_v58 = vmax.f32 %v252_v52, %v253_v53  ;;  %v583_v3 = vmax.f32 %v582_v55, %v257_v57  ;;  %v285_v53 = vld [vmem:[%s4236_s29 + $0x498] sm:$0xff]  ;;  %v278_v55 = vld [vmem:[%s4236_s29 + $0x460] sm:$0xff]  ;;  %v283_v57 = vld [vmem:[%s4236_s29 + $0x488] sm:$0xff] }
  0x79   : > { %544 = vmax.xlane.f32.xlu1 %v543_v60  ;;  %v262_v60 = vld [vmem:[%s4236_s29 + $0x3e0] sm:$0xff] }
  0x7a   : > { %v590_v7 = vmax.f32 %v261_v59, %v262_v60  ;;  %v579_v11 = vmax.f32 %v578_v58, %v254_v61  ;;  %v287_v61 = vld [vmem:[%s4236_s29 + $0x4a8] sm:$0xff] }
  0x7b   : > { %540 = vmax.xlane.f32.xlu0 %v539_v62  ;;  %v258_v62 = vld [vmem:[%s4236_s29 + $0x3c0] sm:$0xff] }
  0x7c   : > { %v586_v16 = vmax.f32 %v258_v62, %v259_v63  ;;  %v591_v27 = vmax.f32 %v590_v7, %v263_v12  ;;  %v291_v63 = vld [vmem:[%s4236_s29 + $0x4c8] sm:$0xff]  ;;  %v284_v7 = vld [vmem:[%s4236_s29 + $0x490] sm:$0xff]  ;;  %v289_v12 = vld [vmem:[%s4236_s29 + $0x4b8] sm:$0xff] }
  0x7d   : > { %552 = vmax.xlane.f32.xlu1 %v551_v20  ;;  %v268_v20 = vld [vmem:[%s4236_s29 + $0x410] sm:$0xff] }
  0x7e   : > { %v598_v28 = vmax.f32 %v267_v17, %v268_v20  ;;  %v587_v30 = vmax.f32 %v586_v16, %v260_v21  ;;  %v293_v21 = vld [vmem:[%s4236_s29 + $0x4d8] sm:$0xff] }
  0x7f   : > { %548 = vmax.xlane.f32.xlu0 %v547_v24  ;;  %v264_v24 = vld [vmem:[%s4236_s29 + $0x3f0] sm:$0xff] }
  0x80   : > { %v594_v32 = vmax.f32 %v264_v24, %v265_v26  ;;  %v599_v38 = vmax.f32 %v598_v28, %v269_v31  ;;  %v297_v26 = vld [vmem:[%s4236_s29 + $0x4f8] sm:$0xff]  ;;  %v290_v28 = vld [vmem:[%s4236_s29 + $0x4c0] sm:$0xff]  ;;  %v295_v31 = vld [vmem:[%s4236_s29 + $0x4e8] sm:$0xff] }
  0x81   : > { %560 = vmax.xlane.f32.xlu1 %v559_v34  ;;  %v274_v34 = vld [vmem:[%s4236_s29 + $0x440] sm:$0xff] }
  0x82   : > { %v606_v39 = vmax.f32 %v273_v33, %v274_v34  ;;  %v595_v40 = vmax.f32 %v594_v32, %v266_v35  ;;  %v299_v35 = vld [vmem:[%s4236_s29 + $0x508] sm:$0xff] }
  0x83   : > { %556 = vmax.xlane.f32.xlu0 %v555_v36  ;;  %v270_v36 = vld [vmem:[%s4236_s29 + $0x420] sm:$0xff] }
  0x84   : > { %v602_v42 = vmax.f32 %v270_v36, %v271_v37  ;;  %v607_v48 = vmax.f32 %v606_v39, %v275_v41  ;;  %v303_v37 = vld [vmem:[%s4236_s29 + $0x528] sm:$0xff]  ;;  %v296_v39 = vld [vmem:[%s4236_s29 + $0x4f0] sm:$0xff]  ;;  %v301_v41 = vld [vmem:[%s4236_s29 + $0x518] sm:$0xff] }
  0x85   : > { %568 = vmax.xlane.f32.xlu1 %v567_v44  ;;  %v280_v44 = vld [vmem:[%s4236_s29 + $0x470] sm:$0xff] }
  0x86   : > { %v614_v49 = vmax.f32 %v279_v43, %v280_v44  ;;  %v603_v50 = vmax.f32 %v602_v42, %v272_v45  ;;  %v305_v45 = vld [vmem:[%s4236_s29 + $0x538] sm:$0xff] }
  0x87   : > { %564 = vmax.xlane.f32.xlu0 %v563_v46  ;;  %v276_v46 = vld [vmem:[%s4236_s29 + $0x450] sm:$0xff] }
  0x88   : > { %v610_v52 = vmax.f32 %v276_v46, %v277_v47  ;;  %v615_v58 = vmax.f32 %v614_v49, %v281_v51  ;;  %v309_v47 = vld [vmem:[%s4236_s29 + $0x558] sm:$0xff]  ;;  %v302_v49 = vld [vmem:[%s4236_s29 + $0x520] sm:$0xff]  ;;  %v307_v51 = vld [vmem:[%s4236_s29 + $0x548] sm:$0xff] }
  0x89   : > { %576 = vmax.xlane.f32.xlu1 %v575_v54  ;;  %v286_v54 = vld [vmem:[%s4236_s29 + $0x4a0] sm:$0xff] }
  0x8a   : > { %v622_v59 = vmax.f32 %v285_v53, %v286_v54  ;;  %v611_v60 = vmax.f32 %v610_v52, %v278_v55  ;;  %v311_v55 = vld [vmem:[%s4236_s29 + $0x568] sm:$0xff] }
  0x8b   : > { %572 = vmax.xlane.f32.xlu0 %v571_v56  ;;  %v282_v56 = vld [vmem:[%s4236_s29 + $0x480] sm:$0xff] }
  0x8c   : > { %v618_v62 = vmax.f32 %v282_v56, %v283_v57  ;;  %v623_v16 = vmax.f32 %v622_v59, %v287_v61  ;;  %v315_v57 = vld [vmem:[%s4236_s29 + $0x588] sm:$0xff]  ;;  %v308_v59 = vld [vmem:[%s4236_s29 + $0x550] sm:$0xff]  ;;  %v313_v61 = vld [vmem:[%s4236_s29 + $0x578] sm:$0xff] }
  0x8d   : > { %584 = vmax.xlane.f32.xlu1 %v583_v3  ;;  %v292_v3 = vld [vmem:[%s4236_s29 + $0x4d0] sm:$0xff] }
  0x8e   : > { %v630_v17 = vmax.f32 %v291_v63, %v292_v3  ;;  %v619_v20 = vmax.f32 %v618_v62, %v284_v7  ;;  %v317_v7 = vld [vmem:[%s4236_s29 + $0x598] sm:$0xff] }
  0x8f   : > { %580 = vmax.xlane.f32.xlu0 %v579_v11  ;;  %v288_v11 = vld [vmem:[%s4236_s29 + $0x4b0] sm:$0xff] }
  0x90   : > { %v626_v24 = vmax.f32 %v288_v11, %v289_v12  ;;  %v631_v32 = vmax.f32 %v630_v17, %v293_v21  ;;  %v321_v12 = vld [vmem:[%s4236_s29 + $0x5b8] sm:$0xff]  ;;  %v314_v17 = vld [vmem:[%s4236_s29 + $0x580] sm:$0xff]  ;;  %v319_v21 = vld [vmem:[%s4236_s29 + $0x5a8] sm:$0xff] }
  0x91   : > { %592 = vmax.xlane.f32.xlu1 %v591_v27  ;;  %v298_v27 = vld [vmem:[%s4236_s29 + $0x500] sm:$0xff] }
  0x92   : > { %v638_v33 = vmax.f32 %v297_v26, %v298_v27  ;;  %v627_v34 = vmax.f32 %v626_v24, %v290_v28  ;;  %v323_v28 = vld [vmem:[%s4236_s29 + $0x5c8] sm:$0xff] }
  0x93   : > { %588 = vmax.xlane.f32.xlu0 %v587_v30  ;;  %v294_v30 = vld [vmem:[%s4236_s29 + $0x4e0] sm:$0xff] }
  0x94   : > { %v634_v36 = vmax.f32 %v294_v30, %v295_v31  ;;  %v639_v42 = vmax.f32 %v638_v33, %v299_v35  ;;  %v327_v31 = vld [vmem:[%s4236_s29 + $0x5e8] sm:$0xff]  ;;  %v320_v33 = vld [vmem:[%s4236_s29 + $0x5b0] sm:$0xff]  ;;  %v325_v35 = vld [vmem:[%s4236_s29 + $0x5d8] sm:$0xff] }
  0x95   : > { %600 = vmax.xlane.f32.xlu1 %v599_v38  ;;  %v304_v38 = vld [vmem:[%s4236_s29 + $0x530] sm:$0xff] }
  0x96   : > { %v646_v43 = vmax.f32 %v303_v37, %v304_v38  ;;  %v635_v44 = vmax.f32 %v634_v36, %v296_v39  ;;  %v329_v39 = vld [vmem:[%s4236_s29 + $0x5f8] sm:$0xff] }
  0x97   : > { %596 = vmax.xlane.f32.xlu0 %v595_v40  ;;  %v300_v40 = vld [vmem:[%s4236_s29 + $0x510] sm:$0xff] }
  0x98   : > { %v642_v46 = vmax.f32 %v300_v40, %v301_v41  ;;  %v647_v52 = vmax.f32 %v646_v43, %v305_v45  ;;  %v333_v41 = vld [vmem:[%s4236_s29 + $0x618] sm:$0xff]  ;;  %v326_v43 = vld [vmem:[%s4236_s29 + $0x5e0] sm:$0xff]  ;;  %v331_v45 = vld [vmem:[%s4236_s29 + $0x608] sm:$0xff] }
  0x99   : > { %608 = vmax.xlane.f32.xlu1 %v607_v48  ;;  %v310_v48 = vld [vmem:[%s4236_s29 + $0x560] sm:$0xff] }
  0x9a   : > { %v654_v53 = vmax.f32 %v309_v47, %v310_v48  ;;  %v643_v54 = vmax.f32 %v642_v46, %v302_v49  ;;  %v335_v49 = vld [vmem:[%s4236_s29 + $0x628] sm:$0xff] }
  0x9b   : > { %604 = vmax.xlane.f32.xlu0 %v603_v50  ;;  %v306_v50 = vld [vmem:[%s4236_s29 + $0x540] sm:$0xff] }
  0x9c   : > { %v650_v56 = vmax.f32 %v306_v50, %v307_v51  ;;  %v655_v62 = vmax.f32 %v654_v53, %v311_v55  ;;  %v339_v51 = vld [vmem:[%s4236_s29 + $0x648] sm:$0xff]  ;;  %v332_v53 = vld [vmem:[%s4236_s29 + $0x610] sm:$0xff]  ;;  %v337_v55 = vld [vmem:[%s4236_s29 + $0x638] sm:$0xff] }
  0x9d   : > { %616 = vmax.xlane.f32.xlu1 %v615_v58  ;;  %v316_v58 = vld [vmem:[%s4236_s29 + $0x590] sm:$0xff] }
  0x9e   : > { %v662_v63 = vmax.f32 %v315_v57, %v316_v58  ;;  %v651_v3 = vmax.f32 %v650_v56, %v308_v59  ;;  %v341_v59 = vld [vmem:[%s4236_s29 + $0x658] sm:$0xff] }
  0x9f   : > { %612 = vmax.xlane.f32.xlu0 %v611_v60  ;;  %v312_v60 = vld [vmem:[%s4236_s29 + $0x570] sm:$0xff] }
  0xa0   : > { %v658_v11 = vmax.f32 %v312_v60, %v313_v61  ;;  %v663_v24 = vmax.f32 %v662_v63, %v317_v7  ;;  %v345_v61 = vld [vmem:[%s4236_s29 + $0x678] sm:$0xff]  ;;  %v338_v63 = vld [vmem:[%s4236_s29 + $0x640] sm:$0xff]  ;;  %v343_v7 = vld [vmem:[%s4236_s29 + $0x668] sm:$0xff] }
  0xa1   : > { %624 = vmax.xlane.f32.xlu1 %v623_v16  ;;  %v322_v16 = vld [vmem:[%s4236_s29 + $0x5c0] sm:$0xff] }
  0xa2   : > { %v670_v26 = vmax.f32 %v321_v12, %v322_v16  ;;  %v659_v27 = vmax.f32 %v658_v11, %v314_v17  ;;  %v347_v17 = vld [vmem:[%s4236_s29 + $0x688] sm:$0xff] }
  0xa3   : > { %620 = vmax.xlane.f32.xlu0 %v619_v20  ;;  %v318_v20 = vld [vmem:[%s4236_s29 + $0x5a0] sm:$0xff] }
  0xa4   : > { %v666_v30 = vmax.f32 %v318_v20, %v319_v21  ;;  %v671_v36 = vmax.f32 %v670_v26, %v323_v28  ;;  %v351_v21 = vld [vmem:[%s4236_s29 + $0x6a8] sm:$0xff]  ;;  %v344_v26 = vld [vmem:[%s4236_s29 + $0x670] sm:$0xff]  ;;  %v349_v28 = vld [vmem:[%s4236_s29 + $0x698] sm:$0xff] }
  0xa5   : > { %632 = vmax.xlane.f32.xlu1 %v631_v32  ;;  %v328_v32 = vld [vmem:[%s4236_s29 + $0x5f0] sm:$0xff] }
  0xa6   : > { %v678_v37 = vmax.f32 %v327_v31, %v328_v32  ;;  %v667_v38 = vmax.f32 %v666_v30, %v320_v33  ;;  %v353_v33 = vld [vmem:[%s4236_s29 + $0x6b8] sm:$0xff] }
  0xa7   : > { %628 = vmax.xlane.f32.xlu0 %v627_v34  ;;  %v324_v34 = vld [vmem:[%s4236_s29 + $0x5d0] sm:$0xff] }
  0xa8   : > { %v674_v40 = vmax.f32 %v324_v34, %v325_v35  ;;  %v679_v46 = vmax.f32 %v678_v37, %v329_v39  ;;  %v357_v35 = vld [vmem:[%s4236_s29 + $0x6d8] sm:$0xff]  ;;  %v350_v37 = vld [vmem:[%s4236_s29 + $0x6a0] sm:$0xff]  ;;  %v355_v39 = vld [vmem:[%s4236_s29 + $0x6c8] sm:$0xff] }
  0xa9   : > { %640 = vmax.xlane.f32.xlu1 %v639_v42  ;;  %v334_v42 = vld [vmem:[%s4236_s29 + $0x620] sm:$0xff] }
  0xaa   : > { %v686_v47 = vmax.f32 %v333_v41, %v334_v42  ;;  %v675_v48 = vmax.f32 %v674_v40, %v326_v43  ;;  %v363_v42 = vld [vmem:[%s4236_s29 + $0x708] sm:$0xff]  ;;  %v364_v43 = vld [vmem:[%s4236_s29 + $0x710] sm:$0xff] }
  0xab   : > { %636 = vmax.xlane.f32.xlu0 %v635_v44  ;;  %v330_v44 = vld [vmem:[%s4236_s29 + $0x600] sm:$0xff] }
  0xac   : > { %v682_v50 = vmax.f32 %v330_v44, %v331_v45  ;;  %v687_v56 = vmax.f32 %v686_v47, %v335_v49  ;;  %v359_v45 = vld [vmem:[%s4236_s29 + $0x6e8] sm:$0xff]  ;;  %v361_v49 = vld [vmem:[%s4236_s29 + $0x6f8] sm:$0xff] }
  0xad   : > { %648 = vmax.xlane.f32.xlu1 %v647_v52  ;;  %v340_v52 = vld [vmem:[%s4236_s29 + $0x650] sm:$0xff] }
  0xae   : > { %v694_v57 = vmax.f32 %v339_v51, %v340_v52  ;;  %v683_v58 = vmax.f32 %v682_v50, %v332_v53  ;;  %v369_v50 = vld [vmem:[%s4236_s29 + $0x738] sm:$0xff]  ;;  %v370_v51 = vld [vmem:[%s4236_s29 + $0x740] sm:$0xff]  ;;  %v726_v52 = vmax.f32 %v363_v42, %v364_v43 }
  0xaf   : > { %644 = vmax.xlane.f32.xlu0 %v643_v54  ;;  %v336_v54 = vld [vmem:[%s4236_s29 + $0x630] sm:$0xff] }
  0xb0   : > { %v690_v60 = vmax.f32 %v336_v54, %v337_v55  ;;  %v695_v11 = vmax.f32 %v694_v57, %v341_v59  ;;  %v365_v54 = vld [vmem:[%s4236_s29 + $0x718] sm:$0xff]  ;;  %v366_v59 = vld [vmem:[%s4236_s29 + $0x720] sm:$0xff] }
  0xb1   : > { %656 = vmax.xlane.f32.xlu1 %v655_v62  ;;  %v346_v62 = vld [vmem:[%s4236_s29 + $0x680] sm:$0xff] }
  0xb2   : > { %v702_v12 = vmax.f32 %v345_v61, %v346_v62  ;;  %v691_v16 = vmax.f32 %v690_v60, %v338_v63  ;;  %v367_v60 = vld [vmem:[%s4236_s29 + $0x728] sm:$0xff] }
  0xb3   : > { %652 = vmax.xlane.f32.xlu0 %v651_v3  ;;  %v342_v3 = vld [vmem:[%s4236_s29 + $0x660] sm:$0xff] }
  0xb4   : > { %v698_v20 = vmax.f32 %v342_v3, %v343_v7  ;;  %v703_v30 = vmax.f32 %v702_v12, %v347_v17  ;;  %v362_v7 = vld [vmem:[%s4236_s29 + $0x700] sm:$0xff] }
  0xb5   : > { %664 = vmax.xlane.f32.xlu1 %v663_v24  ;;  %v352_v24 = vld [vmem:[%s4236_s29 + $0x6b0] sm:$0xff] }
  0xb6   : > { %v710_v31 = vmax.f32 %v351_v21, %v352_v24  ;;  %v699_v32 = vmax.f32 %v698_v20, %v344_v26  ;;  %v727_v20 = vmax.f32 %v726_v52, %v365_v54  ;;  %v375_v21 = vld [vmem:[%s4236_s29 + $0x768] sm:$0xff]  ;;  %v376_v24 = vld [vmem:[%s4236_s29 + $0x770] sm:$0xff] }
  0xb7   : > { %660 = vmax.xlane.f32.xlu0 %v659_v27  ;;  %v348_v27 = vld [vmem:[%s4236_s29 + $0x690] sm:$0xff]  ;;  %v383_v54 = vld [vmem:[%s4236_s29 + $0x7a8] sm:$0xff] }
  0xb8   : > { %v706_v34 = vmax.f32 %v348_v27, %v349_v28  ;;  %v711_v40 = vmax.f32 %v710_v31, %v353_v33  ;;  %v368_v31 = vld [vmem:[%s4236_s29 + $0x730] sm:$0xff] }
  0xb9   : > { %672 = vmax.xlane.f32.xlu1 %v671_v36  ;;  %v358_v36 = vld [vmem:[%s4236_s29 + $0x6e0] sm:$0xff] }
  0xba   : > { %v718_v41 = vmax.f32 %v357_v35, %v358_v36  ;;  %v707_v44 = vmax.f32 %v706_v34, %v350_v37  ;;  %v372_v35 = vld [vmem:[%s4236_s29 + $0x750] sm:$0xff]  ;;  %v373_v36 = vld [vmem:[%s4236_s29 + $0x758] sm:$0xff] }
  0xbb   : > { %668 = vmax.xlane.f32.xlu0 %v667_v38  ;;  %v354_v38 = vld [vmem:[%s4236_s29 + $0x6c0] sm:$0xff] }
  0xbc   : > { %v714_v47 = vmax.f32 %v354_v38, %v355_v39  ;;  %v719_v53 = vmax.f32 %v718_v41, %v359_v45  ;;  %v742_v39 = vmax.f32 %v375_v21, %v376_v24  ;;  %v382_v41 = vld [vmem:[%s4236_s29 + $0x7a0] sm:$0xff]  ;;  %v738_v45 = vmax.f32 %v372_v35, %v373_v36 }
  0xbd   : > { %680 = vmax.xlane.f32.xlu1 %v679_v46  ;;  %v356_v46 = vld [vmem:[%s4236_s29 + $0x6d0] sm:$0xff]  ;;  %v394_v21 = vld [vmem:[%s4236_s29 + $0x800] sm:$0xff] }
  0xbf   : > { %676 = vmax.xlane.f32.xlu0 %v675_v48  ;;  %v360_v48 = vld [vmem:[%s4236_s29 + $0x6f0] sm:$0xff] }
  0xc0   : > { %v722_v57 = vmax.f32 %v360_v48, %v361_v49 }
  0xc1   : > { %688 = vmax.xlane.f32.xlu1 %v687_v56  ;;  %v715_v56 = vmax.f32 %v714_v47, %v356_v46  ;;  %v378_v46 = vld [vmem:[%s4236_s29 + $0x780] sm:$0xff]  ;;  %v379_v47 = vld [vmem:[%s4236_s29 + $0x788] sm:$0xff] }
  0xc3   : > { %684 = vmax.xlane.f32.xlu0 %v683_v58  ;;  %v734_v58 = vmax.f32 %v369_v50, %v370_v51  ;;  %v374_v50 = vld [vmem:[%s4236_s29 + $0x760] sm:$0xff] }
  0xc5   : > { %696 = vmax.xlane.f32.xlu1 %v695_v11  ;;  %v371_v11 = vld [vmem:[%s4236_s29 + $0x748] sm:$0xff] }
  0xc7   : > { %692 = vmax.xlane.f32.xlu0 %v691_v16 }
  0xc9   : > { %704 = vmax.xlane.f32.xlu1 %v703_v30  ;;  %v735_v30 = vmax.f32 %v734_v58, %v371_v11  ;;  %v388_v58 = vld [vmem:[%s4236_s29 + $0x7d0] sm:$0xff] }
  0xca   : > { %v384_v11 = vld [vmem:[%s4236_s29 + $0x7b0] sm:$0xff] }
  0xcb   : > { %700 = vmax.xlane.f32.xlu0 %v699_v32 }
  0xcd   : > { %712 = vmax.xlane.f32.xlu1 %v711_v40  ;;  %v381_v40 = vld [vmem:[%s4236_s29 + $0x798] sm:$0xff] }
  0xce   : > { %v437_v55 = vpop.xlane.xlu1 %436  ;;  %v750_v51 = vmax.f32 %v381_v40, %v382_v41  ;;  %v3749_v41 = vld [vmem:[%s4236_s29 + $0x90] sm:$0xff] }
  0xcf   : > { %708 = vmax.xlane.f32.xlu0 %v707_v44  ;;  %v816_v61 = vsub.f32 %v4243_v0, %v437_v55  ;;  %v817_v62 = vsub.f32 %v4246_v1, %v437_v55  ;;  %v818_v63 = vsub.f32 %v4249_v2, %v437_v55  ;;  %v730_v1 = vmax.f32 %v366_v59, %v367_v60 }
  0xd0   : > { %v429_v3 = vpop.xlane.xlu0 %428 }
  0xd1   : > { %v810_v12 = vsub.f32 %v4254_v4, %v429_v3  ;;  %v811_v16 = vsub.f32 %v4257_v5, %v429_v3  ;;  %v812_v17 = vsub.f32 %v4260_v6, %v429_v3  ;;  %v1110_v26 = vmul.f32 1.442695, %v816_v61  ;;  %720 = vmax.xlane.f32.xlu1 %v719_v53 }
  0xd2   : > { %v1112_v27 = vmul.f32 1.442695, %v817_v62  ;;  %v1114_v0 = vmul.f32 1.442695, %v818_v63  ;;  %v441_v4 = vpop.xlane.xlu1 %440  ;;  %v723_v5 = vmax.f32 %v722_v57, %v362_v7  ;;  %v746_v57 = vmax.f32 %v378_v46, %v379_v47  ;;  %v380_v62 = vld [vmem:[%s4236_s29 + $0x790] sm:$0xff]  ;;  %v399_v46 = vld [vmem:[%s4236_s29 + $0x828] sm:$0xff] }
  0xd3   : > { %v1098_v2 = vmul.f32 1.442695, %v810_v12  ;;  %v1100_v28 = vmul.f32 1.442695, %v811_v16  ;;  %716 = vmax.xlane.f32.xlu0 %v715_v56  ;;  %2978 = vpow2.f32 %v1110_v26  ;;  %v819_v6 = vsub.f32 %v4265_v8, %v441_v4  ;;  %v385_v12 = vld [vmem:[%s4236_s29 + $0x7b8] sm:$0xff]  ;;  %v3746_v26 = vld [vmem:[%s4236_s29 + $0xa8] sm:$0xff] }
  0xd4   : > { %v820_v32 = vsub.f32 %v4268_v9, %v441_v4  ;;  %v821_v33 = vsub.f32 %v4271_v10, %v441_v4  ;;  %v433_v34 = vpop.xlane.xlu0 %432  ;;  %2980 = vpow2.f32 %v1112_v27  ;;  %v1102_v37 = vmul.f32 1.442695, %v812_v17  ;;  %v377_v10 = vld [vmem:[%s4236_s29 + $0x778] sm:$0xff]  ;;  %v400_v47 = vld [vmem:[%s4236_s29 + $0x830] sm:$0xff] }
  0xd5   : > { %v813_v38 = vsub.f32 %v4277_v13, %v433_v34  ;;  %2982 = vpow2.f32 %v1114_v0  ;;  %v1116_v42 = vmul.f32 1.442695, %v819_v6  ;;  %v814_v8 = vsub.f32 %v4280_v14, %v433_v34  ;;  %728 = vmax.xlane.f32.xlu1 %v727_v20  ;;  %v393_v20 = vld [vmem:[%s4236_s29 + $0x7f8] sm:$0xff]  ;;  %v391_v6 = vld [vmem:[%s4236_s29 + $0x7e8] sm:$0xff] }
  0xd6   : > { %v731_v9 = vmax.f32 %v730_v1, %v368_v31  ;;  %2984 = vpow2.f32 %v1098_v2  ;;  %v1118_v43 = vmul.f32 1.442695, %v820_v32  ;;  %v815_v44 = vsub.f32 %v4283_v15, %v433_v34  ;;  %v449_v13 = vpop.xlane.xlu1 %448  ;;  %v389_v1 = vld [vmem:[%s4236_s29 + $0x7d8] sm:$0xff]  ;;  %v390_v31 = vld [vmem:[%s4236_s29 + $0x7e0] sm:$0xff] }
  0xd7   : > { %724 = vmax.xlane.f32.xlu0 %v723_v5  ;;  %2986 = vpow2.f32 %v1100_v28  ;;  %v1120_v48 = vmul.f32 1.442695, %v821_v33  ;;  %v825_v14 = vsub.f32 %v4289_v18, %v449_v13  ;;  %v1104_v52 = vmul.f32 1.442695, %v813_v38  ;;  %v387_v18 = vld [vmem:[%s4236_s29 + $0x7c8] sm:$0xff]  ;;  %v3747_v28 = vld [vmem:[%s4236_s29 + $0xb0] sm:$0xff] }
  0xd8   : > { %v4552_v49 = vpop.xlane.xlu0 %444  ;;  %2988 = vpow2.f32 %v1102_v37  ;;  %v826_v15 = vsub.f32 %v4292_v19, %v449_v13  ;;  %v743_v53 = vmax.f32 %v742_v39, %v377_v10  ;;  %v1106_v55 = vmul.f32 1.442695, %v814_v8  ;;  %v3748_v34 = vld [vmem:[%s4236_s29 + $0xb8] sm:$0xff]  ;;  %v386_v37 = vld [vmem:[%s4236_s29 + $0x7c0] sm:$0xff] }
  0xd9   : > { %2990 = vpow2.f32 %v1116_v42  ;;  %v827_v56 = vsub.f32 %v4305_v25, %v449_v13  ;;  %736 = vmax.xlane.f32.xlu1 %v735_v30  ;;  %v1108_v59 = vmul.f32 1.442695, %v815_v44  ;;  %v822_v60 = vsub.f32 %v4298_v22, %v4552_v49  ;;  %v3750_v44 = vld [vmem:[%s4236_s29 + $0x98] sm:$0xff] }
  0xda   : > { %2992 = vpow2.f32 %v1118_v43  ;;  %v4562_v19 = vpop.xlane.xlu1 %456  ;;  %v739_v61 = vmax.f32 %v738_v45, %v374_v50  ;;  %v1128_v25 = vmul.f32 1.442695, %v825_v14  ;;  %v823_v63 = vsub.f32 %v4301_v23, %v4552_v49 }
  0xdb   : > { %732 = vmax.xlane.f32.xlu0 %v731_v9  ;;  %2994 = vpow2.f32 %v1120_v48  ;;  %v751_v7 = vmax.f32 %v750_v51, %v383_v54  ;;  %v1130_v22 = vmul.f32 1.442695, %v826_v15  ;;  %v824_v16 = vsub.f32 %v4312_v29, %v4552_v49  ;;  %v395_v9 = vld [vmem:[%s4236_s29 + $0x808] sm:$0xff]  ;;  %v3751_v49 = vld [vmem:[%s4236_s29 + $0xa0] sm:$0xff]  ;;  %v392_v15 = vld [vmem:[%s4236_s29 + $0x7f0] sm:$0xff] }
  0xdc   : > { %v4567_v3 = vpop.xlane.xlu0 %452  ;;  %2996 = vpow2.f32 %v1104_v52  ;;  %v758_v17 = vmax.f32 %v387_v18, %v388_v58  ;;  %v1132_v23 = vmul.f32 1.442695, %v827_v56  ;;  %v831_v27 = vsub.f32 %v3746_v26, %v4562_v19  ;;  %v396_v58 = vld [vmem:[%s4236_s29 + $0x810] sm:$0xff] }
  0xdd   : > { %v4575_v24 = vpop.eup %2978  ;;  %2998 = vpow2.f32 %v1106_v55  ;;  %744 = vmax.xlane.f32.xlu1 %v743_v53  ;;  %v747_v0 = vmax.f32 %v746_v57, %v380_v62  ;;  %v1122_v29 = vmul.f32 1.442695, %v822_v60  ;;  %v832_v4 = vsub.f32 %v3747_v28, %v4562_v19  ;;  %v3752_v55 = vld [vmem:[%s4236_s29 + $0xd8] sm:$0xff] }
  0xde   : > { %7281 = vst [vmem:[#allocation8_spill] sm:$0xff] %v4575_v24  ;;  %v4580_v2 = vpop.eup %2980  ;;  %3000 = vpow2.f32 %v1108_v59  ;;  %v4584_v5 = vpop.xlane.xlu1 %464  ;;  %v754_v30 = vmax.f32 %v384_v11, %v385_v12  ;;  %v1124_v33 = vmul.f32 1.442695, %v823_v63  ;;  %v833_v35 = vsub.f32 %v3748_v34, %v4562_v19  ;;  %v397_v59 = vld [vmem:[%s4236_s29 + $0x818] sm:$0xff]  ;;  %v3754_v12 = vld [vmem:[%s4236_s29 + $0xe8] sm:$0xff] }
  0xdf   : > { %7282 = vst [vmem:[#allocation9_spill] sm:$0xff] %v4580_v2  ;;  %740 = vmax.xlane.f32.xlu0 %v739_v61  ;;  %v4588_v32 = vpop.eup %2982  ;;  %3002 = vpow2.f32 %v1128_v25  ;;  %v766_v38 = vmax.f32 %v393_v20, %v394_v21  ;;  %v1126_v40 = vmul.f32 1.442695, %v824_v16  ;;  %v828_v42 = vsub.f32 %v3749_v41, %v4567_v3  ;;  %v3753_v61 = vld [vmem:[%s4236_s29 + $0xe0] sm:$0xff]  ;;  %v405_v63 = vld [vmem:[%s4236_s29 + $0x858] sm:$0xff]  ;;  %v407_v41 = vld [vmem:[%s4236_s29 + $0x868] sm:$0xff] }
  0xe0   : > { %7283 = vst [vmem:[#allocation10_spill] sm:$0xff] %v4588_v32  ;;  %v4592_v36 = vpop.xlane.xlu0 %460  ;;  %v4595_v39 = vpop.eup %2984  ;;  %3004 = vpow2.f32 %v1130_v22  ;;  %v759_v8 = vmax.f32 %v758_v17, %v389_v1  ;;  %v1140_v43 = vmul.f32 1.442695, %v831_v27  ;;  %v829_v13 = vsub.f32 %v3750_v44, %v4567_v3  ;;  %v401_v17 = vld [vmem:[%s4236_s29 + $0x838] sm:$0xff]  ;;  %v402_v1 = vld [vmem:[%s4236_s29 + $0x840] sm:$0xff] }
  0xe1   : > { %7284 = vst [vmem:[#allocation11_spill] sm:$0xff] %v4595_v39  ;;  %v4600_v10 = vpop.eup %2986  ;;  %3006 = vpow2.f32 %v1132_v23  ;;  %752 = vmax.xlane.f32.xlu1 %v751_v7  ;;  %v762_v45 = vmax.f32 %v390_v31, %v391_v6  ;;  %v1142_v14 = vmul.f32 1.442695, %v832_v4  ;;  %v830_v50 = vsub.f32 %v3751_v49, %v4567_v3  ;;  %v406_v3 = vld [vmem:[%s4236_s29 + $0x860] sm:$0xff] }
  0xe2   : > { %7285 = vst [vmem:[#allocation12_spill] sm:$0xff] %v4600_v10  ;;  %v4606_v48 = vpop.eup %2988  ;;  %3008 = vpow2.f32 %v1122_v29  ;;  %v4610_v51 = vpop.xlane.xlu1 %472  ;;  %v755_v52 = vmax.f32 %v754_v30, %v386_v37  ;;  %v1144_v54 = vmul.f32 1.442695, %v833_v35  ;;  %v837_v56 = vsub.f32 %v3752_v55, %v4584_v5  ;;  %v3755_v23 = vld [vmem:[%s4236_s29 + $0xc0] sm:$0xff]  ;;  %v403_v29 = vld [vmem:[%s4236_s29 + $0x848] sm:$0xff]  ;;  %v3757_v37 = vld [vmem:[%s4236_s29 + $0xd0] sm:$0xff] }
  0xe3   : > { %7286 = vst [vmem:[#allocation13_spill] sm:$0xff] %v4606_v48  ;;  %748 = vmax.xlane.f32.xlu0 %v747_v0  ;;  %v4613_v53 = vpop.eup %2990  ;;  %3010 = vpow2.f32 %v1124_v33  ;;  %v767_v18 = vmax.f32 %v766_v38, %v395_v9  ;;  %v1134_v19 = vmul.f32 1.442695, %v828_v42  ;;  %v838_v62 = vsub.f32 %v3753_v61, %v4584_v5  ;;  %v398_v6 = vld [vmem:[%s4236_s29 + $0x820] sm:$0xff]  ;;  %v3758_v9 = vld [vmem:[%s4236_s29 + $0x108] sm:$0xff]  ;;  %v3760_v55 = vld [vmem:[%s4236_s29 + $0x118] sm:$0xff] }
  0xe4   : > { %7287 = vst [vmem:[#allocation14_spill] sm:$0xff] %v4613_v53  ;;  %v4617_v57 = vpop.xlane.xlu0 %468  ;;  %v4621_v60 = vpop.eup %2992  ;;  %3012 = vpow2.f32 %v1126_v40  ;;  %v774_v25 = vmax.f32 %v399_v46, %v400_v47  ;;  %v1136_v11 = vmul.f32 1.442695, %v829_v13  ;;  %v839_v22 = vsub.f32 %v3754_v12, %v4584_v5  ;;  %v3756_v5 = vld [vmem:[%s4236_s29 + $0xc8] sm:$0xff]  ;;  %v3759_v47 = vld [vmem:[%s4236_s29 + $0x110] sm:$0xff]  ;;  %v418_v12 = vld [vmem:[%s4236_s29 + $0x8c0] sm:$0xff] }
  0xe5   : > { %7288 = vst [vmem:[#allocation15_spill] sm:$0xff] %v4621_v60  ;;  %v4627_v7 = vpop.eup %2994  ;;  %3014 = vpow2.f32 %v1140_v43  ;;  %760 = vmax.xlane.f32.xlu1 %v759_v8  ;;  %v763_v16 = vmax.f32 %v762_v45, %v392_v15  ;;  %v1138_v21 = vmul.f32 1.442695, %v830_v50  ;;  %v834_v26 = vsub.f32 %v3755_v23, %v4592_v36  ;;  %v411_v13 = vld [vmem:[%s4236_s29 + $0x888] sm:$0xff]  ;;  %v412_v45 = vld [vmem:[%s4236_s29 + $0x890] sm:$0xff]  ;;  %v413_v23 = vld [vmem:[%s4236_s29 + $0x898] sm:$0xff] }
  0xe6   : > { %7289 = vst [vmem:[#allocation16_spill] sm:$0xff] %v4627_v7  ;;  %v4632_v20 = vpop.eup %2996  ;;  %3016 = vpow2.f32 %v1142_v14  ;;  %v4636_v27 = vpop.xlane.xlu1 %480  ;;  %v770_v0 = vmax.f32 %v396_v58, %v397_v59  ;;  %v1152_v4 = vmul.f32 1.442695, %v837_v56  ;;  %v835_v30 = vsub.f32 %v3756_v5, %v4592_v36  ;;  %v408_v59 = vld [vmem:[%s4236_s29 + $0x870] sm:$0xff] }
  0xe7   : > { %7290 = vst [vmem:[#allocation17_spill] sm:$0xff] %v4632_v20  ;;  %756 = vmax.xlane.f32.xlu0 %v755_v52  ;;  %v4640_v28 = vpop.eup %2998  ;;  %3018 = vpow2.f32 %v1144_v54  ;;  %v782_v33 = vmax.f32 %v405_v63, %v406_v3  ;;  %v1154_v35 = vmul.f32 1.442695, %v838_v62  ;;  %v836_v38 = vsub.f32 %v3757_v37, %v4592_v36  ;;  %v404_v52 = vld [vmem:[%s4236_s29 + $0x850] sm:$0xff]  ;;  %v3764_v37 = vld [vmem:[%s4236_s29 + $0x138] sm:$0xff] }
  0xe8   : > { %7291 = vst [vmem:[#allocation18_spill] sm:$0xff] %v4640_v28  ;;  %v4644_v31 = vpop.xlane.xlu0 %476  ;;  %v4647_v34 = vpop.eup %3000  ;;  %3020 = vpow2.f32 %v1134_v19  ;;  %v775_v40 = vmax.f32 %v774_v25, %v401_v17  ;;  %v1156_v8 = vmul.f32 1.442695, %v839_v22  ;;  %v843_v43 = vsub.f32 %v3758_v9, %v4610_v51  ;;  %v409_v19 = vld [vmem:[%s4236_s29 + $0x878] sm:$0xff]  ;;  %v3761_v25 = vld [vmem:[%s4236_s29 + $0xf0] sm:$0xff] }
  0xe9   : > { %7292 = vst [vmem:[#allocation19_spill] sm:$0xff] %v4647_v34  ;;  %v4652_v42 = vpop.eup %3002  ;;  %3022 = vpow2.f32 %v1136_v11  ;;  %768 = vmax.xlane.f32.xlu1 %v767_v18  ;;  %v778_v44 = vmax.f32 %v402_v1, %v403_v29  ;;  %v1146_v36 = vmul.f32 1.442695, %v834_v26  ;;  %v844_v14 = vsub.f32 %v3759_v47, %v4610_v51  ;;  %v417_v11 = vld [vmem:[%s4236_s29 + $0x8b8] sm:$0xff]  ;;  %v3763_v1 = vld [vmem:[%s4236_s29 + $0x100] sm:$0xff] }
  0xea   : > { %7293 = vst [vmem:[#allocation20_spill] sm:$0xff] %v4652_v42  ;;  %v4658_v46 = vpop.eup %3004  ;;  %3024 = vpow2.f32 %v1138_v21  ;;  %v4662_v49 = vpop.xlane.xlu1 %488  ;;  %v771_v50 = vmax.f32 %v770_v0, %v398_v6  ;;  %v1148_v54 = vmul.f32 1.442695, %v835_v30  ;;  %v845_v56 = vsub.f32 %v3760_v55, %v4610_v51  ;;  %v414_v30 = vld [vmem:[%s4236_s29 + $0x8a0] sm:$0xff]  ;;  %v415_v6 = vld [vmem:[%s4236_s29 + $0x8a8] sm:$0xff]  ;;  %v424_v55 = vld [vmem:[%s4236_s29 + $0x8f0] sm:$0xff] }
  0xeb   : > { %7294 = vst [vmem:[#allocation21_spill] sm:$0xff] %v4658_v46  ;;  %764 = vmax.xlane.f32.xlu0 %v763_v16  ;;  %v4665_v15 = vpop.eup %3006  ;;  %3026 = vpow2.f32 %v1152_v4  ;;  %v783_v58 = vmax.f32 %v782_v33, %v407_v41  ;;  %v1150_v62 = vmul.f32 1.442695, %v836_v38  ;;  %v840_v63 = vsub.f32 %v3761_v25, %v4617_v57  ;;  %v3762_v16 = vld [vmem:[%s4236_s29 + $0xf8] sm:$0xff]  ;;  %v410_v41 = vld [vmem:[%s4236_s29 + $0x880] sm:$0xff] }
  0xec   : > { %7295 = vst [vmem:[#allocation22_spill] sm:$0xff] %v4665_v15  ;;  %v4669_v18 = vpop.xlane.xlu0 %484  ;;  %v4673_v61 = vpop.eup %3008  ;;  %3028 = vpow2.f32 %v1154_v35  ;;  %v790_v3 = vmax.f32 %v411_v13, %v412_v45  ;;  %v1164_v51 = vmul.f32 1.442695, %v843_v43  ;;  %v841_v17 = vsub.f32 %v3762_v16, %v4617_v57  ;;  %v3765_v43 = vld [vmem:[%s4236_s29 + $0x140] sm:$0xff]  ;;  %v419_v45 = vld [vmem:[%s4236_s29 + $0x8c8] sm:$0xff] }
  0xed   : > { %7296 = vst [vmem:[#allocation23_spill] sm:$0xff] %v4673_v61  ;;  %v4679_v22 = vpop.eup %3010  ;;  %3030 = vpow2.f32 %v1156_v8  ;;  %776 = vmax.xlane.f32.xlu1 %v775_v40  ;;  %v779_v21 = vmax.f32 %v778_v44, %v404_v52  ;;  %v1166_v0 = vmul.f32 1.442695, %v844_v14  ;;  %v842_v29 = vsub.f32 %v3763_v1, %v4617_v57  ;;  %v3766_v14 = vld [vmem:[%s4236_s29 + $0x148] sm:$0xff]  ;;  %v3769_v1 = vld [vmem:[%s4236_s29 + $0x130] sm:$0xff] }
  0xee   : > { %7297 = vst [vmem:[#allocation24_spill] sm:$0xff] %v4679_v22  ;;  %v4684_v26 = vpop.eup %3012  ;;  %3032 = vpow2.f32 %v1146_v36  ;;  %v4688_v4 = vpop.xlane.xlu1 %496  ;;  %v786_v5 = vmax.f32 %v408_v59, %v409_v19  ;;  %v1168_v35 = vmul.f32 1.442695, %v845_v56  ;;  %v849_v38 = vsub.f32 %v3764_v37, %v4636_v27  ;;  %v3767_v19 = vld [vmem:[%s4236_s29 + $0x120] sm:$0xff] }
  0xef   : > { %7298 = vst [vmem:[#allocation25_spill] sm:$0xff] %v4684_v26  ;;  %772 = vmax.xlane.f32.xlu0 %v771_v50  ;;  %v4692_v33 = vpop.eup %3014  ;;  %3034 = vpow2.f32 %v1148_v54  ;;  %v798_v57 = vmax.f32 %v417_v11, %v418_v12  ;;  %v1158_v9 = vmul.f32 1.442695, %v840_v63  ;;  %v850_v44 = vsub.f32 %v3765_v43, %v4636_v27  ;;  %v423_v54 = vld [vmem:[%s4236_s29 + $0x8e8] sm:$0xff] }
  0xf0   : > { %7299 = vst [vmem:[#allocation26_spill] sm:$0xff] %v4692_v33  ;;  %v4696_v40 = vpop.xlane.xlu0 %492  ;;  %v4699_v8 = vpop.eup %3016  ;;  %3036 = vpow2.f32 %v1150_v62  ;;  %v791_v13 = vmax.f32 %v790_v3, %v413_v23  ;;  %v1160_v47 = vmul.f32 1.442695, %v841_v17  ;;  %v851_v50 = vsub.f32 %v3766_v14, %v4636_v27  ;;  %v416_v27 = vld [vmem:[%s4236_s29 + $0x8b0] sm:$0xff]  ;;  %v3768_v11 = vld [vmem:[%s4236_s29 + $0x128] sm:$0xff]  ;;  %v421_v23 = vld [vmem:[%s4236_s29 + $0x8d8] sm:$0xff] }
  0xf1   : > { %7300 = vst [vmem:[#allocation27_spill] sm:$0xff] %v4699_v8  ;;  %v4704_v36 = vpop.eup %3018  ;;  %3038 = vpow2.f32 %v1164_v51  ;;  %784 = vmax.xlane.f32.xlu1 %v783_v58  ;;  %v794_v52 = vmax.f32 %v414_v30, %v415_v6  ;;  %v1162_v59 = vmul.f32 1.442695, %v842_v29  ;;  %v846_v62 = vsub.f32 %v3767_v19, %v4644_v31  ;;  %v420_v17 = vld [vmem:[%s4236_s29 + $0x8d0] sm:$0xff]  ;;  %v3772_v14 = vld [vmem:[%s4236_s29 + $0x178] sm:$0xff] }
  0xf2   : > { %7301 = vst [vmem:[#allocation28_spill] sm:$0xff] %v4704_v36  ;;  %v4710_v56 = vpop.eup %3020  ;;  %3040 = vpow2.f32 %v1166_v0  ;;  %v4714_v25 = vpop.xlane.xlu1 %504  ;;  %v787_v63 = vmax.f32 %v786_v5, %v410_v41  ;;  %v1176_v3 = vmul.f32 1.442695, %v849_v38  ;;  %v847_v12 = vsub.f32 %v3768_v11, %v4644_v31  ;;  %v3773_v19 = vld [vmem:[%s4236_s29 + $0x150] sm:$0xff] }
  0xf3   : > { %7302 = vst [vmem:[#allocation29_spill] sm:$0xff] %v4710_v56  ;;  %780 = vmax.xlane.f32.xlu0 %v779_v21  ;;  %v4717_v58 = vpop.eup %3022  ;;  %3042 = vpow2.f32 %v1168_v35  ;;  %v799_v16 = vmax.f32 %v798_v57, %v419_v45  ;;  %v1178_v21 = vmul.f32 1.442695, %v850_v44  ;;  %v848_v29 = vsub.f32 %v3769_v1, %v4644_v31  ;;  %v3770_v35 = vld [vmem:[%s4236_s29 + $0x168] sm:$0xff]  ;;  %v425_v44 = vld [vmem:[%s4236_s29 + $0x8f8] sm:$0xff] }
  0xf4   : > { %7303 = vst [vmem:[#allocation30_spill] sm:$0xff] %v4717_v58  ;;  %v4721_v51 = vpop.xlane.xlu0 %500  ;;  %v4725_v0 = vpop.eup %3024  ;;  %3044 = vpow2.f32 %v1158_v9  ;;  %v806_v5 = vmax.f32 %v423_v54, %v424_v55  ;;  %v1180_v6 = vmul.f32 1.442695, %v851_v50  ;;  %v855_v37 = vsub.f32 %v3770_v35, %v4662_v49  ;;  %v3771_v9 = vld [vmem:[%s4236_s29 + $0x170] sm:$0xff]  ;;  %v422_v54 = vld [vmem:[%s4236_s29 + $0x8e0] sm:$0xff] }
  0xf5   : > { %7304 = vst [vmem:[#allocation31_spill] sm:$0xff] %v4725_v0  ;;  %v4729_v30 = vpop.eup %3026  ;;  %3046 = vpow2.f32 %v1160_v47  ;;  %792 = vmax.xlane.f32.xlu1 %v791_v13  ;;  %v795_v38 = vmax.f32 %v794_v52, %v416_v27  ;;  %v1170_v57 = vmul.f32 1.442695, %v846_v62  ;;  %v856_v31 = vsub.f32 %v3771_v9, %v4662_v49 }
  0xf6   : > { %7305 = vst [vmem:[#allocation32_spill] sm:$0xff] %v4729_v30  ;;  %v4733_v41 = vpop.eup %3028  ;;  %3048 = vpow2.f32 %v1162_v59  ;;  %v4737_v43 = vpop.xlane.xlu1 %512  ;;  %v802_v45 = vmax.f32 %v420_v17, %v421_v23  ;;  %v1172_v13 = vmul.f32 1.442695, %v847_v12  ;;  %v857_v50 = vsub.f32 %v3772_v14, %v4662_v49  ;;  %v3775_v23 = vld [vmem:[%s4236_s29 + $0x160] sm:$0xff] }
  0xf7   : > { %7306 = vst [vmem:[#allocation33_spill] sm:$0xff] %v4733_v41  ;;  %788 = vmax.xlane.f32.xlu0 %v787_v63  ;;  %v4740_v47 = vpop.eup %3030  ;;  %3050 = vpow2.f32 %v1176_v3  ;;  %v1174_v59 = vmul.f32 1.442695, %v848_v29  ;;  %v852_v62 = vsub.f32 %v3773_v19, %v4669_v18  ;;  %v1188_v27 = vmul.f32 1.442695, %v855_v37  ;;  %v3774_v3 = vld [vmem:[%s4236_s29 + $0x158] sm:$0xff] }
  0xf8   : > { %7307 = vst [vmem:[#allocation34_spill] sm:$0xff] %v4740_v47  ;;  %v4744_v52 = vpop.xlane.xlu0 %508  ;;  %v4747_v55 = vpop.eup %3032  ;;  %3052 = vpow2.f32 %v1178_v21  ;;  %v853_v11 = vsub.f32 %v3774_v3, %v4669_v18  ;;  %v807_v49 = vmax.f32 %v806_v5, %v425_v44  ;;  %v1190_v17 = vmul.f32 1.442695, %v856_v31  ;;  %v3776_v37 = vld [vmem:[%s4236_s29 + $0x198] sm:$0xff]  ;;  %v3780_v19 = vld [vmem:[%s4236_s29 + $0x188] sm:$0xff] }
  0xf9   : > { %7308 = vst [vmem:[#allocation35_spill] sm:$0xff] %v4747_v55  ;;  %v4751_v63 = vpop.eup %3034  ;;  %3054 = vpow2.f32 %v1180_v6  ;;  %800 = vmax.xlane.f32.xlu1 %v799_v16  ;;  %v854_v21 = vsub.f32 %v3775_v23, %v4669_v18  ;;  %v803_v29 = vmax.f32 %v802_v45, %v422_v54  ;;  %v1192_v35 = vmul.f32 1.442695, %v857_v50  ;;  %v3778_v45 = vld [vmem:[%s4236_s29 + $0x1a8] sm:$0xff]  ;;  %v3779_v54 = vld [vmem:[%s4236_s29 + $0x180] sm:$0xff]  ;;  %v3781_v23 = vld [vmem:[%s4236_s29 + $0x190] sm:$0xff] }
  0xfa   : > { %7309 = vst [vmem:[#allocation36_spill] sm:$0xff] %v4751_v63  ;;  %v4755_v12 = vpop.eup %3036  ;;  %3056 = vpow2.f32 %v1170_v57  ;;  %v4759_v1 = vpop.xlane.xlu1 %520  ;;  %v861_v16 = vsub.f32 %v3776_v37, %v4688_v4  ;;  %v1182_v18 = vmul.f32 1.442695, %v852_v62  ;;  %v1184_v44 = vmul.f32 1.442695, %v853_v11 }
  0xfb   : > { %7310 = vst [vmem:[#allocation37_spill] sm:$0xff] %v4755_v12  ;;  %796 = vmax.xlane.f32.xlu0 %v795_v38  ;;  %v4761_v6 = vpop.eup %3038  ;;  %3058 = vpow2.f32 %v1172_v13  ;;  %v3777_v38 = vld [vmem:[%s4236_s29 + $0x1a0] sm:$0xff]  ;;  %v863_v13 = vsub.f32 %v3778_v45, %v4688_v4  ;;  %v1186_v50 = vmul.f32 1.442695, %v854_v21  ;;  %v859_v62 = vsub.f32 %v3780_v19, %v4696_v40 }
  0xfc   : > { %7311 = vst [vmem:[#allocation38_spill] sm:$0xff] %v4761_v6  ;;  %v4765_v5 = vpop.xlane.xlu0 %516  ;;  %v4767_v57 = vpop.eup %3040  ;;  %3060 = vpow2.f32 %v1174_v59  ;;  %v862_v9 = vsub.f32 %v3777_v38, %v4688_v4  ;;  %v858_v59 = vsub.f32 %v3779_v54, %v4696_v40  ;;  %v1200_v4 = vmul.f32 1.442695, %v861_v16  ;;  %v3782_v38 = vld [vmem:[%s4236_s29 + $0x1c8] sm:$0xff] }
  0xfd   : > { %7312 = vst [vmem:[#allocation39_spill] sm:$0xff] %v4767_v57  ;;  %v4771_v31 = vpop.eup %3042  ;;  %3062 = vpow2.f32 %v1188_v27  ;;  %808 = vmax.xlane.f32.xlu1 %v807_v49  ;;  %v860_v21 = vsub.f32 %v3781_v23, %v4696_v40  ;;  %v867_v45 = vsub.f32 %v3782_v38, %v4714_v25  ;;  %v1196_v54 = vmul.f32 1.442695, %v859_v62 }
  0xfe   : > { %7313 = vst [vmem:[#allocation40_spill] sm:$0xff] %v4771_v31  ;;  %v4775_v14 = vpop.eup %3044  ;;  %3064 = vpow2.f32 %v1190_v17  ;;  %v4781_v3 = vpop.xlane.xlu1 %528  ;;  %v1202_v17 = vmul.f32 1.442695, %v862_v9  ;;  %v1194_v16 = vmul.f32 1.442695, %v858_v59  ;;  %v1674_v23 = vadd.f32 %v4600_v10, %v4595_v39 }
  0xff   : > { %7314 = vst [vmem:[#allocation41_spill] sm:$0xff] %v4775_v14  ;;  %804 = vmax.xlane.f32.xlu0 %v803_v29  ;;  %v4783_v27 = vpop.eup %3046  ;;  %3066 = vpow2.f32 %v1192_v35  ;;  %v1204_v29 = vmul.f32 1.442695, %v863_v13  ;;  %v1198_v38 = vmul.f32 1.442695, %v860_v21  ;;  %v3787_v21 = vld [vmem:[%s4236_s29 + $0x1c0] sm:$0xff] }
 0x100   : > { %7315 = vst [vmem:[#allocation42_spill] sm:$0xff] %v4783_v27  ;;  %v4785_v11 = vpop.xlane.xlu0 %524  ;;  %v4787_v49 = vpop.eup %3048  ;;  %3068 = vpow2.f32 %v1182_v18  ;;  %v3783_v18 = vld [vmem:[%s4236_s29 + $0x1d0] sm:$0xff]  ;;  %v1212_v10 = vmul.f32 1.442695, %v867_v45  ;;  %v1675_v39 = vadd.f32 %v4606_v48, %v1674_v23 }
 0x101   : > { %7316 = vst [vmem:[#allocation43_spill] sm:$0xff] %v4787_v49  ;;  %v4791_v37 = vpop.eup %3050  ;;  %3070 = vpow2.f32 %v1184_v44  ;;  %v868_v9 = vsub.f32 %v3783_v18, %v4714_v25  ;;  %v3784_v44 = vld [vmem:[%s4236_s29 + $0x1d8] sm:$0xff]  ;;  %v3785_v18 = vld [vmem:[%s4236_s29 + $0x1b0] sm:$0xff] }
 0x102   : > { %7317 = vst [vmem:[#allocation44_spill] sm:$0xff] %v4791_v37  ;;  %v4795_v35 = vpop.eup %3052  ;;  %3072 = vpow2.f32 %v1186_v50  ;;  %v4799_v19 = vpop.xlane.xlu1 %536  ;;  %v869_v13 = vsub.f32 %v3784_v44, %v4714_v25  ;;  %v1678_v50 = vadd.f32 %v4640_v28, %v4632_v20 }
 0x103   : > { %7318 = vst [vmem:[#allocation45_spill] sm:$0xff] %v4795_v35  ;;  %v4801_v40 = vpop.eup %3054  ;;  %3074 = vpow2.f32 %v1200_v4  ;;  %v3786_v4 = vld [vmem:[%s4236_s29 + $0x1b8] sm:$0xff]  ;;  %1676 = vadd.xlane.f32.xlu0 %v1675_v39 }
 0x104   : > { %7319 = vst [vmem:[#allocation46_spill] sm:$0xff] %v4801_v40  ;;  %v4809_v59 = vpop.xlane.xlu0 %532  ;;  %v4811_v62 = vpop.eup %3056  ;;  %3076 = vpow2.f32 %v1202_v17  ;;  %v864_v40 = vsub.f32 %v3785_v18, %v4721_v51  ;;  %v865_v25 = vsub.f32 %v3786_v4, %v4721_v51  ;;  %v1679_v28 = vadd.f32 %v4647_v34, %v1678_v50  ;;  %v3789_v50 = vld [vmem:[%s4236_s29 + $0x200] sm:$0xff] }
 0x105   : > { %7320 = vst [vmem:[#allocation47_spill] sm:$0xff] %v4811_v62  ;;  %v4817_v44 = vpop.eup %3058  ;;  %3078 = vpow2.f32 %v1204_v29  ;;  %v1214_v17 = vmul.f32 1.442695, %v868_v9  ;;  %v866_v18 = vsub.f32 %v3787_v21, %v4721_v51  ;;  %v1216_v4 = vmul.f32 1.442695, %v869_v13  ;;  %v3788_v29 = vld [vmem:[%s4236_s29 + $0x1f8] sm:$0xff] }
 0x106   : > { %7321 = vst [vmem:[#allocation48_spill] sm:$0xff] %v4817_v44  ;;  %v4821_v20 = vpop.eup %3060  ;;  %3080 = vpow2.f32 %v1194_v16  ;;  %v4825_v62 = vpop.xlane.xlu1 %544  ;;  %v873_v45 = vsub.f32 %v3788_v29, %v4737_v43  ;;  %1680 = vadd.xlane.f32.xlu1 %v1679_v28  ;;  %v1682_v16 = vadd.f32 %v4580_v2, %v4575_v24  ;;  %v1206_v51 = vmul.f32 1.442695, %v864_v40  ;;  %v3790_v28 = vld [vmem:[%s4236_s29 + $0x208] sm:$0xff] }
 0x107   : > { %7322 = vst [vmem:[#allocation49_spill] sm:$0xff] %v4821_v20  ;;  %v4827_v35 = vpop.eup %3062  ;;  %3082 = vpow2.f32 %v1196_v54  ;;  %v874_v54 = vsub.f32 %v3789_v50, %v4737_v43  ;;  %v1686_v13 = vadd.f32 %v4621_v60, %v4613_v53  ;;  %v1208_v39 = vmul.f32 1.442695, %v865_v25 }
 0x108   : > { %7323 = vst [vmem:[#allocation50_spill] sm:$0xff] %v4827_v35  ;;  %v4833_v9 = vpop.xlane.xlu0 %540  ;;  %v4835_v23 = vpop.eup %3064  ;;  %3084 = vpow2.f32 %v1198_v38  ;;  %v875_v29 = vsub.f32 %v3790_v28, %v4737_v43  ;;  %v1683_v2 = vadd.f32 %v4588_v32, %v1682_v16  ;;  %v1210_v40 = vmul.f32 1.442695, %v866_v18  ;;  %v3791_v38 = vld [vmem:[%s4236_s29 + $0x1e0] sm:$0xff]  ;;  %v3792_v43 = vld [vmem:[%s4236_s29 + $0x1e8] sm:$0xff]  ;;  %v3793_v28 = vld [vmem:[%s4236_s29 + $0x1f0] sm:$0xff] }
 0x109   : > { %7324 = vst [vmem:[#allocation51_spill] sm:$0xff] %v4835_v23  ;;  %v4841_v21 = vpop.eup %3066  ;;  %3086 = vpow2.f32 %v1212_v10  ;;  %v870_v50 = vsub.f32 %v3791_v38, %v4744_v52  ;;  %v1687_v60 = vadd.f32 %v4627_v7, %v1686_v13  ;;  %v1224_v10 = vmul.f32 1.442695, %v873_v45 }
 0x10a   : > { %7325 = vst [vmem:[#allocation52_spill] sm:$0xff] %v4841_v21  ;;  %v4846_v24 = vpop.eup %3068  ;;  %3088 = vpow2.f32 %v1214_v17  ;;  %v4851_v53 = vpop.xlane.xlu1 %552  ;;  %v871_v25 = vsub.f32 %v3792_v43, %v4744_v52  ;;  %1684 = vadd.xlane.f32.xlu0 %v1683_v2  ;;  %v1226_v18 = vmul.f32 1.442695, %v874_v54  ;;  %v872_v13 = vsub.f32 %v3793_v28, %v4744_v52  ;;  %v3794_v2 = vld [vmem:[%s4236_s29 + $0x228] sm:$0xff] }
 0x10b   : > { %7326 = vst [vmem:[#allocation53_spill] sm:$0xff] %v4846_v24  ;;  %v4853_v48 = vpop.eup %3070  ;;  %3090 = vpow2.f32 %v1216_v4  ;;  %1688 = vadd.xlane.f32.xlu1 %v1687_v60  ;;  %v1694_v4 = vadd.f32 %v4658_v46, %v4652_v42  ;;  %v1228_v45 = vmul.f32 1.442695, %v875_v29  ;;  %v879_v43 = vsub.f32 %v3794_v2, %v4759_v1  ;;  %v3795_v60 = vld [vmem:[%s4236_s29 + $0x230] sm:$0xff]  ;;  %v3796_v2 = vld [vmem:[%s4236_s29 + $0x238] sm:$0xff] }
 0x10c   : > { %7327 = vst [vmem:[#allocation54_spill] sm:$0xff] %v4853_v48  ;;  %v4857_v16 = vpop.xlane.xlu0 %548  ;;  %v4859_v17 = vpop.eup %3072  ;;  %3092 = vpow2.f32 %v1206_v51  ;;  %v1690_v32 = vadd.f32 %v4679_v22, %v4673_v61  ;;  %v1218_v52 = vmul.f32 1.442695, %v870_v50  ;;  %v880_v54 = vsub.f32 %v3795_v60, %v4759_v1 }
 0x10d   : > { %7328 = vst [vmem:[#allocation55_spill] sm:$0xff] %v4859_v17  ;;  %v4865_v38 = vpop.eup %3074  ;;  %3094 = vpow2.f32 %v1208_v39  ;;  %v1695_v28 = vadd.f32 %v4665_v15, %v1694_v4  ;;  %v1220_v29 = vmul.f32 1.442695, %v871_v25  ;;  %v881_v22 = vsub.f32 %v3796_v2, %v4759_v1  ;;  %v3797_v4 = vld [vmem:[%s4236_s29 + $0x210] sm:$0xff]  ;;  %v3798_v25 = vld [vmem:[%s4236_s29 + $0x218] sm:$0xff] }
 0x10e   : > { %7329 = vst [vmem:[#allocation56_spill] sm:$0xff] %v4865_v38  ;;  %v4871_v51 = vpop.eup %3076  ;;  %3096 = vpow2.f32 %v1210_v40  ;;  %v4876_v46 = vpop.xlane.xlu1 %560  ;;  %v1691_v61 = vadd.f32 %v4684_v26, %v1690_v32  ;;  %v1222_v60 = vmul.f32 1.442695, %v872_v13  ;;  %v876_v15 = vsub.f32 %v3797_v4, %v4765_v5 }
 0x10f   : > { %7330 = vst [vmem:[#allocation57_spill] sm:$0xff] %v4871_v51  ;;  %v4878_v39 = vpop.eup %3078  ;;  %3098 = vpow2.f32 %v1224_v10  ;;  %1696 = vadd.xlane.f32.xlu1 %v1695_v28  ;;  %v1236_v10 = vmul.f32 1.442695, %v879_v43  ;;  %v877_v1 = vsub.f32 %v3798_v25, %v4765_v5  ;;  %v1238_v2 = vmul.f32 1.442695, %v880_v54  ;;  %v3800_v43 = vld [vmem:[%s4236_s29 + $0x258] sm:$0xff] }
 0x110   : > { %7331 = vst [vmem:[#allocation58_spill] sm:$0xff] %v4878_v39  ;;  %v4883_v40 = vpop.xlane.xlu0 %556  ;;  %v4885_v50 = vpop.eup %3080  ;;  %3100 = vpow2.f32 %v1226_v18  ;;  %1692 = vadd.xlane.f32.xlu0 %v1691_v61  ;;  %v3799_v18 = vld [vmem:[%s4236_s29 + $0x220] sm:$0xff]  ;;  %v1702_v28 = vadd.f32 %v4699_v8, %v4692_v33  ;;  %v885_v61 = vsub.f32 %v3800_v43, %v4781_v3  ;;  %v1230_v25 = vmul.f32 1.442695, %v876_v15  ;;  %v3802_v33 = vld [vmem:[%s4236_s29 + $0x268] sm:$0xff] }
 0x111   : > { %7332 = vst [vmem:[#allocation59_spill] sm:$0xff] %v4885_v50  ;;  %v4889_v42 = vpop.eup %3082  ;;  %3102 = vpow2.f32 %v1228_v45  ;;  %v878_v13 = vsub.f32 %v3799_v18, %v4765_v5  ;;  %v1240_v45 = vmul.f32 1.442695, %v881_v22  ;;  %v3801_v18 = vld [vmem:[%s4236_s29 + $0x260] sm:$0xff]  ;;  %v1232_v43 = vmul.f32 1.442695, %v877_v1 }
 0x112   : > { %7333 = vst [vmem:[#allocation60_spill] sm:$0xff] %v4889_v42  ;;  %v4893_v32 = vpop.eup %3084  ;;  %3104 = vpow2.f32 %v1218_v52  ;;  %v4899_v4 = vpop.xlane.xlu1 %568  ;;  %v1698_v52 = vadd.f32 %v4717_v58, %v4710_v56  ;;  %v886_v8 = vsub.f32 %v3801_v18, %v4781_v3  ;;  %v887_v58 = vsub.f32 %v3802_v33, %v4781_v3  ;;  %v3803_v15 = vld [vmem:[%s4236_s29 + $0x240] sm:$0xff]  ;;  %v3804_v18 = vld [vmem:[%s4236_s29 + $0x248] sm:$0xff]  ;;  %v3805_v3 = vld [vmem:[%s4236_s29 + $0x250] sm:$0xff] }
 0x113   : > { %7334 = vst [vmem:[#allocation61_spill] sm:$0xff] %v4893_v32  ;;  %v4901_v26 = vpop.eup %3086  ;;  %3106 = vpow2.f32 %v1220_v29  ;;  %v1703_v29 = vadd.f32 %v4704_v36, %v1702_v28  ;;  %v882_v34 = vsub.f32 %v3803_v15, %v4785_v11  ;;  %v883_v28 = vsub.f32 %v3804_v18, %v4785_v11  ;;  %v3806_v18 = vld [vmem:[%s4236_s29 + $0x288] sm:$0xff] }
 0x114   : > { %7335 = vst [vmem:[#allocation62_spill] sm:$0xff] %v4901_v26  ;;  %v4907_v54 = vpop.xlane.xlu0 %564  ;;  %v4909_v5 = vpop.eup %3088  ;;  %3108 = vpow2.f32 %v1222_v60  ;;  %v1699_v56 = vadd.f32 %v4725_v0, %v1698_v52  ;;  %v1234_v60 = vmul.f32 1.442695, %v878_v13  ;;  %v1248_v33 = vmul.f32 1.442695, %v885_v61 }
 0x115   : > { %7336 = vst [vmem:[#allocation63_spill] sm:$0xff] %v4909_v5  ;;  %v4914_v22 = vpop.eup %3090  ;;  %3110 = vpow2.f32 %v1236_v10  ;;  %1704 = vadd.xlane.f32.xlu1 %v1703_v29  ;;  %v884_v52 = vsub.f32 %v3805_v3, %v4785_v11  ;;  %v1250_v29 = vmul.f32 1.442695, %v886_v8  ;;  %v891_v0 = vsub.f32 %v3806_v18, %v4799_v19 }
 0x116   : > { %7337 = vst [vmem:[#allocation64_spill] sm:$0xff] %v4914_v22  ;;  %v4919_v7 = vpop.eup %3092  ;;  %3112 = vpow2.f32 %v1238_v2  ;;  %v4925_v10 = vpop.xlane.xlu1 %576  ;;  %1700 = vadd.xlane.f32.xlu0 %v1699_v56  ;;  %v1710_v2 = vadd.f32 %v4733_v41, %v4729_v30  ;;  %v1252_v56 = vmul.f32 1.442695, %v887_v58  ;;  %v1242_v41 = vmul.f32 1.442695, %v882_v34 }
 0x117   : > { %7338 = vst [vmem:[#allocation65_spill] sm:$0xff] %v4919_v7  ;;  %v4927_v1 = vpop.eup %3094  ;;  %3114 = vpow2.f32 %v1240_v45  ;;  %v1706_v45 = vadd.f32 %v4751_v63, %v4747_v55  ;;  %v1246_v58 = vmul.f32 1.442695, %v884_v52  ;;  %v3810_v52 = vld [vmem:[%s4236_s29 + $0x278] sm:$0xff] }
 0x118   : > { %7339 = vst [vmem:[#allocation66_spill] sm:$0xff] %v4927_v1  ;;  %v4933_v13 = vpop.xlane.xlu0 %572  ;;  %v4935_v15 = vpop.eup %3096  ;;  %3116 = vpow2.f32 %v1230_v25  ;;  %v1711_v11 = vadd.f32 %v4740_v47, %v1710_v2  ;;  %v3807_v25 = vld [vmem:[%s4236_s29 + $0x290] sm:$0xff]  ;;  %v3808_v2 = vld [vmem:[%s4236_s29 + $0x298] sm:$0xff]  ;;  %v3816_v47 = vld [vmem:[%s4236_s29 + $0x2a8] sm:$0xff] }
 0x119   : > { %7340 = vst [vmem:[#allocation67_spill] sm:$0xff] %v4935_v15  ;;  %v4941_v61 = vpop.eup %3098  ;;  %3118 = vpow2.f32 %v1232_v43  ;;  %v892_v8 = vsub.f32 %v3807_v25, %v4799_v19  ;;  %v1707_v18 = vadd.f32 %v4755_v12, %v1706_v45  ;;  %v1244_v43 = vmul.f32 1.442695, %v883_v28  ;;  %v3809_v45 = vld [vmem:[%s4236_s29 + $0x270] sm:$0xff] }
 0x11a   : > { %7341 = vst [vmem:[#allocation68_spill] sm:$0xff] %v4941_v61  ;;  %v4944_v3 = vpop.eup %3100  ;;  %3120 = vpow2.f32 %v1234_v60  ;;  %v4949_v30 = vpop.xlane.xlu1 %584  ;;  %v893_v55 = vsub.f32 %v3808_v2, %v4799_v19  ;;  %1712 = vadd.xlane.f32.xlu1 %v1711_v11  ;;  %v1260_v25 = vmul.f32 1.442695, %v891_v0  ;;  %v888_v12 = vsub.f32 %v3809_v45, %v4809_v59  ;;  %v3811_v11 = vld [vmem:[%s4236_s29 + $0x280] sm:$0xff] }
 0x11b   : > { %7342 = vst [vmem:[#allocation69_spill] sm:$0xff] %v4944_v3  ;;  %v4951_v63 = vpop.eup %3102  ;;  %3122 = vpow2.f32 %v1248_v33  ;;  %1708 = vadd.xlane.f32.xlu0 %v1707_v18  ;;  %v1718_v33 = vadd.f32 %v4767_v57, %v4761_v6  ;;  %v889_v19 = vsub.f32 %v3810_v52, %v4809_v59  ;;  %v890_v2 = vsub.f32 %v3811_v11, %v4809_v59  ;;  %v3812_v52 = vld [vmem:[%s4236_s29 + $0x2b8] sm:$0xff] }
 0x11c   : > { %7343 = vst [vmem:[#allocation70_spill] sm:$0xff] %v4951_v63  ;;  %v4955_v34 = vpop.xlane.xlu0 %580  ;;  %v4957_v60 = vpop.eup %3104  ;;  %3124 = vpow2.f32 %v1250_v29  ;;  %v1714_v0 = vadd.f32 %v4783_v27, %v4775_v14  ;;  %v1262_v18 = vmul.f32 1.442695, %v892_v8  ;;  %v897_v59 = vsub.f32 %v3812_v52, %v4825_v62  ;;  %v3813_v8 = vld [vmem:[%s4236_s29 + $0x2c0] sm:$0xff]  ;;  %v3814_v52 = vld [vmem:[%s4236_s29 + $0x2c8] sm:$0xff] }
 0x11d   : > { %7344 = vst [vmem:[#allocation71_spill] sm:$0xff] %v4957_v60  ;;  %v4963_v28 = vpop.eup %3106  ;;  %3126 = vpow2.f32 %v1252_v56  ;;  %v1719_v45 = vadd.f32 %v4771_v31, %v1718_v33  ;;  %v1264_v56 = vmul.f32 1.442695, %v893_v55  ;;  %v898_v33 = vsub.f32 %v3813_v8, %v4825_v62 }
 0x11e   : > { %7345 = vst [vmem:[#allocation72_spill] sm:$0xff] %v4963_v28  ;;  %v4971_v29 = vpop.eup %3108  ;;  %3128 = vpow2.f32 %v1242_v41  ;;  %v4974_v57 = vpop.xlane.xlu1 %592  ;;  %v1715_v11 = vadd.f32 %v4787_v49, %v1714_v0  ;;  %v1254_v41 = vmul.f32 1.442695, %v888_v12  ;;  %v1256_v55 = vmul.f32 1.442695, %v889_v19 }
 0x11f   : > { %7346 = vst [vmem:[#allocation73_spill] sm:$0xff] %v4971_v29  ;;  %7347 = vst [vmem:[#allocation74_spill] sm:$0xff] %v4974_v57  ;;  %v4976_v6 = vpop.eup %3110  ;;  %3130 = vpow2.f32 %v1244_v43  ;;  %1720 = vadd.xlane.f32.xlu1 %v1719_v45  ;;  %v1258_v31 = vmul.f32 1.442695, %v890_v2  ;;  %v899_v0 = vsub.f32 %v3814_v52, %v4825_v62  ;;  %v895_v8 = vsub.f32 %v3816_v47, %v4833_v9  ;;  %v7353_v45 = vld [vmem:[#allocation45_spill] sm:$0xff]  ;;  %v7356_v2 = vld [vmem:[#allocation47_spill] sm:$0xff] }
 0x120   : > { %7348 = vst [vmem:[#allocation75_spill] sm:$0xff] %v4976_v6  ;;  %v4981_v27 = vpop.xlane.xlu0 %588  ;;  %v4983_v14 = vpop.eup %3112  ;;  %3132 = vpow2.f32 %v1246_v58  ;;  %1716 = vadd.xlane.f32.xlu0 %v1715_v11  ;;  %v3815_v58 = vld [vmem:[%s4236_s29 + $0x2a0] sm:$0xff]  ;;  %v1726_v36 = vadd.f32 %v7353_v45, %v4791_v37  ;;  %v1272_v62 = vmul.f32 1.442695, %v897_v59  ;;  %v1722_v11 = vadd.f32 %v4817_v44, %v7356_v2  ;;  %v7359_v37 = vld [vmem:[#allocation46_spill] sm:$0xff]  ;;  %v3818_v59 = vld [vmem:[%s4236_s29 + $0x2e8] sm:$0xff] }
 0x121   : > { %7349 = vst [vmem:[#allocation76_spill] sm:$0xff] %v4981_v27  ;;  %7350 = vst [vmem:[#allocation77_spill] sm:$0xff] %v4983_v14  ;;  %v4987_v43 = vpop.eup %3114  ;;  %3134 = vpow2.f32 %v1260_v25  ;;  %v894_v12 = vsub.f32 %v3815_v58, %v4833_v9  ;;  %v1274_v47 = vmul.f32 1.442695, %v898_v33  ;;  %v3817_v58 = vld [vmem:[%s4236_s29 + $0x2b0] sm:$0xff]  ;;  %v903_v44 = vsub.f32 %v3818_v59, %v4851_v53 }
 0x122   : > { %7351 = vst [vmem:[#allocation78_spill] sm:$0xff] %v4987_v43  ;;  %v4991_v49 = vpop.eup %3116  ;;  %3136 = vpow2.f32 %v1262_v18  ;;  %v4999_v25 = vpop.xlane.xlu1 %600  ;;  %v896_v45 = vsub.f32 %v3817_v58, %v4833_v9  ;;  %v1727_v27 = vadd.f32 %v7359_v37, %v1726_v36  ;;  %v1723_v2 = vadd.f32 %v4821_v20, %v1722_v11  ;;  %v3819_v57 = vld [vmem:[%s4236_s29 + $0x2f0] sm:$0xff]  ;;  %v3835_v37 = vld [vmem:[%s4236_s29 + $0x340] sm:$0xff] }
 0x123   : > { %7352 = vst [vmem:[#allocation79_spill] sm:$0xff] %v4991_v49  ;;  %7354 = vst [vmem:[#allocation80_spill] sm:$0xff] %v4999_v25  ;;  %v5001_v19 = vpop.eup %3118  ;;  %3138 = vpow2.f32 %v1264_v56  ;;  %v1276_v56 = vmul.f32 1.442695, %v899_v0  ;;  %v1268_v33 = vmul.f32 1.442695, %v895_v8  ;;  %v904_v36 = vsub.f32 %v3819_v57, %v4851_v53 }
 0x124   : > { %7355 = vst [vmem:[#allocation81_spill] sm:$0xff] %v5001_v19  ;;  %v5005_v18 = vpop.xlane.xlu0 %596  ;;  %v5007_v52 = vpop.eup %3120  ;;  %3140 = vpow2.f32 %v1254_v41  ;;  %v1266_v41 = vmul.f32 1.442695, %v894_v12  ;;  %1728 = vadd.xlane.f32.xlu1 %v1727_v27  ;;  %v3820_v0 = vld [vmem:[%s4236_s29 + $0x2f8] sm:$0xff]  ;;  %v3821_v59 = vld [vmem:[%s4236_s29 + $0x2d0] sm:$0xff]  ;;  %1724 = vadd.xlane.f32.xlu0 %v1723_v2 }
 0x125   : > { %7357 = vst [vmem:[#allocation82_spill] sm:$0xff] %v5005_v18  ;;  %7358 = vst [vmem:[#allocation83_spill] sm:$0xff] %v5007_v52  ;;  %v5012_v25 = vpop.eup %3122  ;;  %3142 = vpow2.f32 %v1256_v55  ;;  %v905_v58 = vsub.f32 %v3820_v0, %v4851_v53  ;;  %v900_v11 = vsub.f32 %v3821_v59, %v4857_v16  ;;  %v1270_v27 = vmul.f32 1.442695, %v896_v45  ;;  %v3822_v8 = vld [vmem:[%s4236_s29 + $0x2d8] sm:$0xff] }
 0x126   : > { %7360 = vst [vmem:[#allocation84_spill] sm:$0xff] %v5012_v25  ;;  %v5017_v18 = vpop.eup %3124  ;;  %3144 = vpow2.f32 %v1258_v31  ;;  %v5021_v9 = vpop.xlane.xlu1 %608  ;;  %v1734_v31 = vadd.f32 %v4835_v23, %v4827_v35  ;;  %v1730_v53 = vadd.f32 %v4853_v48, %v4846_v24  ;;  %v1284_v2 = vmul.f32 1.442695, %v903_v44 }
 0x127   : > { %7361 = vst [vmem:[#allocation85_spill] sm:$0xff] %v5017_v18  ;;  %v5023_v55 = vpop.eup %3126  ;;  %3146 = vpow2.f32 %v1272_v62  ;;  %v901_v62 = vsub.f32 %v3822_v8, %v4857_v16  ;;  %v1286_v35 = vmul.f32 1.442695, %v904_v36  ;;  %v1278_v44 = vmul.f32 1.442695, %v900_v11  ;;  %v3826_v11 = vld [vmem:[%s4236_s29 + $0x328] sm:$0xff] }
 0x128   : > { %7362 = vst [vmem:[#allocation86_spill] sm:$0xff] %v5023_v55  ;;  %v5031_v12 = vpop.xlane.xlu0 %604  ;;  %v5033_v57 = vpop.eup %3128  ;;  %3148 = vpow2.f32 %v1274_v47  ;;  %v1735_v59 = vadd.f32 %v4841_v21, %v1734_v31  ;;  %v3823_v47 = vld [vmem:[%s4236_s29 + $0x2e0] sm:$0xff]  ;;  %v1731_v8 = vadd.f32 %v4859_v17, %v1730_v53  ;;  %v3824_v31 = vld [vmem:[%s4236_s29 + $0x318] sm:$0xff] }
 0x129   : > { %7363 = vst [vmem:[#allocation87_spill] sm:$0xff] %v5033_v57  ;;  %v5039_v0 = vpop.eup %3130  ;;  %3150 = vpow2.f32 %v1276_v56  ;;  %v902_v45 = vsub.f32 %v3823_v47, %v4857_v16  ;;  %v1288_v56 = vmul.f32 1.442695, %v905_v58  ;;  %v909_v24 = vsub.f32 %v3824_v31, %v4876_v46  ;;  %v3825_v53 = vld [vmem:[%s4236_s29 + $0x320] sm:$0xff]  ;;  %v3832_v21 = vld [vmem:[%s4236_s29 + $0x358] sm:$0xff] }
 0x12a   : > { %7364 = vst [vmem:[#allocation88_spill] sm:$0xff] %v5039_v0  ;;  %v5042_v23 = vpop.eup %3132  ;;  %3152 = vpow2.f32 %v1266_v41  ;;  %v5047_v20 = vpop.xlane.xlu1 %616  ;;  %1736 = vadd.xlane.f32.xlu1 %v1735_v59  ;;  %v1280_v16 = vmul.f32 1.442695, %v901_v62  ;;  %v910_v47 = vsub.f32 %v3825_v53, %v4876_v46  ;;  %1732 = vadd.xlane.f32.xlu0 %v1731_v8  ;;  %v911_v59 = vsub.f32 %v3826_v11, %v4876_v46  ;;  %v3827_v31 = vld [vmem:[%s4236_s29 + $0x300] sm:$0xff] }
 0x12b   : > { %7365 = vst [vmem:[#allocation89_spill] sm:$0xff] %v5042_v23  ;;  %v5049_v48 = vpop.eup %3134  ;;  %3154 = vpow2.f32 %v1268_v33  ;;  %v1742_v33 = vadd.f32 %v4871_v51, %v4865_v38  ;;  %v906_v17 = vsub.f32 %v3827_v31, %v4883_v40  ;;  %v1282_v8 = vmul.f32 1.442695, %v902_v45  ;;  %v3829_v45 = vld [vmem:[%s4236_s29 + $0x310] sm:$0xff] }
 0x12c   : > { %7366 = vst [vmem:[#allocation90_spill] sm:$0xff] %v5049_v48  ;;  %v5053_v41 = vpop.xlane.xlu0 %612  ;;  %v5055_v36 = vpop.eup %3136  ;;  %3156 = vpow2.f32 %v1270_v27  ;;  %v1738_v27 = vadd.f32 %v4889_v42, %v4885_v50  ;;  %v1296_v46 = vmul.f32 1.442695, %v909_v24  ;;  %v1300_v24 = vmul.f32 1.442695, %v911_v59 }
 0x12d   : > { %7367 = vst [vmem:[#allocation91_spill] sm:$0xff] %v5055_v36  ;;  %v5061_v58 = vpop.eup %3138  ;;  %3158 = vpow2.f32 %v1284_v2  ;;  %v1743_v53 = vadd.f32 %v4878_v39, %v1742_v33  ;;  %v3828_v2 = vld [vmem:[%s4236_s29 + $0x308] sm:$0xff]  ;;  %v908_v33 = vsub.f32 %v3829_v45, %v4883_v40  ;;  %v1290_v39 = vmul.f32 1.442695, %v906_v17 }
 0x12e   : > { %7368 = vst [vmem:[#allocation92_spill] sm:$0xff] %v5061_v58  ;;  %v5069_v62 = vpop.eup %3140  ;;  %3160 = vpow2.f32 %v1286_v35  ;;  %v5072_v51 = vpop.xlane.xlu1 %624  ;;  %v907_v11 = vsub.f32 %v3828_v2, %v4883_v40  ;;  %v1739_v31 = vadd.f32 %v4893_v32, %v1738_v27  ;;  %v1298_v35 = vmul.f32 1.442695, %v910_v47  ;;  %v3830_v2 = vld [vmem:[%s4236_s29 + $0x348] sm:$0xff] }
 0x12f   : > { %7369 = vst [vmem:[#allocation93_spill] sm:$0xff] %v5069_v62  ;;  %v5074_v38 = vpop.eup %3142  ;;  %3162 = vpow2.f32 %v1288_v56  ;;  %1744 = vadd.xlane.f32.xlu1 %v1743_v53  ;;  %v915_v27 = vsub.f32 %v3830_v2, %v4899_v4  ;;  %v917_v40 = vsub.f32 %v3832_v21, %v4899_v4  ;;  %v1750_v53 = vadd.f32 %v4909_v5, %v4901_v26 }
 0x130   : > { %7370 = vst [vmem:[#allocation94_spill] sm:$0xff] %v5074_v38  ;;  %v5079_v42 = vpop.xlane.xlu0 %620  ;;  %v5081_v50 = vpop.eup %3144  ;;  %3164 = vpow2.f32 %v1278_v44  ;;  %1740 = vadd.xlane.f32.xlu0 %v1739_v31  ;;  %v3831_v44 = vld [vmem:[%s4236_s29 + $0x350] sm:$0xff]  ;;  %v1292_v59 = vmul.f32 1.442695, %v907_v11  ;;  %v1746_v31 = vadd.f32 %v4927_v1, %v4919_v7  ;;  %v1294_v21 = vmul.f32 1.442695, %v908_v33 }
 0x131   : > { %7371 = vst [vmem:[#allocation95_spill] sm:$0xff] %v5081_v50  ;;  %v5085_v56 = vpop.eup %3146  ;;  %3166 = vpow2.f32 %v1280_v16  ;;  %v916_v47 = vsub.f32 %v3831_v44, %v4899_v4  ;;  %v3833_v4 = vld [vmem:[%s4236_s29 + $0x330] sm:$0xff]  ;;  %v1751_v44 = vadd.f32 %v4914_v22, %v1750_v53  ;;  %v3834_v11 = vld [vmem:[%s4236_s29 + $0x338] sm:$0xff]  ;;  %v1312_v33 = vmul.f32 1.442695, %v917_v40  ;;  %v3837_v22 = vld [vmem:[%s4236_s29 + $0x380] sm:$0xff] }
 0x132   : > { %7372 = vst [vmem:[#allocation96_spill] sm:$0xff] %v5085_v56  ;;  %v5089_v32 = vpop.eup %3148  ;;  %3168 = vpow2.f32 %v1282_v8  ;;  %v5097_v16 = vpop.xlane.xlu1 %632  ;;  %v912_v2 = vsub.f32 %v3833_v4, %v4907_v54  ;;  %v913_v1 = vsub.f32 %v3834_v11, %v4907_v54  ;;  %v1747_v7 = vadd.f32 %v4935_v15, %v1746_v31  ;;  %v3838_v40 = vld [vmem:[%s4236_s29 + $0x388] sm:$0xff]  ;;  %v7390_v15 = vld [vmem:[#allocation74_spill] sm:$0xff] }
 0x133   : > { %7373 = vst [vmem:[#allocation97_spill] sm:$0xff] %v5089_v32  ;;  %v5099_v17 = vpop.eup %3150  ;;  %3170 = vpow2.f32 %v1296_v46  ;;  %v1308_v46 = vmul.f32 1.442695, %v915_v27  ;;  %v914_v53 = vsub.f32 %v3835_v37, %v4907_v54  ;;  %1752 = vadd.xlane.f32.xlu1 %v1751_v44  ;;  %v3836_v27 = vld [vmem:[%s4236_s29 + $0x378] sm:$0xff]  ;;  %v922_v31 = vsub.f32 %v3837_v22, %v4925_v10 }
 0x134   : > { %7374 = vst [vmem:[#allocation98_spill] sm:$0xff] %v5099_v17  ;;  %v5103_v8 = vpop.xlane.xlu0 %628  ;;  %v5105_v45 = vpop.eup %3152  ;;  %3172 = vpow2.f32 %v1298_v35  ;;  %v1310_v35 = vmul.f32 1.442695, %v916_v47  ;;  %v921_v11 = vsub.f32 %v3836_v27, %v4925_v10  ;;  %1748 = vadd.xlane.f32.xlu0 %v1747_v7  ;;  %v1302_v54 = vmul.f32 1.442695, %v912_v2 }
 0x135   : > { %7375 = vst [vmem:[#allocation99_spill] sm:$0xff] %v5105_v45  ;;  %v5110_v5 = vpop.eup %3154  ;;  %3174 = vpow2.f32 %v1300_v24  ;;  %v1754_v44 = vadd.f32 %v4963_v28, %v4957_v60  ;;  %v1304_v7 = vmul.f32 1.442695, %v913_v1  ;;  %v1322_v1 = vmul.f32 1.442695, %v922_v31  ;;  %v3842_v31 = vld [vmem:[%s4236_s29 + $0x3a8] sm:$0xff] }
 0x136   : > { %7376 = vst [vmem:[#allocation100_spill] sm:$0xff] %v5110_v5  ;;  %v5115_v26 = vpop.eup %3156  ;;  %3176 = vpow2.f32 %v1290_v39  ;;  %v5119_v4 = vpop.xlane.xlu1 %640  ;;  %v1758_v39 = vadd.f32 %v4944_v3, %v4941_v61  ;;  %v1306_v61 = vmul.f32 1.442695, %v914_v53 }
 0x137   : > { %7377 = vst [vmem:[#allocation101_spill] sm:$0xff] %v5115_v26  ;;  %v5121_v24 = vpop.eup %3158  ;;  %3178 = vpow2.f32 %v1292_v59  ;;  %v923_v59 = vsub.f32 %v3838_v40, %v4925_v10  ;;  %v1755_v10 = vadd.f32 %v4971_v29, %v1754_v44  ;;  %v3841_v44 = vld [vmem:[%s4236_s29 + $0x370] sm:$0xff] }
 0x138   : > { %7378 = vst [vmem:[#allocation102_spill] sm:$0xff] %v5121_v24  ;;  %v5129_v47 = vpop.xlane.xlu0 %636  ;;  %v5131_v37 = vpop.eup %3160  ;;  %3180 = vpow2.f32 %v1294_v21  ;;  %v1759_v22 = vadd.f32 %v4951_v63, %v1758_v39  ;;  %v3839_v21 = vld [vmem:[%s4236_s29 + $0x360] sm:$0xff]  ;;  %v3840_v39 = vld [vmem:[%s4236_s29 + $0x368] sm:$0xff]  ;;  %v920_v29 = vsub.f32 %v3841_v44, %v4933_v13 }
 0x139   : > { %7379 = vst [vmem:[#allocation103_spill] sm:$0xff] %v5131_v37  ;;  %v5137_v27 = vpop.eup %3162  ;;  %3182 = vpow2.f32 %v1308_v46  ;;  %v918_v2 = vsub.f32 %v3839_v21, %v4933_v13  ;;  %v1320_v46 = vmul.f32 1.442695, %v921_v11  ;;  %v919_v60 = vsub.f32 %v3840_v39, %v4933_v13  ;;  %1756 = vadd.xlane.f32.xlu0 %v1755_v10  ;;  %v3843_v39 = vld [vmem:[%s4236_s29 + $0x3b0] sm:$0xff] }
 0x13a   : > { %7380 = vst [vmem:[#allocation104_spill] sm:$0xff] %v5137_v27  ;;  %v5140_v3 = vpop.eup %3164  ;;  %3184 = vpow2.f32 %v1310_v35  ;;  %v5145_v40 = vpop.xlane.xlu1 %648  ;;  %1760 = vadd.xlane.f32.xlu1 %v1759_v22  ;;  %v1324_v21 = vmul.f32 1.442695, %v923_v59  ;;  %v927_v22 = vsub.f32 %v3842_v31, %v4949_v30  ;;  %v928_v63 = vsub.f32 %v3843_v39, %v4949_v30  ;;  %v3844_v31 = vld [vmem:[%s4236_s29 + $0x3b8] sm:$0xff] }
 0x13b   : > { %7381 = vst [vmem:[#allocation105_spill] sm:$0xff] %v5140_v3  ;;  %v5147_v28 = vpop.eup %3166  ;;  %3186 = vpow2.f32 %v1312_v33  ;;  %v1766_v33 = vadd.f32 %v4983_v14, %v4976_v6  ;;  %v1314_v13 = vmul.f32 1.442695, %v918_v2  ;;  %v929_v39 = vsub.f32 %v3844_v31, %v4949_v30  ;;  %v3845_v2 = vld [vmem:[%s4236_s29 + $0x390] sm:$0xff]  ;;  %v3846_v30 = vld [vmem:[%s4236_s29 + $0x398] sm:$0xff] }
 0x13c   : > { %7382 = vst [vmem:[#allocation106_spill] sm:$0xff] %v5147_v28  ;;  %v5151_v35 = vpop.xlane.xlu0 %644  ;;  %v5153_v53 = vpop.eup %3168  ;;  %3188 = vpow2.f32 %v1302_v54  ;;  %v1762_v54 = vadd.f32 %v5001_v19, %v4991_v49 }
 0x13d   : > { %7383 = vst [vmem:[#allocation107_spill] sm:$0xff] %v5153_v53  ;;  %v5159_v11 = vpop.eup %3170  ;;  %3190 = vpow2.f32 %v1304_v7  ;;  %v1767_v10 = vadd.f32 %v4987_v43, %v1766_v33  ;;  %v1316_v7 = vmul.f32 1.442695, %v919_v60  ;;  %v924_v33 = vsub.f32 %v3845_v2, %v4955_v34 }
 0x13e   : > { %7384 = vst [vmem:[#allocation108_spill] sm:$0xff] %v5159_v11  ;;  %v5167_v59 = vpop.eup %3172  ;;  %3192 = vpow2.f32 %v1306_v61  ;;  %v5170_v44 = vpop.xlane.xlu1 %656  ;;  %v1763_v6 = vadd.f32 %v5007_v52, %v1762_v54  ;;  %v1318_v61 = vmul.f32 1.442695, %v920_v29  ;;  %v1332_v60 = vmul.f32 1.442695, %v927_v22  ;;  %v3848_v52 = vld [vmem:[%s4236_s29 + $0x3d8] sm:$0xff] }
 0x13f   : > { %7385 = vst [vmem:[#allocation109_spill] sm:$0xff] %v5167_v59  ;;  %v5172_v14 = vpop.eup %3174  ;;  %3194 = vpow2.f32 %v1320_v46  ;;  %1768 = vadd.xlane.f32.xlu1 %v1767_v10  ;;  %v1334_v43 = vmul.f32 1.442695, %v928_v63  ;;  %v925_v54 = vsub.f32 %v3846_v30, %v4955_v34  ;;  %v933_v2 = vsub.f32 %v3848_v52, %v7390_v15  ;;  %v3849_v52 = vld [vmem:[%s4236_s29 + $0x3e0] sm:$0xff] }
 0x140   : > { %7386 = vst [vmem:[#allocation110_spill] sm:$0xff] %v5172_v14  ;;  %v5177_v19 = vpop.xlane.xlu0 %652  ;;  %v5179_v49 = vpop.eup %3176  ;;  %3196 = vpow2.f32 %v1322_v1  ;;  %1764 = vadd.xlane.f32.xlu0 %v1763_v6  ;;  %v3847_v1 = vld [vmem:[%s4236_s29 + $0x3a0] sm:$0xff]  ;;  %v1774_v10 = vadd.f32 %v5017_v18, %v5012_v25  ;;  %v1336_v6 = vmul.f32 1.442695, %v929_v39  ;;  %v1770_v22 = vadd.f32 %v5039_v0, %v5033_v57  ;;  %v3850_v39 = vld [vmem:[%s4236_s29 + $0x3e8] sm:$0xff] }
 0x141   : > { %7387 = vst [vmem:[#allocation111_spill] sm:$0xff] %v5179_v49  ;;  %v5183_v46 = vpop.eup %3178  ;;  %3198 = vpow2.f32 %v1324_v21  ;;  %v926_v29 = vsub.f32 %v3847_v1, %v4955_v34  ;;  %v1326_v34 = vmul.f32 1.442695, %v924_v33  ;;  %v934_v1 = vsub.f32 %v3849_v52, %v7390_v15  ;;  %v7397_v52 = vld [vmem:[#allocation76_spill] sm:$0xff] }
 0x142   : > { %7388 = vst [vmem:[#allocation112_spill] sm:$0xff] %v5183_v46  ;;  %v5187_v31 = vpop.eup %3180  ;;  %3200 = vpow2.f32 %v1314_v13  ;;  %v5195_v21 = vpop.xlane.xlu1 %664  ;;  %v1775_v18 = vadd.f32 %v5023_v55, %v1774_v10  ;;  %v935_v0 = vsub.f32 %v3850_v39, %v7390_v15  ;;  %v1771_v57 = vadd.f32 %v5042_v23, %v1770_v22  ;;  %v3853_v39 = vld [vmem:[%s4236_s29 + $0x3d0] sm:$0xff]  ;;  %v7401_v23 = vld [vmem:[#allocation80_spill] sm:$0xff] }
 0x143   : > { %7389 = vst [vmem:[#allocation113_spill] sm:$0xff] %v5187_v31  ;;  %7391 = vst [vmem:[#allocation74_spill] sm:$0xff] %v5195_v21  ;;  %v5197_v63 = vpop.eup %3182  ;;  %3202 = vpow2.f32 %v1316_v7  ;;  %v1328_v7 = vmul.f32 1.442695, %v925_v54  ;;  %v1344_v33 = vmul.f32 1.442695, %v933_v2  ;;  %v932_v22 = vsub.f32 %v3853_v39, %v7397_v52 }
 0x144   : > { %7392 = vst [vmem:[#allocation114_spill] sm:$0xff] %v5197_v63  ;;  %v5201_v13 = vpop.xlane.xlu0 %660  ;;  %v5203_v30 = vpop.eup %3184  ;;  %3204 = vpow2.f32 %v1318_v61  ;;  %v1330_v61 = vmul.f32 1.442695, %v926_v29  ;;  %v3851_v21 = vld [vmem:[%s4236_s29 + $0x3c0] sm:$0xff]  ;;  %1776 = vadd.xlane.f32.xlu1 %v1775_v18  ;;  %v3852_v54 = vld [vmem:[%s4236_s29 + $0x3c8] sm:$0xff]  ;;  %1772 = vadd.xlane.f32.xlu0 %v1771_v57 }
 0x145   : > { %7393 = vst [vmem:[#allocation115_spill] sm:$0xff] %v5201_v13  ;;  %7394 = vst [vmem:[#allocation116_spill] sm:$0xff] %v5203_v30  ;;  %v5208_v25 = vpop.eup %3186  ;;  %3206 = vpow2.f32 %v1332_v60  ;;  %v930_v10 = vsub.f32 %v3851_v21, %v7397_v52  ;;  %v931_v15 = vsub.f32 %v3852_v54, %v7397_v52  ;;  %v1346_v18 = vmul.f32 1.442695, %v934_v1  ;;  %v3854_v21 = vld [vmem:[%s4236_s29 + $0x408] sm:$0xff] }
 0x146   : > { %7395 = vst [vmem:[#allocation117_spill] sm:$0xff] %v5208_v25  ;;  %v5213_v13 = vpop.eup %3188  ;;  %3208 = vpow2.f32 %v1334_v43  ;;  %v5217_v55 = vpop.xlane.xlu1 %672  ;;  %v1782_v43 = vadd.f32 %v5055_v36, %v5049_v48  ;;  %v1778_v54 = vadd.f32 %v5074_v38, %v5069_v62  ;;  %v1348_v57 = vmul.f32 1.442695, %v935_v0 }
 0x147   : > { %7396 = vst [vmem:[#allocation118_spill] sm:$0xff] %v5213_v13  ;;  %7398 = vst [vmem:[#allocation76_spill] sm:$0xff] %v5217_v55  ;;  %v5219_v60 = vpop.eup %3190  ;;  %3210 = vpow2.f32 %v1336_v6  ;;  %v939_v6 = vsub.f32 %v3854_v21, %v7401_v23  ;;  %v1338_v36 = vmul.f32 1.442695, %v930_v10  ;;  %v1342_v0 = vmul.f32 1.442695, %v932_v22 }
 0x148   : > { %7399 = vst [vmem:[#allocation119_spill] sm:$0xff] %v5219_v60  ;;  %v5227_v29 = vpop.xlane.xlu0 %668  ;;  %v5229_v2 = vpop.eup %3192  ;;  %3212 = vpow2.f32 %v1326_v34  ;;  %v1783_v52 = vadd.f32 %v5061_v58, %v1782_v43  ;;  %v3855_v34 = vld [vmem:[%s4236_s29 + $0x410] sm:$0xff]  ;;  %v1779_v21 = vadd.f32 %v5081_v50, %v1778_v54  ;;  %v3856_v43 = vld [vmem:[%s4236_s29 + $0x418] sm:$0xff] }
 0x149   : > { %7400 = vst [vmem:[#allocation120_spill] sm:$0xff] %v5229_v2  ;;  %v5235_v55 = vpop.eup %3194  ;;  %3214 = vpow2.f32 %v1328_v7  ;;  %v940_v1 = vsub.f32 %v3855_v34, %v7401_v23  ;;  %v1340_v7 = vmul.f32 1.442695, %v931_v15  ;;  %v941_v62 = vsub.f32 %v3856_v43, %v7401_v23  ;;  %v3857_v54 = vld [vmem:[%s4236_s29 + $0x3f0] sm:$0xff]  ;;  %v3858_v22 = vld [vmem:[%s4236_s29 + $0x3f8] sm:$0xff] }
 0x14a   : > { %7402 = vst [vmem:[#allocation80_spill] sm:$0xff] %v5235_v55  ;;  %v5238_v39 = vpop.eup %3196  ;;  %3216 = vpow2.f32 %v1330_v61  ;;  %v5243_v48 = vpop.xlane.xlu1 %680  ;;  %1784 = vadd.xlane.f32.xlu1 %v1783_v52  ;;  %v1356_v34 = vmul.f32 1.442695, %v939_v6  ;;  %v7406_v50 = vld [vmem:[#allocation82_spill] sm:$0xff]  ;;  %1780 = vadd.xlane.f32.xlu0 %v1779_v21  ;;  %v3859_v52 = vld [vmem:[%s4236_s29 + $0x400] sm:$0xff] }
 0x14b   : > { %7403 = vst [vmem:[#allocation121_spill] sm:$0xff] %v5238_v39  ;;  %v5245_v38 = vpop.eup %3198  ;;  %3218 = vpow2.f32 %v1344_v33  ;;  %v936_v58 = vsub.f32 %v3857_v54, %v7406_v50  ;;  %v1790_v33 = vadd.f32 %v5089_v32, %v5085_v56  ;;  %v937_v23 = vsub.f32 %v3858_v22, %v7406_v50  ;;  %v3860_v22 = vld [vmem:[%s4236_s29 + $0x438] sm:$0xff] }
 0x14c   : > { %7404 = vst [vmem:[#allocation122_spill] sm:$0xff] %v5245_v38  ;;  %v5249_v61 = vpop.xlane.xlu0 %676  ;;  %v5251_v10 = vpop.eup %3200  ;;  %3220 = vpow2.f32 %v1346_v18  ;;  %v938_v43 = vsub.f32 %v3859_v52, %v7406_v50  ;;  %v1786_v18 = vadd.f32 %v5110_v5, %v5105_v45  ;;  %v1358_v21 = vmul.f32 1.442695, %v940_v1  ;;  %v3861_v1 = vld [vmem:[%s4236_s29 + $0x440] sm:$0xff] }
 0x14d   : > { %7405 = vst [vmem:[#allocation123_spill] sm:$0xff] %v5251_v10  ;;  %v5257_v15 = vpop.eup %3202  ;;  %3222 = vpow2.f32 %v1348_v57  ;;  %v1791_v54 = vadd.f32 %v5099_v17, %v1790_v33  ;;  %v1360_v57 = vmul.f32 1.442695, %v941_v62  ;;  %v945_v50 = vsub.f32 %v3860_v22, %v5021_v9  ;;  %v3862_v22 = vld [vmem:[%s4236_s29 + $0x448] sm:$0xff] }
 0x14e   : > { %7407 = vst [vmem:[#allocation82_spill] sm:$0xff] %v5257_v15  ;;  %v5265_v6 = vpop.eup %3204  ;;  %3224 = vpow2.f32 %v1338_v36  ;;  %v5268_v32 = vpop.xlane.xlu1 %688  ;;  %v1787_v52 = vadd.f32 %v5115_v26, %v1786_v18  ;;  %v1350_v36 = vmul.f32 1.442695, %v936_v58  ;;  %v946_v33 = vsub.f32 %v3861_v1, %v5021_v9 }
 0x14f   : > { %7408 = vst [vmem:[#allocation124_spill] sm:$0xff] %v5265_v6  ;;  %v5270_v56 = vpop.eup %3206  ;;  %3226 = vpow2.f32 %v1340_v7  ;;  %1792 = vadd.xlane.f32.xlu1 %v1791_v54  ;;  %v1352_v62 = vmul.f32 1.442695, %v937_v23  ;;  %v1354_v17 = vmul.f32 1.442695, %v938_v43  ;;  %v947_v18 = vsub.f32 %v3862_v22, %v5021_v9  ;;  %v3865_v22 = vld [vmem:[%s4236_s29 + $0x430] sm:$0xff] }
 0x150   : > { %7409 = vst [vmem:[#allocation125_spill] sm:$0xff] %v5270_v56  ;;  %v5275_v5 = vpop.xlane.xlu0 %684  ;;  %v5277_v45 = vpop.eup %3208  ;;  %3228 = vpow2.f32 %v1342_v0  ;;  %1788 = vadd.xlane.f32.xlu0 %v1787_v52  ;;  %v3863_v0 = vld [vmem:[%s4236_s29 + $0x420] sm:$0xff]  ;;  %v1798_v54 = vadd.f32 %v5131_v37, %v5121_v24  ;;  %v1368_v9 = vmul.f32 1.442695, %v945_v50  ;;  %v1794_v43 = vadd.f32 %v5147_v28, %v5140_v3  ;;  %v3866_v50 = vld [vmem:[%s4236_s29 + $0x468] sm:$0xff] }
 0x151   : > { %7410 = vst [vmem:[#allocation126_spill] sm:$0xff] %v5275_v5  ;;  %7411 = vst [vmem:[#allocation127_spill] sm:$0xff] %v5277_v45  ;;  %v5281_v7 = vpop.eup %3210  ;;  %3230 = vpow2.f32 %v1356_v34  ;;  %v942_v58 = vsub.f32 %v3863_v0, %v5031_v12  ;;  %v3864_v5 = vld [vmem:[%s4236_s29 + $0x428] sm:$0xff]  ;;  %v944_v0 = vsub.f32 %v3865_v22, %v5031_v12  ;;  %v951_v28 = vsub.f32 %v3866_v50, %v5047_v20  ;;  %v3869_v50 = vld [vmem:[%s4236_s29 + $0x450] sm:$0xff] }
 0x152   : > { %7412 = vst [vmem:[#allocation128_spill] sm:$0xff] %v5281_v7  ;;  %v5285_v26 = vpop.eup %3212  ;;  %3232 = vpow2.f32 %v1358_v21  ;;  %v943_v1 = vsub.f32 %v3864_v5, %v5031_v12  ;;  %v5293_v34 = vpop.xlane.xlu1 %696  ;;  %v1370_v5 = vmul.f32 1.442695, %v946_v33  ;;  %v1799_v37 = vadd.f32 %v5137_v27, %v1798_v54  ;;  %v3883_v27 = vld [vmem:[%s4236_s29 + $0x4c0] sm:$0xff] }
 0x153   : > { %7413 = vst [vmem:[#allocation129_spill] sm:$0xff] %v5285_v26  ;;  %7414 = vst [vmem:[#allocation130_spill] sm:$0xff] %v5293_v34  ;;  %v5295_v23 = vpop.eup %3214  ;;  %3234 = vpow2.f32 %v1360_v57  ;;  %v1372_v57 = vmul.f32 1.442695, %v947_v18  ;;  %v1795_v3 = vadd.f32 %v5153_v53, %v1794_v43  ;;  %v3867_v34 = vld [vmem:[%s4236_s29 + $0x470] sm:$0xff]  ;;  %v3868_v18 = vld [vmem:[%s4236_s29 + $0x478] sm:$0xff]  ;;  %v948_v43 = vsub.f32 %v3869_v50, %v5053_v41 }
 0x154   : > { %7415 = vst [vmem:[#allocation131_spill] sm:$0xff] %v5295_v23  ;;  %v5299_v21 = vpop.xlane.xlu0 %692  ;;  %v5301_v52 = vpop.eup %3216  ;;  %3236 = vpow2.f32 %v1350_v36  ;;  %v1362_v36 = vmul.f32 1.442695, %v942_v58  ;;  %v1364_v33 = vmul.f32 1.442695, %v943_v1  ;;  %v952_v12 = vsub.f32 %v3867_v34, %v5047_v20  ;;  %1800 = vadd.xlane.f32.xlu1 %v1799_v37  ;;  %v3870_v34 = vld [vmem:[%s4236_s29 + $0x458] sm:$0xff] }
 0x155   : > { %7416 = vst [vmem:[#allocation132_spill] sm:$0xff] %v5299_v21  ;;  %7417 = vst [vmem:[#allocation133_spill] sm:$0xff] %v5301_v52  ;;  %v5306_v24 = vpop.eup %3218  ;;  %3238 = vpow2.f32 %v1352_v62  ;;  %v953_v22 = vsub.f32 %v3868_v18, %v5047_v20  ;;  %1796 = vadd.xlane.f32.xlu0 %v1795_v3  ;;  %v1366_v37 = vmul.f32 1.442695, %v944_v0  ;;  %v1802_v20 = vadd.f32 %v5183_v46, %v5179_v49 }
 0x156   : > { %7418 = vst [vmem:[#allocation134_spill] sm:$0xff] %v5306_v24  ;;  %v5311_v21 = vpop.eup %3220  ;;  %3240 = vpow2.f32 %v1354_v17  ;;  %v5315_v54 = vpop.xlane.xlu1 %704  ;;  %v1806_v17 = vadd.f32 %v5167_v59, %v5159_v11  ;;  %v1380_v3 = vmul.f32 1.442695, %v951_v28  ;;  %v1382_v11 = vmul.f32 1.442695, %v952_v12 }
 0x157   : > { %7419 = vst [vmem:[#allocation135_spill] sm:$0xff] %v5311_v21  ;;  %v5317_v62 = vpop.eup %3222  ;;  %3242 = vpow2.f32 %v1368_v9  ;;  %v949_v9 = vsub.f32 %v3870_v34, %v5053_v41  ;;  %v1803_v34 = vadd.f32 %v5187_v31, %v1802_v20  ;;  %v1374_v28 = vmul.f32 1.442695, %v948_v43  ;;  %v3873_v20 = vld [vmem:[%s4236_s29 + $0x4a0] sm:$0xff]  ;;  %v3874_v43 = vld [vmem:[%s4236_s29 + $0x4a8] sm:$0xff] }
 0x158   : > { %7420 = vst [vmem:[#allocation136_spill] sm:$0xff] %v5317_v62  ;;  %v5325_v58 = vpop.xlane.xlu0 %700  ;;  %v5327_v1 = vpop.eup %3224  ;;  %3244 = vpow2.f32 %v1370_v5  ;;  %v1807_v50 = vadd.f32 %v5172_v14, %v1806_v17  ;;  %v3871_v5 = vld [vmem:[%s4236_s29 + $0x460] sm:$0xff]  ;;  %v3872_v17 = vld [vmem:[%s4236_s29 + $0x498] sm:$0xff] }
 0x159   : > { %7421 = vst [vmem:[#allocation137_spill] sm:$0xff] %v5327_v1  ;;  %v5333_v18 = vpop.eup %3226  ;;  %3246 = vpow2.f32 %v1372_v57  ;;  %v950_v0 = vsub.f32 %v3871_v5, %v5053_v41  ;;  %v1384_v57 = vmul.f32 1.442695, %v953_v22  ;;  %v957_v49 = vsub.f32 %v3872_v17, %v5072_v51  ;;  %1804 = vadd.xlane.f32.xlu0 %v1803_v34  ;;  %v3875_v17 = vld [vmem:[%s4236_s29 + $0x480] sm:$0xff]  ;;  %v3880_v14 = vld [vmem:[%s4236_s29 + $0x4d8] sm:$0xff] }
 0x15a   : > { %7422 = vst [vmem:[#allocation138_spill] sm:$0xff] %v5333_v18  ;;  %v5336_v59 = vpop.eup %3228  ;;  %3248 = vpow2.f32 %v1362_v36  ;;  %v5341_v53 = vpop.xlane.xlu1 %712  ;;  %1808 = vadd.xlane.f32.xlu1 %v1807_v50  ;;  %v1376_v41 = vmul.f32 1.442695, %v949_v9  ;;  %v958_v5 = vsub.f32 %v3873_v20, %v5072_v51  ;;  %v959_v50 = vsub.f32 %v3874_v43, %v5072_v51 }
 0x15b   : > { %7423 = vst [vmem:[#allocation139_spill] sm:$0xff] %v5336_v59  ;;  %v5343_v46 = vpop.eup %3230  ;;  %3250 = vpow2.f32 %v1364_v33  ;;  %v1814_v33 = vadd.f32 %v5203_v30, %v5197_v63  ;;  %v954_v31 = vsub.f32 %v3875_v17, %v5079_v42  ;;  %v1378_v34 = vmul.f32 1.442695, %v950_v0  ;;  %v3877_v0 = vld [vmem:[%s4236_s29 + $0x490] sm:$0xff] }
 0x15c   : > { %7424 = vst [vmem:[#allocation140_spill] sm:$0xff] %v5343_v46  ;;  %v5347_v36 = vpop.xlane.xlu0 %708  ;;  %v5349_v12 = vpop.eup %3232  ;;  %3252 = vpow2.f32 %v1366_v37  ;;  %v1810_v37 = vadd.f32 %v5219_v60, %v5213_v13  ;;  %v1392_v51 = vmul.f32 1.442695, %v957_v49  ;;  %v1396_v49 = vmul.f32 1.442695, %v959_v50 }
 0x15d   : > { %7425 = vst [vmem:[#allocation141_spill] sm:$0xff] %v5349_v12  ;;  %v5355_v22 = vpop.eup %3234  ;;  %3254 = vpow2.f32 %v1380_v3  ;;  %v1815_v20 = vadd.f32 %v5208_v25, %v1814_v33  ;;  %v3876_v3 = vld [vmem:[%s4236_s29 + $0x488] sm:$0xff]  ;;  %v956_v33 = vsub.f32 %v3877_v0, %v5079_v42  ;;  %v1386_v25 = vmul.f32 1.442695, %v954_v31 }
 0x15e   : > { %7426 = vst [vmem:[#allocation142_spill] sm:$0xff] %v5355_v22  ;;  %v5363_v9 = vpop.eup %3236  ;;  %3256 = vpow2.f32 %v1382_v11  ;;  %v5366_v30 = vpop.xlane.xlu1 %720  ;;  %v955_v43 = vsub.f32 %v3876_v3, %v5079_v42  ;;  %v1811_v17 = vadd.f32 %v5229_v2, %v1810_v37  ;;  %v1394_v11 = vmul.f32 1.442695, %v958_v5  ;;  %v3878_v3 = vld [vmem:[%s4236_s29 + $0x4c8] sm:$0xff] }
 0x15f   : > { %7427 = vst [vmem:[#allocation143_spill] sm:$0xff] %v5363_v9  ;;  %v5368_v63 = vpop.eup %3238  ;;  %3258 = vpow2.f32 %v1384_v57  ;;  %1816 = vadd.xlane.f32.xlu1 %v1815_v20  ;;  %v963_v37 = vsub.f32 %v3878_v3, %v5097_v16  ;;  %v965_v42 = vsub.f32 %v3880_v14, %v5097_v16  ;;  %v1822_v20 = vadd.f32 %v5238_v39, %v5235_v55 }
 0x160   : > { %7428 = vst [vmem:[#allocation144_spill] sm:$0xff] %v5368_v63  ;;  %v5373_v60 = vpop.xlane.xlu0 %716  ;;  %v5375_v13 = vpop.eup %3240  ;;  %3260 = vpow2.f32 %v1374_v28  ;;  %1812 = vadd.xlane.f32.xlu0 %v1811_v17  ;;  %v3879_v28 = vld [vmem:[%s4236_s29 + $0x4d0] sm:$0xff]  ;;  %v1388_v50 = vmul.f32 1.442695, %v955_v43  ;;  %v1818_v17 = vadd.f32 %v5257_v15, %v5251_v10  ;;  %v1390_v14 = vmul.f32 1.442695, %v956_v33 }
 0x161   : > { %7429 = vst [vmem:[#allocation145_spill] sm:$0xff] %v5375_v13  ;;  %v5379_v57 = vpop.eup %3242  ;;  %3262 = vpow2.f32 %v1376_v41  ;;  %v964_v5 = vsub.f32 %v3879_v28, %v5097_v16  ;;  %v3881_v16 = vld [vmem:[%s4236_s29 + $0x4b0] sm:$0xff]  ;;  %v1823_v28 = vadd.f32 %v5245_v38, %v1822_v20  ;;  %v3882_v43 = vld [vmem:[%s4236_s29 + $0x4b8] sm:$0xff]  ;;  %v1408_v33 = vmul.f32 1.442695, %v965_v42  ;;  %v3885_v38 = vld [vmem:[%s4236_s29 + $0x500] sm:$0xff] }
 0x162   : > { %7430 = vst [vmem:[#allocation146_spill] sm:$0xff] %v5379_v57  ;;  %v5383_v2 = vpop.eup %3244  ;;  %3264 = vpow2.f32 %v1378_v34  ;;  %v5391_v41 = vpop.xlane.xlu1 %728  ;;  %v960_v3 = vsub.f32 %v3881_v16, %v5103_v8  ;;  %v961_v15 = vsub.f32 %v3882_v43, %v5103_v8  ;;  %v1819_v10 = vadd.f32 %v5265_v6, %v1818_v17  ;;  %v3886_v42 = vld [vmem:[%s4236_s29 + $0x508] sm:$0xff] }
 0x163   : > { %7431 = vst [vmem:[#allocation147_spill] sm:$0xff] %v5383_v2  ;;  %v5393_v31 = vpop.eup %3246  ;;  %3266 = vpow2.f32 %v1392_v51  ;;  %v1404_v51 = vmul.f32 1.442695, %v963_v37  ;;  %v962_v20 = vsub.f32 %v3883_v27, %v5103_v8  ;;  %1824 = vadd.xlane.f32.xlu1 %v1823_v28  ;;  %v3884_v37 = vld [vmem:[%s4236_s29 + $0x4f8] sm:$0xff]  ;;  %v970_v17 = vsub.f32 %v3885_v38, %v5119_v4 }
 0x164   : > { %7432 = vst [vmem:[#allocation148_spill] sm:$0xff] %v5393_v31  ;;  %v5397_v34 = vpop.xlane.xlu0 %724  ;;  %v5399_v0 = vpop.eup %3248  ;;  %3268 = vpow2.f32 %v1394_v11  ;;  %v1406_v11 = vmul.f32 1.442695, %v964_v5  ;;  %v969_v43 = vsub.f32 %v3884_v37, %v5119_v4  ;;  %1820 = vadd.xlane.f32.xlu0 %v1819_v10  ;;  %v1398_v27 = vmul.f32 1.442695, %v960_v3 }
 0x165   : > { %7433 = vst [vmem:[#allocation149_spill] sm:$0xff] %v5399_v0  ;;  %v5404_v39 = vpop.eup %3250  ;;  %3270 = vpow2.f32 %v1396_v49  ;;  %v1826_v28 = vadd.f32 %v5295_v23, %v5285_v26  ;;  %v1400_v38 = vmul.f32 1.442695, %v961_v15  ;;  %v1418_v15 = vmul.f32 1.442695, %v970_v17  ;;  %v3890_v17 = vld [vmem:[%s4236_s29 + $0x528] sm:$0xff] }
 0x166   : > { %7434 = vst [vmem:[#allocation150_spill] sm:$0xff] %v5404_v39  ;;  %v5409_v55 = vpop.eup %3252  ;;  %3272 = vpow2.f32 %v1386_v25  ;;  %v5413_v16 = vpop.xlane.xlu1 %736  ;;  %v1830_v25 = vadd.f32 %v5277_v45, %v5270_v56  ;;  %v1402_v56 = vmul.f32 1.442695, %v962_v20 }
 0x167   : > { %7435 = vst [vmem:[#allocation151_spill] sm:$0xff] %v5409_v55  ;;  %v5415_v49 = vpop.eup %3254  ;;  %3274 = vpow2.f32 %v1388_v50  ;;  %v971_v50 = vsub.f32 %v3886_v42, %v5119_v4  ;;  %v1827_v4 = vadd.f32 %v5301_v52, %v1826_v28  ;;  %v3889_v28 = vld [vmem:[%s4236_s29 + $0x4f0] sm:$0xff] }
 0x168   : > { %7436 = vst [vmem:[#allocation152_spill] sm:$0xff] %v5415_v49  ;;  %v5423_v5 = vpop.xlane.xlu0 %732  ;;  %v5425_v8 = vpop.eup %3256  ;;  %3276 = vpow2.f32 %v1390_v14  ;;  %v1831_v10 = vadd.f32 %v5281_v7, %v1830_v25  ;;  %v3887_v14 = vld [vmem:[%s4236_s29 + $0x4e0] sm:$0xff]  ;;  %v3888_v25 = vld [vmem:[%s4236_s29 + $0x4e8] sm:$0xff]  ;;  %v968_v52 = vsub.f32 %v3889_v28, %v5129_v47 }
 0x169   : > { %7437 = vst [vmem:[#allocation153_spill] sm:$0xff] %v5425_v8  ;;  %v5431_v37 = vpop.eup %3258  ;;  %3278 = vpow2.f32 %v1404_v51  ;;  %v966_v3 = vsub.f32 %v3887_v14, %v5129_v47  ;;  %v1416_v51 = vmul.f32 1.442695, %v969_v43  ;;  %v967_v26 = vsub.f32 %v3888_v25, %v5129_v47  ;;  %1828 = vadd.xlane.f32.xlu0 %v1827_v4  ;;  %v3891_v25 = vld [vmem:[%s4236_s29 + $0x530] sm:$0xff] }
 0x16a   : > { %7438 = vst [vmem:[#allocation154_spill] sm:$0xff] %v5431_v37  ;;  %v5434_v45 = vpop.eup %3260  ;;  %3280 = vpow2.f32 %v1406_v11  ;;  %v5439_v42 = vpop.xlane.xlu1 %744  ;;  %1832 = vadd.xlane.f32.xlu1 %v1831_v10  ;;  %v1420_v14 = vmul.f32 1.442695, %v971_v50  ;;  %v975_v10 = vsub.f32 %v3890_v17, %v5145_v40  ;;  %v976_v7 = vsub.f32 %v3891_v25, %v5145_v40  ;;  %v3892_v17 = vld [vmem:[%s4236_s29 + $0x538] sm:$0xff] }
 0x16b   : > { %7439 = vst [vmem:[#allocation155_spill] sm:$0xff] %v5434_v45  ;;  %v5441_v23 = vpop.eup %3262  ;;  %3282 = vpow2.f32 %v1408_v33  ;;  %v1838_v33 = vadd.f32 %v5311_v21, %v5306_v24  ;;  %v1410_v47 = vmul.f32 1.442695, %v966_v3  ;;  %v977_v25 = vsub.f32 %v3892_v17, %v5145_v40  ;;  %v3893_v3 = vld [vmem:[%s4236_s29 + $0x510] sm:$0xff]  ;;  %v3894_v40 = vld [vmem:[%s4236_s29 + $0x518] sm:$0xff] }
 0x16c   : > { %7440 = vst [vmem:[#allocation156_spill] sm:$0xff] %v5441_v23  ;;  %v5445_v11 = vpop.xlane.xlu0 %740  ;;  %v5447_v20 = vpop.eup %3264  ;;  %3284 = vpow2.f32 %v1398_v27  ;;  %v1834_v27 = vadd.f32 %v5333_v18, %v5327_v1 }
 0x16d   : > { %7441 = vst [vmem:[#allocation157_spill] sm:$0xff] %v5447_v20  ;;  %v5453_v43 = vpop.eup %3266  ;;  %3286 = vpow2.f32 %v1400_v38  ;;  %v1839_v4 = vadd.f32 %v5317_v62, %v1838_v33  ;;  %v1412_v38 = vmul.f32 1.442695, %v967_v26  ;;  %v972_v33 = vsub.f32 %v3893_v3, %v5151_v35 }
 0x16e   : > { %7442 = vst [vmem:[#allocation158_spill] sm:$0xff] %v5453_v43  ;;  %v5461_v50 = vpop.eup %3268  ;;  %3288 = vpow2.f32 %v1402_v56  ;;  %v5464_v28 = vpop.xlane.xlu1 %752  ;;  %v1835_v24 = vadd.f32 %v5336_v59, %v1834_v27  ;;  %v1414_v56 = vmul.f32 1.442695, %v968_v52  ;;  %v1428_v26 = vmul.f32 1.442695, %v975_v10  ;;  %v3896_v59 = vld [vmem:[%s4236_s29 + $0x558] sm:$0xff] }
 0x16f   : > { %7443 = vst [vmem:[#allocation159_spill] sm:$0xff] %v5461_v50  ;;  %v5466_v21 = vpop.eup %3270  ;;  %3290 = vpow2.f32 %v1416_v51  ;;  %1840 = vadd.xlane.f32.xlu1 %v1839_v4  ;;  %v1430_v62 = vmul.f32 1.442695, %v976_v7  ;;  %v973_v27 = vsub.f32 %v3894_v40, %v5151_v35  ;;  %v981_v3 = vsub.f32 %v3896_v59, %v5170_v44  ;;  %v3897_v59 = vld [vmem:[%s4236_s29 + $0x560] sm:$0xff] }
 0x170   : > { %7444 = vst [vmem:[#allocation160_spill] sm:$0xff] %v5466_v21  ;;  %v5471_v18 = vpop.xlane.xlu0 %748  ;;  %v5473_v1 = vpop.eup %3272  ;;  %3292 = vpow2.f32 %v1418_v15  ;;  %1836 = vadd.xlane.f32.xlu0 %v1835_v24  ;;  %v3895_v15 = vld [vmem:[%s4236_s29 + $0x520] sm:$0xff]  ;;  %v1846_v4 = vadd.f32 %v5349_v12, %v5343_v46  ;;  %v1432_v24 = vmul.f32 1.442695, %v977_v25  ;;  %v1842_v10 = vadd.f32 %v5368_v63, %v5363_v9  ;;  %v3898_v25 = vld [vmem:[%s4236_s29 + $0x568] sm:$0xff] }
 0x171   : > { %7445 = vst [vmem:[#allocation161_spill] sm:$0xff] %v5473_v1  ;;  %v5477_v51 = vpop.eup %3274  ;;  %3294 = vpow2.f32 %v1420_v14  ;;  %v974_v52 = vsub.f32 %v3895_v15, %v5151_v35  ;;  %v1422_v35 = vmul.f32 1.442695, %v972_v33  ;;  %v982_v15 = vsub.f32 %v3897_v59, %v5170_v44 }
 0x172   : > { %7446 = vst [vmem:[#allocation162_spill] sm:$0xff] %v5477_v51  ;;  %v5481_v17 = vpop.eup %3276  ;;  %3296 = vpow2.f32 %v1410_v47  ;;  %v5489_v14 = vpop.xlane.xlu1 %760  ;;  %v1847_v12 = vadd.f32 %v5355_v22, %v1846_v4  ;;  %v983_v63 = vsub.f32 %v3898_v25, %v5170_v44  ;;  %v1843_v9 = vadd.f32 %v5375_v13, %v1842_v10  ;;  %v3901_v25 = vld [vmem:[%s4236_s29 + $0x550] sm:$0xff] }
 0x173   : > { %7447 = vst [vmem:[#allocation163_spill] sm:$0xff] %v5481_v17  ;;  %v5491_v7 = vpop.eup %3278  ;;  %3298 = vpow2.f32 %v1412_v38  ;;  %v1424_v38 = vmul.f32 1.442695, %v973_v27  ;;  %v1440_v33 = vmul.f32 1.442695, %v981_v3  ;;  %v3900_v27 = vld [vmem:[%s4236_s29 + $0x548] sm:$0xff]  ;;  %v980_v10 = vsub.f32 %v3901_v25, %v5177_v19 }
 0x174   : > { %7448 = vst [vmem:[#allocation164_spill] sm:$0xff] %v5491_v7  ;;  %v5495_v47 = vpop.xlane.xlu0 %756  ;;  %v5497_v40 = vpop.eup %3280  ;;  %3300 = vpow2.f32 %v1414_v56  ;;  %v1426_v56 = vmul.f32 1.442695, %v974_v52  ;;  %1848 = vadd.xlane.f32.xlu1 %v1847_v12  ;;  %v979_v44 = vsub.f32 %v3900_v27, %v5177_v19  ;;  %1844 = vadd.xlane.f32.xlu0 %v1843_v9  ;;  %v1442_v12 = vmul.f32 1.442695, %v982_v15  ;;  %v7455_v13 = vld [vmem:[#allocation74_spill] sm:$0xff] }
 0x175   : > { %7449 = vst [vmem:[#allocation165_spill] sm:$0xff] %v5495_v47  ;;  %7450 = vst [vmem:[#allocation166_spill] sm:$0xff] %v5497_v40  ;;  %v5502_v46 = vpop.eup %3282  ;;  %3302 = vpow2.f32 %v1428_v26  ;;  %v3899_v47 = vld [vmem:[%s4236_s29 + $0x540] sm:$0xff]  ;;  %v1850_v27 = vadd.f32 %v5404_v39, %v5399_v0 }
 0x176   : > { %7451 = vst [vmem:[#allocation167_spill] sm:$0xff] %v5502_v46  ;;  %v5507_v6 = vpop.eup %3284  ;;  %3304 = vpow2.f32 %v1430_v62  ;;  %v978_v4 = vsub.f32 %v3899_v47, %v5177_v19  ;;  %v5511_v59 = vpop.xlane.xlu1 %768  ;;  %v1854_v62 = vadd.f32 %v5383_v2, %v5379_v57  ;;  %v3902_v47 = vld [vmem:[%s4236_s29 + $0x588] sm:$0xff]  ;;  %v1444_v19 = vmul.f32 1.442695, %v983_v63 }
 0x177   : > { %7452 = vst [vmem:[#allocation168_spill] sm:$0xff] %v5507_v6  ;;  %v5513_v26 = vpop.eup %3286  ;;  %3306 = vpow2.f32 %v1432_v24  ;;  %v987_v24 = vsub.f32 %v3902_v47, %v7455_v13  ;;  %v1851_v47 = vadd.f32 %v5409_v55, %v1850_v27  ;;  %v1438_v63 = vmul.f32 1.442695, %v980_v10  ;;  %v3905_v27 = vld [vmem:[%s4236_s29 + $0x570] sm:$0xff]  ;;  %v7461_v55 = vld [vmem:[#allocation115_spill] sm:$0xff] }
 0x178   : > { %7453 = vst [vmem:[#allocation169_spill] sm:$0xff] %v5513_v26  ;;  %v5521_v52 = vpop.xlane.xlu0 %764  ;;  %v5523_v3 = vpop.eup %3288  ;;  %3308 = vpow2.f32 %v1422_v35  ;;  %v1855_v9 = vadd.f32 %v5393_v31, %v1854_v62  ;;  %v1434_v2 = vmul.f32 1.442695, %v978_v4  ;;  %v3903_v35 = vld [vmem:[%s4236_s29 + $0x590] sm:$0xff]  ;;  %v3904_v62 = vld [vmem:[%s4236_s29 + $0x598] sm:$0xff]  ;;  %v984_v31 = vsub.f32 %v3905_v27, %v7461_v55 }
 0x179   : > { %7454 = vst [vmem:[#allocation170_spill] sm:$0xff] %v5523_v3  ;;  %v5529_v22 = vpop.eup %3290  ;;  %3310 = vpow2.f32 %v1424_v38  ;;  %v988_v15 = vsub.f32 %v3903_v35, %v7455_v13  ;;  %v1436_v38 = vmul.f32 1.442695, %v979_v44  ;;  %v989_v0 = vsub.f32 %v3904_v62, %v7455_v13  ;;  %1852 = vadd.xlane.f32.xlu0 %v1851_v47  ;;  %v3906_v10 = vld [vmem:[%s4236_s29 + $0x578] sm:$0xff] }
 0x17a   : > { %7456 = vst [vmem:[#allocation74_spill] sm:$0xff] %v5529_v22  ;;  %v5532_v25 = vpop.eup %3292  ;;  %3312 = vpow2.f32 %v1426_v56  ;;  %v5537_v57 = vpop.xlane.xlu1 %776  ;;  %1856 = vadd.xlane.f32.xlu1 %v1855_v9  ;;  %v1452_v35 = vmul.f32 1.442695, %v987_v24  ;;  %v985_v13 = vsub.f32 %v3906_v10, %v7461_v55  ;;  %v3907_v9 = vld [vmem:[%s4236_s29 + $0x580] sm:$0xff]  ;;  %v3908_v10 = vld [vmem:[%s4236_s29 + $0x5b8] sm:$0xff] }
 0x17b   : > { %7457 = vst [vmem:[#allocation171_spill] sm:$0xff] %v5532_v25  ;;  %v5539_v39 = vpop.eup %3294  ;;  %3314 = vpow2.f32 %v1440_v33  ;;  %v1862_v33 = vadd.f32 %v5425_v8, %v5415_v49  ;;  %v986_v62 = vsub.f32 %v3907_v9, %v7461_v55  ;;  %v1454_v47 = vmul.f32 1.442695, %v988_v15  ;;  %v3909_v15 = vld [vmem:[%s4236_s29 + $0x5c0] sm:$0xff] }
 0x17c   : > { %7458 = vst [vmem:[#allocation172_spill] sm:$0xff] %v5539_v39  ;;  %v5543_v56 = vpop.xlane.xlu0 %772  ;;  %v5545_v4 = vpop.eup %3296  ;;  %3316 = vpow2.f32 %v1442_v12  ;;  %v1858_v12 = vadd.f32 %v5441_v23, %v5434_v45 }
 0x17d   : > { %7459 = vst [vmem:[#allocation173_spill] sm:$0xff] %v5543_v56  ;;  %7460 = vst [vmem:[#allocation174_spill] sm:$0xff] %v5545_v4  ;;  %v5551_v44 = vpop.eup %3298  ;;  %3318 = vpow2.f32 %v1444_v19  ;;  %v1863_v27 = vadd.f32 %v5431_v37, %v1862_v33  ;;  %v1456_v19 = vmul.f32 1.442695, %v989_v0  ;;  %v7465_v56 = vld [vmem:[#allocation76_spill] sm:$0xff] }
 0x17e   : > { %7462 = vst [vmem:[#allocation115_spill] sm:$0xff] %v5551_v44  ;;  %v5559_v24 = vpop.eup %3300  ;;  %3320 = vpow2.f32 %v1434_v2  ;;  %v5562_v8 = vpop.xlane.xlu1 %784  ;;  %v993_v55 = vsub.f32 %v3908_v10, %v7465_v56  ;;  %v1859_v9 = vadd.f32 %v5447_v20, %v1858_v12  ;;  %v1446_v2 = vmul.f32 1.442695, %v984_v31  ;;  %v3910_v10 = vld [vmem:[%s4236_s29 + $0x5c8] sm:$0xff] }
 0x17f   : > { %7463 = vst [vmem:[#allocation175_spill] sm:$0xff] %v5559_v24  ;;  %v5564_v49 = vpop.eup %3302  ;;  %3322 = vpow2.f32 %v1436_v38  ;;  %v994_v33 = vsub.f32 %v3909_v15, %v7465_v56  ;;  %1864 = vadd.xlane.f32.xlu1 %v1863_v27  ;;  %v1448_v0 = vmul.f32 1.442695, %v985_v13  ;;  %v1450_v37 = vmul.f32 1.442695, %v986_v62 }
 0x180   : > { %7464 = vst [vmem:[#allocation176_spill] sm:$0xff] %v5564_v49  ;;  %v5569_v23 = vpop.xlane.xlu0 %780  ;;  %v5571_v45 = vpop.eup %3304  ;;  %3324 = vpow2.f32 %v1438_v63  ;;  %v995_v12 = vsub.f32 %v3910_v10, %v7465_v56  ;;  %1860 = vadd.xlane.f32.xlu0 %v1859_v9  ;;  %v3911_v63 = vld [vmem:[%s4236_s29 + $0x5a0] sm:$0xff]  ;;  %v1870_v27 = vadd.f32 %v5461_v50, %v5453_v43  ;;  %v1464_v56 = vmul.f32 1.442695, %v993_v55  ;;  %v3913_v10 = vld [vmem:[%s4236_s29 + $0x5b0] sm:$0xff]  ;;  %v3914_v55 = vld [vmem:[%s4236_s29 + $0x5e8] sm:$0xff] }
 0x181   : > { %7466 = vst [vmem:[#allocation76_spill] sm:$0xff] %v5569_v23  ;;  %7467 = vst [vmem:[#allocation177_spill] sm:$0xff] %v5571_v45  ;;  %v5575_v38 = vpop.eup %3306  ;;  %3326 = vpow2.f32 %v1452_v35  ;;  %v990_v31 = vsub.f32 %v3911_v63, %v5227_v29  ;;  %v3912_v23 = vld [vmem:[%s4236_s29 + $0x5a8] sm:$0xff]  ;;  %v1866_v62 = vadd.f32 %v5477_v51, %v5473_v1  ;;  %v992_v63 = vsub.f32 %v3913_v10, %v5227_v29 }
 0x182   : > { %7468 = vst [vmem:[#allocation178_spill] sm:$0xff] %v5575_v38  ;;  %v5579_v20 = vpop.eup %3308  ;;  %3328 = vpow2.f32 %v1454_v47  ;;  %v991_v15 = vsub.f32 %v3912_v23, %v5227_v29  ;;  %v5587_v35 = vpop.xlane.xlu1 %792  ;;  %v1466_v23 = vmul.f32 1.442695, %v994_v33  ;;  %v1871_v50 = vadd.f32 %v5466_v21, %v1870_v27  ;;  %v3915_v29 = vld [vmem:[%s4236_s29 + $0x5f0] sm:$0xff] }
 0x183   : > { %7469 = vst [vmem:[#allocation179_spill] sm:$0xff] %v5579_v20  ;;  %v5589_v13 = vpop.eup %3310  ;;  %3330 = vpow2.f32 %v1456_v19  ;;  %v1468_v19 = vmul.f32 1.442695, %v995_v12  ;;  %v999_v51 = vsub.f32 %v3914_v55, %v5243_v48  ;;  %v1867_v1 = vadd.f32 %v5481_v17, %v1866_v62  ;;  %v3917_v21 = vld [vmem:[%s4236_s29 + $0x5d0] sm:$0xff]  ;;  %v3918_v62 = vld [vmem:[%s4236_s29 + $0x5d8] sm:$0xff] }
 0x184   : > { %7470 = vst [vmem:[#allocation180_spill] sm:$0xff] %v5589_v13  ;;  %v5593_v47 = vpop.xlane.xlu0 %788  ;;  %v5595_v9 = vpop.eup %3312  ;;  %3332 = vpow2.f32 %v1446_v2  ;;  %v1458_v2 = vmul.f32 1.442695, %v990_v31  ;;  %v1460_v33 = vmul.f32 1.442695, %v991_v15  ;;  %v1000_v27 = vsub.f32 %v3915_v29, %v5243_v48  ;;  %1872 = vadd.xlane.f32.xlu1 %v1871_v50  ;;  %v7485_v17 = vld [vmem:[#allocation130_spill] sm:$0xff] }
 0x185   : > { %7471 = vst [vmem:[#allocation181_spill] sm:$0xff] %v5593_v47  ;;  %v5600_v43 = vpop.eup %3314  ;;  %3334 = vpow2.f32 %v1448_v0  ;;  %v3916_v0 = vld [vmem:[%s4236_s29 + $0x5f8] sm:$0xff]  ;;  %v996_v55 = vsub.f32 %v3917_v21, %v5249_v61  ;;  %1868 = vadd.xlane.f32.xlu0 %v1867_v1  ;;  %v1462_v15 = vmul.f32 1.442695, %v992_v63  ;;  %v997_v50 = vsub.f32 %v3918_v62, %v5249_v61  ;;  %v3919_v63 = vld [vmem:[%s4236_s29 + $0x5e0] sm:$0xff] }
 0x186   : > { %v5605_v47 = vpop.eup %3316  ;;  %3336 = vpow2.f32 %v1450_v37  ;;  %v1001_v12 = vsub.f32 %v3916_v0, %v5243_v48  ;;  %v1878_v37 = vadd.f32 %v5497_v40, %v5491_v7  ;;  %v5623_v29 = vpop.xlane.xlu1 %800  ;;  %v1476_v1 = vmul.f32 1.442695, %v999_v51  ;;  %v3920_v51 = vld [vmem:[%s4236_s29 + $0x618] sm:$0xff] }
 0x187   : > { %7472 = vst [vmem:[#allocation182_spill] sm:$0xff] %v5605_v47  ;;  %v5609_v10 = vpop.eup %3318  ;;  %3338 = vpow2.f32 %v1464_v56  ;;  %v1874_v56 = vadd.f32 %v5513_v26, %v5507_v6  ;;  %v998_v62 = vsub.f32 %v3919_v63, %v5249_v61 }
 0x188   : > { %7473 = vst [vmem:[#allocation183_spill] sm:$0xff] %v5609_v10  ;;  %v5617_v31 = vpop.eup %3320  ;;  %3340 = vpow2.f32 %v1466_v23  ;;  %v5625_v48 = vpop.xlane.xlu0 %796  ;;  %v1879_v0 = vadd.f32 %v5502_v46, %v1878_v37  ;;  %v1478_v23 = vmul.f32 1.442695, %v1000_v27  ;;  %v1480_v7 = vmul.f32 1.442695, %v1001_v12  ;;  %v3921_v27 = vld [vmem:[%s4236_s29 + $0x620] sm:$0xff] }
 0x189   : > { %7474 = vst [vmem:[#allocation184_spill] sm:$0xff] %v5617_v31  ;;  %v5627_v21 = vpop.eup %3322  ;;  %3342 = vpow2.f32 %v1468_v19  ;;  %v1875_v26 = vadd.f32 %v5523_v3, %v1874_v56  ;;  %v1470_v19 = vmul.f32 1.442695, %v996_v55  ;;  %v1005_v37 = vsub.f32 %v3920_v51, %v5268_v32  ;;  %v3923_v55 = vld [vmem:[%s4236_s29 + $0x600] sm:$0xff]  ;;  %v3926_v3 = vld [vmem:[%s4236_s29 + $0x648] sm:$0xff] }
 0x18a   : > { %7475 = vst [vmem:[#allocation185_spill] sm:$0xff] %v5627_v21  ;;  %v5630_v40 = vpop.eup %3324  ;;  %3344 = vpow2.f32 %v1458_v2  ;;  %1880 = vadd.xlane.f32.xlu1 %v1879_v0  ;;  %v1472_v2 = vmul.f32 1.442695, %v997_v50  ;;  %v1006_v61 = vsub.f32 %v3921_v27, %v5268_v32  ;;  %v1886_v56 = vadd.f32 %v5532_v25, %v5529_v22  ;;  %v7480_v0 = vld [vmem:[#allocation126_spill] sm:$0xff]  ;;  %v5656_v25 = vpop.xlane.xlu1 %808 }
 0x18b   : > { %7476 = vst [vmem:[#allocation186_spill] sm:$0xff] %v5630_v40  ;;  %v5635_v6 = vpop.eup %3326  ;;  %3346 = vpow2.f32 %v1460_v33  ;;  %1876 = vadd.xlane.f32.xlu0 %v1875_v26  ;;  %v3922_v33 = vld [vmem:[%s4236_s29 + $0x628] sm:$0xff]  ;;  %v1002_v51 = vsub.f32 %v3923_v55, %v7480_v0  ;;  %v1474_v26 = vmul.f32 1.442695, %v998_v62  ;;  %v3925_v62 = vld [vmem:[%s4236_s29 + $0x610] sm:$0xff] }
 0x18c   : > { %7477 = vst [vmem:[#allocation187_spill] sm:$0xff] %v5635_v6  ;;  %v5639_v46 = vpop.eup %3328  ;;  %3348 = vpow2.f32 %v1462_v15  ;;  %v1007_v12 = vsub.f32 %v3922_v33, %v5268_v32  ;;  %v1882_v15 = vadd.f32 %v5551_v44, %v5545_v4  ;;  %v1887_v27 = vadd.f32 %v5539_v39, %v1886_v56  ;;  %v5658_v22 = vpop.xlane.xlu0 %804  ;;  %v3924_v33 = vld [vmem:[%s4236_s29 + $0x608] sm:$0xff] }
 0x18d   : > { %7478 = vst [vmem:[#allocation188_spill] sm:$0xff] %v5639_v46  ;;  %v5645_v63 = vpop.eup %3330  ;;  %3350 = vpow2.f32 %v1476_v1  ;;  %v1488_v32 = vmul.f32 1.442695, %v1005_v37  ;;  %v1003_v55 = vsub.f32 %v3924_v33, %v7480_v0  ;;  %v1004_v56 = vsub.f32 %v3925_v62, %v7480_v0  ;;  %v7489_v62 = vld [vmem:[#allocation132_spill] sm:$0xff] }
 0x18e   : > { %7479 = vst [vmem:[#allocation189_spill] sm:$0xff] %v5645_v63  ;;  %v5653_v50 = vpop.eup %3332  ;;  %3352 = vpow2.f32 %v1478_v23  ;;  %v1883_v44 = vadd.f32 %v5559_v24, %v1882_v15  ;;  %v1490_v23 = vmul.f32 1.442695, %v1006_v61  ;;  %1888 = vadd.xlane.f32.xlu1 %v1887_v27  ;;  %v1482_v37 = vmul.f32 1.442695, %v1002_v51  ;;  %v3928_v24 = vld [vmem:[%s4236_s29 + $0x658] sm:$0xff] }
 0x18f   : > { %7481 = vst [vmem:[#allocation126_spill] sm:$0xff] %v5653_v50  ;;  %v5660_v1 = vpop.eup %3334  ;;  %3354 = vpow2.f32 %v1480_v7  ;;  %v1492_v7 = vmul.f32 1.442695, %v1007_v12  ;;  %v1011_v33 = vsub.f32 %v3926_v3, %v7485_v17  ;;  %v1013_v0 = vsub.f32 %v3928_v24, %v7485_v17 }
 0x190   : > { %7482 = vst [vmem:[#allocation190_spill] sm:$0xff] %v5660_v1  ;;  %v5665_v4 = vpop.eup %3336  ;;  %3356 = vpow2.f32 %v1470_v19  ;;  %1884 = vadd.xlane.f32.xlu0 %v1883_v44  ;;  %v3927_v19 = vld [vmem:[%s4236_s29 + $0x650] sm:$0xff]  ;;  %v1894_v27 = vadd.f32 %v5571_v45, %v5564_v49  ;;  %v1484_v12 = vmul.f32 1.442695, %v1003_v55  ;;  %v1890_v3 = vadd.f32 %v5589_v13, %v5579_v20  ;;  %v5692_v45 = vpop.xlane.xlu0 %1676  ;;  %v3930_v13 = vld [vmem:[%s4236_s29 + $0x638] sm:$0xff] }
 0x191   : > { %7483 = vst [vmem:[#allocation191_spill] sm:$0xff] %v5665_v4  ;;  %v5669_v39 = vpop.eup %3338  ;;  %3358 = vpow2.f32 %v1472_v2  ;;  %v1012_v61 = vsub.f32 %v3927_v19, %v7485_v17  ;;  %v1486_v51 = vmul.f32 1.442695, %v1004_v56  ;;  %7491 = vst [vmem:[#allocation195_spill] sm:$0xff] %v5692_v45  ;;  %v1500_v55 = vmul.f32 1.442695, %v1011_v33 }
 0x192   : > { %7484 = vst [vmem:[#allocation192_spill] sm:$0xff] %v5669_v39  ;;  %v5673_v15 = vpop.eup %3340  ;;  %3360 = vpow2.f32 %v1474_v26  ;;  %v3929_v26 = vld [vmem:[%s4236_s29 + $0x630] sm:$0xff]  ;;  %v1895_v17 = vadd.f32 %v5575_v38, %v1894_v27  ;;  %v1891_v56 = vadd.f32 %v5595_v9, %v1890_v3  ;;  %v1504_v27 = vmul.f32 1.442695, %v1013_v0  ;;  %v3931_v38 = vld [vmem:[%s4236_s29 + $0x640] sm:$0xff] }
 0x193   : > { %7486 = vst [vmem:[#allocation130_spill] sm:$0xff] %v5673_v15  ;;  %v5681_v2 = vpop.eup %3342  ;;  %3362 = vpow2.f32 %v1488_v32  ;;  %v1008_v19 = vsub.f32 %v3929_v26, %v7489_v62  ;;  %v5690_v24 = vpop.xlane.xlu1 %1680  ;;  %v1502_v26 = vmul.f32 1.442695, %v1012_v61  ;;  %v1010_v49 = vsub.f32 %v3931_v38, %v7489_v62  ;;  %v3934_v38 = vld [vmem:[%s4236_s29 + $0x688] sm:$0xff] }
 0x194   : > { %7487 = vst [vmem:[#allocation193_spill] sm:$0xff] %v5681_v2  ;;  %v5685_v44 = vpop.eup %3344  ;;  %3364 = vpow2.f32 %v1490_v23  ;;  %7490 = vst [vmem:[#allocation132_spill] sm:$0xff] %v5690_v24  ;;  %v1009_v23 = vsub.f32 %v3930_v13, %v7489_v62  ;;  %1896 = vadd.xlane.f32.xlu1 %v1895_v17  ;;  %v3933_v24 = vld [vmem:[%s4236_s29 + $0x680] sm:$0xff]  ;;  %1892 = vadd.xlane.f32.xlu0 %v1891_v56  ;;  %v1019_v3 = vsub.f32 %v3934_v38, %v5315_v54 }
 0x195   : > { %7488 = vst [vmem:[#allocation194_spill] sm:$0xff] %v5685_v44  ;;  %v5694_v32 = vpop.eup %3346  ;;  %3366 = vpow2.f32 %v1492_v7  ;;  %v3932_v7 = vld [vmem:[%s4236_s29 + $0x678] sm:$0xff]  ;;  %v1018_v13 = vsub.f32 %v3933_v24, %v5315_v54  ;;  %v1494_v0 = vmul.f32 1.442695, %v1008_v19 }
 0x196   : > { %7492 = vst [vmem:[#allocation196_spill] sm:$0xff] %v5694_v32  ;;  %v5699_v20 = vpop.eup %3348  ;;  %3368 = vpow2.f32 %v1482_v37  ;;  %v1017_v33 = vsub.f32 %v3932_v7, %v5315_v54  ;;  %v1902_v37 = vadd.f32 %v5605_v47, %v5600_v43  ;;  %v1496_v24 = vmul.f32 1.442695, %v1009_v23  ;;  %v3935_v54 = vld [vmem:[%s4236_s29 + $0x660] sm:$0xff] }
 0x197   : > { %7493 = vst [vmem:[#allocation197_spill] sm:$0xff] %v5699_v20  ;;  %v5703_v45 = vpop.eup %3350  ;;  %3370 = vpow2.f32 %v1484_v12  ;;  %v1898_v12 = vadd.f32 %v5627_v21, %v5617_v31  ;;  %v5717_v62 = vpop.xlane.xlu0 %1684  ;;  %v1014_v19 = vsub.f32 %v3935_v54, %v5325_v58  ;;  %v1514_v23 = vmul.f32 1.442695, %v1018_v13  ;;  %v3939_v13 = vld [vmem:[%s4236_s29 + $0x6b0] sm:$0xff] }
 0x198   : > { %7494 = vst [vmem:[#allocation198_spill] sm:$0xff] %v5703_v45  ;;  %v5711_v61 = vpop.eup %3352  ;;  %3372 = vpow2.f32 %v1486_v51  ;;  %v1903_v56 = vadd.f32 %v5609_v10, %v1902_v37  ;;  %v5722_v7 = vpop.xlane.xlu1 %1688  ;;  %v1498_v51 = vmul.f32 1.442695, %v1010_v49  ;;  %v3936_v37 = vld [vmem:[%s4236_s29 + $0x668] sm:$0xff]  ;;  %v1516_v49 = vmul.f32 1.442695, %v1019_v3 }
 0x199   : > { %7495 = vst [vmem:[#allocation199_spill] sm:$0xff] %v5711_v61  ;;  %v5719_v17 = vpop.eup %3354  ;;  %3374 = vpow2.f32 %v1500_v55  ;;  %v1899_v38 = vadd.f32 %v5630_v40, %v1898_v12  ;;  %v1512_v55 = vmul.f32 1.442695, %v1017_v33  ;;  %v1015_v31 = vsub.f32 %v3936_v37, %v5325_v58 }
 0x19a   : > { %7496 = vst [vmem:[#allocation200_spill] sm:$0xff] %v5719_v17  ;;  %v5724_v47 = vpop.eup %3356  ;;  %3376 = vpow2.f32 %v1502_v26  ;;  %1904 = vadd.xlane.f32.xlu1 %v1903_v56  ;;  %v3937_v26 = vld [vmem:[%s4236_s29 + $0x670] sm:$0xff]  ;;  %v1910_v12 = vadd.f32 %v5639_v46, %v5635_v6  ;;  %v1024_v56 = vsub.f32 %v3939_v13, %v5341_v53  ;;  %v3940_v13 = vld [vmem:[%s4236_s29 + $0x6b8] sm:$0xff] }
 0x19b   : > { %7497 = vst [vmem:[#allocation201_spill] sm:$0xff] %v5724_v47  ;;  %v5729_v21 = vpop.eup %3358  ;;  %3378 = vpow2.f32 %v1504_v27  ;;  %v1016_v54 = vsub.f32 %v3937_v26, %v5325_v58  ;;  %1900 = vadd.xlane.f32.xlu0 %v1899_v38  ;;  %v3938_v27 = vld [vmem:[%s4236_s29 + $0x6a8] sm:$0xff]  ;;  %v1506_v38 = vmul.f32 1.442695, %v1014_v19  ;;  %v1025_v46 = vsub.f32 %v3940_v13, %v5341_v53  ;;  %v3941_v19 = vld [vmem:[%s4236_s29 + $0x690] sm:$0xff]  ;;  %v3942_v6 = vld [vmem:[%s4236_s29 + $0x698] sm:$0xff] }
 0x19c   : > { %7498 = vst [vmem:[#allocation202_spill] sm:$0xff] %v5729_v21  ;;  %v5733_v10 = vpop.eup %3360  ;;  %3380 = vpow2.f32 %v1494_v0  ;;  %v1023_v33 = vsub.f32 %v3938_v27, %v5341_v53  ;;  %v1906_v0 = vadd.f32 %v5660_v1, %v5653_v50  ;;  %v5747_v3 = vpop.xlane.xlu1 %1696  ;;  %v1911_v37 = vadd.f32 %v5645_v63, %v1910_v12  ;;  %v3944_v13 = vld [vmem:[%s4236_s29 + $0x6d8] sm:$0xff] }
 0x19d   : > { %v5739_v40 = vpop.eup %3362  ;;  %3382 = vpow2.f32 %v1496_v24  ;;  %v5752_v26 = vpop.xlane.xlu0 %1692  ;;  %v1508_v27 = vmul.f32 1.442695, %v1015_v31  ;;  %v1020_v12 = vsub.f32 %v3941_v19, %v5347_v36  ;;  %v1526_v31 = vmul.f32 1.442695, %v1024_v56 }
 0x19e   : > { %7499 = vst [vmem:[#allocation203_spill] sm:$0xff] %v5739_v40  ;;  %v5749_v58 = vpop.eup %3364  ;;  %3384 = vpow2.f32 %v1498_v51  ;;  %v1907_v1 = vadd.f32 %v5665_v4, %v1906_v0  ;;  %v1510_v51 = vmul.f32 1.442695, %v1016_v54  ;;  %1912 = vadd.xlane.f32.xlu1 %v1911_v37  ;;  %v1021_v53 = vsub.f32 %v3942_v6, %v5347_v36 }
 0x19f   : > { %7500 = vst [vmem:[#allocation204_spill] sm:$0xff] %v5749_v58  ;;  %v5754_v24 = vpop.eup %3366  ;;  %3386 = vpow2.f32 %v1512_v55  ;;  %v1524_v55 = vmul.f32 1.442695, %v1023_v33  ;;  %v1029_v19 = vsub.f32 %v3944_v13, %v5366_v30  ;;  %v1918_v37 = vadd.f32 %v5673_v15, %v5669_v39 }
 0x1a0   : > { %7501 = vst [vmem:[#allocation205_spill] sm:$0xff] %v5754_v24  ;;  %v5759_v50 = vpop.eup %3368  ;;  %3388 = vpow2.f32 %v1514_v23  ;;  %1908 = vadd.xlane.f32.xlu0 %v1907_v1  ;;  %v3943_v23 = vld [vmem:[%s4236_s29 + $0x6a0] sm:$0xff]  ;;  %v1528_v33 = vmul.f32 1.442695, %v1025_v46  ;;  %v1914_v6 = vadd.f32 %v5694_v32, %v5685_v44  ;;  %v1520_v46 = vmul.f32 1.442695, %v1021_v53 }
 0x1a1   : > { %7502 = vst [vmem:[#allocation206_spill] sm:$0xff] %v5759_v50  ;;  %v5763_v63 = vpop.eup %3370  ;;  %3390 = vpow2.f32 %v1516_v49  ;;  %v1022_v54 = vsub.f32 %v3943_v23, %v5347_v36  ;;  %v1518_v36 = vmul.f32 1.442695, %v1020_v12  ;;  %v1919_v13 = vadd.f32 %v5681_v2, %v1918_v37  ;;  %v3946_v32 = vld [vmem:[%s4236_s29 + $0x6e8] sm:$0xff]  ;;  %v3947_v37 = vld [vmem:[%s4236_s29 + $0x6c0] sm:$0xff] }
 0x1a2   : > { %7503 = vst [vmem:[#allocation207_spill] sm:$0xff] %v5763_v63  ;;  %v5767_v0 = vpop.eup %3372  ;;  %3392 = vpow2.f32 %v1506_v38  ;;  %v5779_v1 = vpop.xlane.xlu1 %1704  ;;  %v3945_v38 = vld [vmem:[%s4236_s29 + $0x6e0] sm:$0xff]  ;;  %v1031_v44 = vsub.f32 %v3946_v32, %v5366_v30  ;;  %v1026_v2 = vsub.f32 %v3947_v37, %v5373_v60 }
 0x1a3   : > { %7504 = vst [vmem:[#allocation208_spill] sm:$0xff] %v5767_v0  ;;  %v5775_v49 = vpop.eup %3374  ;;  %3394 = vpow2.f32 %v1508_v27  ;;  %v1030_v23 = vsub.f32 %v3945_v38, %v5366_v30  ;;  %v5786_v15 = vpop.xlane.xlu0 %1700  ;;  %v1522_v12 = vmul.f32 1.442695, %v1022_v54  ;;  %v1536_v38 = vmul.f32 1.442695, %v1029_v19  ;;  %1920 = vadd.xlane.f32.xlu1 %v1919_v13  ;;  %v3949_v30 = vld [vmem:[%s4236_s29 + $0x6d0] sm:$0xff] }
 0x1a4   : > { %7505 = vst [vmem:[#allocation209_spill] sm:$0xff] %v5775_v49  ;;  %v5781_v56 = vpop.eup %3376  ;;  %3396 = vpow2.f32 %v1510_v51  ;;  %v1915_v51 = vadd.f32 %v5699_v20, %v1914_v6  ;;  %v1028_v32 = vsub.f32 %v3949_v30, %v5373_v60  ;;  %v3950_v6 = vld [vmem:[%s4236_s29 + $0x708] sm:$0xff]  ;;  %v3953_v20 = vld [vmem:[%s4236_s29 + $0x6f0] sm:$0xff] }
 0x1a5   : > { %7506 = vst [vmem:[#allocation210_spill] sm:$0xff] %v5781_v56  ;;  %v5788_v27 = vpop.eup %3378  ;;  %3398 = vpow2.f32 %v1524_v55  ;;  %v3948_v55 = vld [vmem:[%s4236_s29 + $0x6c8] sm:$0xff]  ;;  %v1538_v19 = vmul.f32 1.442695, %v1030_v23  ;;  %v1035_v13 = vsub.f32 %v3950_v6, %v5391_v41  ;;  %v1530_v6 = vmul.f32 1.442695, %v1026_v2 }
 0x1a6   : > { %7507 = vst [vmem:[#allocation211_spill] sm:$0xff] %v5788_v27  ;;  %v5793_v39 = vpop.eup %3380  ;;  %3400 = vpow2.f32 %v1526_v31  ;;  %v1027_v53 = vsub.f32 %v3948_v55, %v5373_v60  ;;  %1916 = vadd.xlane.f32.xlu0 %v1915_v51  ;;  %v1926_v31 = vadd.f32 %v5711_v61, %v5703_v45  ;;  %v1540_v60 = vmul.f32 1.442695, %v1031_v44  ;;  %v3951_v51 = vld [vmem:[%s4236_s29 + $0x710] sm:$0xff]  ;;  %v3952_v45 = vld [vmem:[%s4236_s29 + $0x718] sm:$0xff] }
 0x1a7   : > { %7508 = vst [vmem:[#allocation212_spill] sm:$0xff] %v5793_v39  ;;  %v5797_v4 = vpop.eup %3382  ;;  %3402 = vpow2.f32 %v1528_v33  ;;  %v1922_v33 = vadd.f32 %v5729_v21, %v5724_v47  ;;  %v5811_v37 = vpop.xlane.xlu1 %1712  ;;  %v1036_v30 = vsub.f32 %v3951_v51, %v5391_v41  ;;  %v1037_v21 = vsub.f32 %v3952_v45, %v5391_v41 }
 0x1a8   : > { %7509 = vst [vmem:[#allocation213_spill] sm:$0xff] %v5797_v4  ;;  %v5805_v54 = vpop.eup %3384  ;;  %3404 = vpow2.f32 %v1518_v36  ;;  %v1927_v61 = vadd.f32 %v5719_v17, %v1926_v31  ;;  %v5818_v36 = vpop.xlane.xlu0 %1708  ;;  %v1532_v44 = vmul.f32 1.442695, %v1027_v53  ;;  %v1534_v51 = vmul.f32 1.442695, %v1028_v32 }
 0x1a9   : > { %7510 = vst [vmem:[#allocation214_spill] sm:$0xff] %v5805_v54  ;;  %v5813_v55 = vpop.eup %3386  ;;  %3406 = vpow2.f32 %v1520_v46  ;;  %v1923_v47 = vadd.f32 %v5733_v10, %v1922_v33  ;;  %v1548_v17 = vmul.f32 1.442695, %v1035_v13  ;;  %v1032_v2 = vsub.f32 %v3953_v20, %v5397_v34 }
 0x1aa   : > { %7511 = vst [vmem:[#allocation215_spill] sm:$0xff] %v5813_v55  ;;  %v5820_v23 = vpop.eup %3388  ;;  %3408 = vpow2.f32 %v1522_v12  ;;  %1928 = vadd.xlane.f32.xlu1 %v1927_v61  ;;  %v1934_v45 = vadd.f32 %v5749_v58, %v5739_v40  ;;  %v1550_v12 = vmul.f32 1.442695, %v1036_v30  ;;  %v1930_v53 = vadd.f32 %v5763_v63, %v5759_v50  ;;  %v3957_v50 = vld [vmem:[%s4236_s29 + $0x740] sm:$0xff] }
 0x1ab   : > { %7512 = vst [vmem:[#allocation216_spill] sm:$0xff] %v5820_v23  ;;  %v5825_v46 = vpop.eup %3390  ;;  %3410 = vpow2.f32 %v1536_v38  ;;  %1924 = vadd.xlane.f32.xlu0 %v1923_v47  ;;  %v3954_v38 = vld [vmem:[%s4236_s29 + $0x6f8] sm:$0xff]  ;;  %v1552_v20 = vmul.f32 1.442695, %v1037_v21  ;;  %v3955_v47 = vld [vmem:[%s4236_s29 + $0x700] sm:$0xff]  ;;  %v1042_v58 = vsub.f32 %v3957_v50, %v5413_v16 }
 0x1ac   : > { %7513 = vst [vmem:[#allocation217_spill] sm:$0xff] %v5825_v46  ;;  %v5827_v31 = vpop.eup %3392  ;;  %3412 = vpow2.f32 %v1538_v19  ;;  %v1033_v61 = vsub.f32 %v3954_v38, %v5397_v34  ;;  %v5839_v32 = vpop.xlane.xlu1 %1720  ;;  %v1034_v13 = vsub.f32 %v3955_v47, %v5397_v34  ;;  %v1935_v33 = vadd.f32 %v5754_v24, %v1934_v45  ;;  %v3956_v38 = vld [vmem:[%s4236_s29 + $0x738] sm:$0xff]  ;;  %v3958_v45 = vld [vmem:[%s4236_s29 + $0x748] sm:$0xff]  ;;  %v3959_v40 = vld [vmem:[%s4236_s29 + $0x720] sm:$0xff] }
 0x1ad   : > { %7514 = vst [vmem:[#allocation218_spill] sm:$0xff] %v5827_v31  ;;  %v5833_v41 = vpop.eup %3394  ;;  %3414 = vpow2.f32 %v1540_v60  ;;  %v5846_v60 = vpop.xlane.xlu0 %1716  ;;  %v1041_v63 = vsub.f32 %v3956_v38, %v5413_v16  ;;  %v1542_v34 = vmul.f32 1.442695, %v1032_v2  ;;  %v1043_v47 = vsub.f32 %v3958_v45, %v5413_v16 }
 0x1ae   : > { %7515 = vst [vmem:[#allocation219_spill] sm:$0xff] %v5833_v41  ;;  %v5841_v19 = vpop.eup %3396  ;;  %3416 = vpow2.f32 %v1530_v6  ;;  %v1931_v6 = vadd.f32 %v5767_v0, %v1930_v53  ;;  %1936 = vadd.xlane.f32.xlu1 %v1935_v33  ;;  %v1038_v38 = vsub.f32 %v3959_v40, %v5423_v5  ;;  %v1546_v53 = vmul.f32 1.442695, %v1034_v13  ;;  %v3960_v0 = vld [vmem:[%s4236_s29 + $0x728] sm:$0xff] }
 0x1af   : > { %v5848_v30 = vpop.eup %3398  ;;  %3418 = vpow2.f32 %v1532_v44  ;;  %v1544_v44 = vmul.f32 1.442695, %v1033_v61  ;;  %v1942_v16 = vadd.f32 %v5781_v56, %v5775_v49  ;;  %v1562_v61 = vmul.f32 1.442695, %v1042_v58 }
 0x1b0   : > { %v5855_v21 = vpop.eup %3400  ;;  %3420 = vpow2.f32 %v1534_v51  ;;  %1932 = vadd.xlane.f32.xlu0 %v1931_v6  ;;  %v1039_v51 = vsub.f32 %v3960_v0, %v5423_v5  ;;  %v1938_v40 = vadd.f32 %v5797_v4, %v5793_v39  ;;  %v3961_v0 = vld [vmem:[%s4236_s29 + $0x730] sm:$0xff]  ;;  %v1554_v58 = vmul.f32 1.442695, %v1038_v38 }
 0x1b1   : > { %v5859_v24 = vpop.eup %3402  ;;  %3422 = vpow2.f32 %v1548_v17  ;;  %v1560_v17 = vmul.f32 1.442695, %v1041_v63  ;;  %v5873_v33 = vpop.xlane.xlu1 %1728  ;;  %v1040_v13 = vsub.f32 %v3961_v0, %v5423_v5  ;;  %v1943_v45 = vadd.f32 %v5788_v27, %v1942_v16  ;;  %v3963_v5 = vld [vmem:[%s4236_s29 + $0x770] sm:$0xff]  ;;  %v3964_v0 = vld [vmem:[%s4236_s29 + $0x778] sm:$0xff] }
 0x1b2   : > { %7516 = vst [vmem:[#allocation220_spill] sm:$0xff] %v5859_v24  ;;  %v5863_v50 = vpop.eup %3404  ;;  %3424 = vpow2.f32 %v1550_v12  ;;  %v1564_v12 = vmul.f32 1.442695, %v1043_v47  ;;  %v5880_v56 = vpop.xlane.xlu0 %1724  ;;  %v1556_v39 = vmul.f32 1.442695, %v1039_v51  ;;  %v1048_v16 = vsub.f32 %v3963_v5, %v5439_v42 }
 0x1b3   : > { %7517 = vst [vmem:[#allocation221_spill] sm:$0xff] %v5863_v50  ;;  %v5869_v2 = vpop.eup %3406  ;;  %3426 = vpow2.f32 %v1552_v20  ;;  %v3962_v20 = vld [vmem:[%s4236_s29 + $0x768] sm:$0xff]  ;;  %v1049_v27 = vsub.f32 %v3964_v0, %v5439_v42  ;;  %1944 = vadd.xlane.f32.xlu1 %v1943_v45  ;;  %v1946_v45 = vadd.f32 %v5833_v41, %v5827_v31 }
 0x1b4   : > { %7518 = vst [vmem:[#allocation222_spill] sm:$0xff] %v5869_v2  ;;  %v5875_v6 = vpop.eup %3408  ;;  %3428 = vpow2.f32 %v1542_v34  ;;  %v1047_v4 = vsub.f32 %v3962_v20, %v5439_v42  ;;  %v1939_v34 = vadd.f32 %v5805_v54, %v1938_v40  ;;  %v3966_v20 = vld [vmem:[%s4236_s29 + $0x758] sm:$0xff]  ;;  %v1558_v42 = vmul.f32 1.442695, %v1040_v13 }
 0x1b5   : > { %7519 = vst [vmem:[#allocation223_spill] sm:$0xff] %v5875_v6  ;;  %v5882_v63 = vpop.eup %3410  ;;  %3430 = vpow2.f32 %v1544_v44  ;;  %v3965_v44 = vld [vmem:[%s4236_s29 + $0x750] sm:$0xff]  ;;  %v1045_v40 = vsub.f32 %v3966_v20, %v5445_v11  ;;  %v3968_v13 = vld [vmem:[%s4236_s29 + $0x798] sm:$0xff]  ;;  %v1947_v31 = vadd.f32 %v5841_v19, %v1946_v45  ;;  %v1958_v45 = vadd.f32 %v5855_v21, %v5848_v30 }
 0x1b6   : > { %7520 = vst [vmem:[#allocation224_spill] sm:$0xff] %v5882_v63  ;;  %v5887_v47 = vpop.eup %3412  ;;  %3432 = vpow2.f32 %v1546_v53  ;;  %v1044_v38 = vsub.f32 %v3965_v44, %v5445_v11  ;;  %1940 = vadd.xlane.f32.xlu0 %v1939_v34  ;;  %v1950_v53 = vadd.f32 %v5820_v23, %v5813_v55  ;;  %v1572_v0 = vmul.f32 1.442695, %v1047_v4  ;;  %v3967_v44 = vld [vmem:[%s4236_s29 + $0x760] sm:$0xff] }
 0x1b7   : > { %7521 = vst [vmem:[#allocation225_spill] sm:$0xff] %v5887_v47  ;;  %v5893_v49 = vpop.eup %3414  ;;  %3434 = vpow2.f32 %v1560_v17  ;;  %v5905_v5 = vpop.xlane.xlu1 %1736  ;;  %v1046_v34 = vsub.f32 %v3967_v44, %v5445_v11  ;;  %v1053_v41 = vsub.f32 %v3968_v13, %v5464_v28  ;;  %v1576_v11 = vmul.f32 1.442695, %v1049_v27 }
 0x1b8   : > { %v5901_v51 = vpop.eup %3416  ;;  %3436 = vpow2.f32 %v1562_v61  ;;  %v1951_v20 = vadd.f32 %v5825_v46, %v1950_v53  ;;  %v5912_v23 = vpop.xlane.xlu0 %1732  ;;  %v1574_v61 = vmul.f32 1.442695, %v1048_v16  ;;  %v1566_v4 = vmul.f32 1.442695, %v1044_v38  ;;  %v3969_v46 = vld [vmem:[%s4236_s29 + $0x7a0] sm:$0xff]  ;;  %v3970_v16 = vld [vmem:[%s4236_s29 + $0x7a8] sm:$0xff] }
 0x1b9   : > { %v5907_v17 = vpop.eup %3418  ;;  %3438 = vpow2.f32 %v1564_v12  ;;  %v1568_v53 = vmul.f32 1.442695, %v1045_v40  ;;  %v1055_v54 = vsub.f32 %v3970_v16, %v5464_v28  ;;  %v1570_v27 = vmul.f32 1.442695, %v1046_v34  ;;  %v3971_v38 = vld [vmem:[%s4236_s29 + $0x780] sm:$0xff]  ;;  %v3972_v16 = vld [vmem:[%s4236_s29 + $0x788] sm:$0xff] }
 0x1ba   : > { %7522 = vst [vmem:[#allocation226_spill] sm:$0xff] %v5907_v17  ;;  %v5914_v55 = vpop.eup %3420  ;;  %3440 = vpow2.f32 %v1554_v58  ;;  %1952 = vadd.xlane.f32.xlu1 %v1951_v20  ;;  %v1054_v58 = vsub.f32 %v3969_v46, %v5464_v28  ;;  %1948 = vadd.xlane.f32.xlu0 %v1947_v31  ;;  %v1050_v40 = vsub.f32 %v3971_v38, %v5471_v18  ;;  %v1584_v28 = vmul.f32 1.442695, %v1053_v41 }
 0x1bb   : > { %7523 = vst [vmem:[#allocation227_spill] sm:$0xff] %v5914_v55  ;;  %v5919_v12 = vpop.eup %3422  ;;  %3442 = vpow2.f32 %v1556_v39  ;;  %v1959_v31 = vadd.f32 %v5859_v24, %v1958_v45  ;;  %v1966_v13 = vadd.f32 %v5887_v47, %v5882_v63  ;;  %v1051_v38 = vsub.f32 %v3972_v16, %v5471_v18  ;;  %v3973_v63 = vld [vmem:[%s4236_s29 + $0x790] sm:$0xff]  ;;  %v3974_v16 = vld [vmem:[%s4236_s29 + $0x7c8] sm:$0xff] }
 0x1bc   : > { %7524 = vst [vmem:[#allocation228_spill] sm:$0xff] %v5919_v12  ;;  %v5921_v44 = vpop.eup %3424  ;;  %3444 = vpow2.f32 %v1558_v42  ;;  %v1954_v42 = vadd.f32 %v5869_v2, %v5863_v50  ;;  %v5935_v20 = vpop.xlane.xlu1 %1744  ;;  %v1962_v41 = vadd.f32 %v5907_v17, %v5901_v51  ;;  %v1586_v45 = vmul.f32 1.442695, %v1054_v58 }
 0x1bd   : > { %7525 = vst [vmem:[#allocation229_spill] sm:$0xff] %v5921_v44  ;;  %v5929_v39 = vpop.eup %3426  ;;  %3446 = vpow2.f32 %v1572_v0  ;;  %v5942_v0 = vpop.xlane.xlu0 %1740  ;;  %v1588_v47 = vmul.f32 1.442695, %v1055_v54  ;;  %v1052_v50 = vsub.f32 %v3973_v63, %v5471_v18  ;;  %v1578_v24 = vmul.f32 1.442695, %v1050_v40  ;;  %v3976_v54 = vld [vmem:[%s4236_s29 + $0x7d8] sm:$0xff] }
 0x1be   : > { %v5937_v46 = vpop.eup %3428  ;;  %3448 = vpow2.f32 %v1574_v61  ;;  %v1955_v2 = vadd.f32 %v5875_v6, %v1954_v42  ;;  %1960 = vadd.xlane.f32.xlu1 %v1959_v31  ;;  %v1059_v42 = vsub.f32 %v3974_v16, %v5489_v14  ;;  %v3975_v6 = vld [vmem:[%s4236_s29 + $0x7d0] sm:$0xff]  ;;  %v1061_v18 = vsub.f32 %v3976_v54, %v5489_v14  ;;  %v7533_v16 = vld [vmem:[#allocation165_spill] sm:$0xff] }
 0x1bf   : > { %7526 = vst [vmem:[#allocation230_spill] sm:$0xff] %v5937_v46  ;;  %v5944_v34 = vpop.eup %3430  ;;  %3450 = vpow2.f32 %v1576_v11  ;;  %v1060_v17 = vsub.f32 %v3975_v6, %v5489_v14  ;;  %v1967_v63 = vadd.f32 %v5893_v49, %v1966_v13  ;;  %v1580_v40 = vmul.f32 1.442695, %v1051_v38  ;;  %v3977_v13 = vld [vmem:[%s4236_s29 + $0x7b0] sm:$0xff] }
 0x1c0   : > { %7527 = vst [vmem:[#allocation231_spill] sm:$0xff] %v5944_v34  ;;  %v5951_v61 = vpop.eup %3432  ;;  %3452 = vpow2.f32 %v1566_v4  ;;  %1956 = vadd.xlane.f32.xlu0 %v1955_v2  ;;  %v1963_v6 = vadd.f32 %v5914_v55, %v1962_v41  ;;  %v1970_v2 = vadd.f32 %v5944_v34, %v5937_v46  ;;  %v1582_v14 = vmul.f32 1.442695, %v1052_v50  ;;  %v3979_v46 = vld [vmem:[%s4236_s29 + $0x7c0] sm:$0xff] }
 0x1c1   : > { %7528 = vst [vmem:[#allocation232_spill] sm:$0xff] %v5951_v61  ;;  %v5955_v11 = vpop.eup %3434  ;;  %3454 = vpow2.f32 %v1568_v53  ;;  %v1974_v53 = vadd.f32 %v5921_v44, %v5919_v12  ;;  %v1056_v54 = vsub.f32 %v3977_v13, %v7533_v16  ;;  %v3978_v44 = vld [vmem:[%s4236_s29 + $0x7b8] sm:$0xff]  ;;  %v1596_v41 = vmul.f32 1.442695, %v1059_v42 }
 0x1c2   : > { %7529 = vst [vmem:[#allocation233_spill] sm:$0xff] %v5955_v11  ;;  %v5961_v4 = vpop.eup %3436  ;;  %3456 = vpow2.f32 %v1570_v27  ;;  %v5973_v27 = vpop.xlane.xlu1 %1752  ;;  %v1057_v12 = vsub.f32 %v3978_v44, %v7533_v16  ;;  %1968 = vadd.xlane.f32.xlu1 %v1967_v63  ;;  %v1598_v34 = vmul.f32 1.442695, %v1060_v17  ;;  %v1058_v55 = vsub.f32 %v3979_v46, %v7533_v16 }
 0x1c3   : > { %7530 = vst [vmem:[#allocation234_spill] sm:$0xff] %v5961_v4  ;;  %v5968_v58 = vpop.eup %3438  ;;  %3458 = vpow2.f32 %v1584_v28  ;;  %v5981_v28 = vpop.xlane.xlu0 %1748  ;;  %v1975_v44 = vadd.f32 %v5929_v39, %v1974_v53  ;;  %v1982_v63 = vadd.f32 %v5961_v4, %v5955_v11  ;;  %v1971_v46 = vadd.f32 %v5951_v61, %v1970_v2  ;;  %v3982_v2 = vld [vmem:[%s4236_s29 + $0x808] sm:$0xff] }
 0x1c4   : > { %7531 = vst [vmem:[#allocation235_spill] sm:$0xff] %v5968_v58  ;;  %v5975_v31 = vpop.eup %3440  ;;  %3460 = vpow2.f32 %v1586_v45  ;;  %1964 = vadd.xlane.f32.xlu0 %v1963_v6  ;;  %v1600_v45 = vmul.f32 1.442695, %v1061_v18  ;;  %v1590_v18 = vmul.f32 1.442695, %v1056_v54  ;;  %v3981_v6 = vld [vmem:[%s4236_s29 + $0x800] sm:$0xff]  ;;  %v1067_v11 = vsub.f32 %v3982_v2, %v5511_v59 }
 0x1c5   : > { %7532 = vst [vmem:[#allocation236_spill] sm:$0xff] %v5975_v31  ;;  %v5983_v38 = vpop.eup %3442  ;;  %3462 = vpow2.f32 %v1588_v47  ;;  %v3980_v47 = vld [vmem:[%s4236_s29 + $0x7f8] sm:$0xff]  ;;  %v1592_v53 = vmul.f32 1.442695, %v1057_v12  ;;  %v1066_v16 = vsub.f32 %v3981_v6, %v5511_v59  ;;  %v3984_v54 = vld [vmem:[%s4236_s29 + $0x7e8] sm:$0xff]  ;;  %v1983_v6 = vadd.f32 %v5968_v58, %v1982_v63  ;;  %v3985_v2 = vld [vmem:[%s4236_s29 + $0x7f0] sm:$0xff] }
 0x1c6   : > { %7534 = vst [vmem:[#allocation165_spill] sm:$0xff] %v5983_v38  ;;  %v5987_v50 = vpop.eup %3444  ;;  %3464 = vpow2.f32 %v1578_v24  ;;  %v1065_v17 = vsub.f32 %v3980_v47, %v5511_v59  ;;  %v1978_v42 = vadd.f32 %v5983_v38, %v5975_v31  ;;  %1976 = vadd.xlane.f32.xlu1 %v1975_v44  ;;  %v1594_v47 = vmul.f32 1.442695, %v1058_v55  ;;  %v3983_v38 = vld [vmem:[%s4236_s29 + $0x7e0] sm:$0xff] }
 0x1c7   : > { %7535 = vst [vmem:[#allocation237_spill] sm:$0xff] %v5987_v50  ;;  %v5992_v13 = vpop.eup %3446  ;;  %3466 = vpow2.f32 %v1580_v40  ;;  %v6003_v40 = vpop.xlane.xlu1 %1760  ;;  %v1062_v31 = vsub.f32 %v3983_v38, %v5521_v52  ;;  %v1063_v44 = vsub.f32 %v3984_v54, %v5521_v52  ;;  %v1064_v54 = vsub.f32 %v3985_v2, %v5521_v52 }
 0x1c8   : > { %7536 = vst [vmem:[#allocation238_spill] sm:$0xff] %v5992_v13  ;;  %v5999_v24 = vpop.eup %3448  ;;  %3468 = vpow2.f32 %v1582_v14  ;;  %1972 = vadd.xlane.f32.xlu0 %v1971_v46  ;;  %v6011_v12 = vpop.xlane.xlu0 %1756  ;;  %v1608_v38 = vmul.f32 1.442695, %v1065_v17 }
 0x1c9   : > { %7537 = vst [vmem:[#allocation239_spill] sm:$0xff] %v5999_v24  ;;  %v6005_v4 = vpop.eup %3450  ;;  %3470 = vpow2.f32 %v1596_v41  ;;  %v1990_v55 = vadd.f32 %v5999_v24, %v5992_v13  ;;  %v1979_v41 = vadd.f32 %v5987_v50, %v1978_v42  ;;  %v1612_v24 = vmul.f32 1.442695, %v1067_v11  ;;  %v3987_v42 = vld [vmem:[%s4236_s29 + $0x830] sm:$0xff] }
 0x1ca   : > { %7538 = vst [vmem:[#allocation240_spill] sm:$0xff] %v6005_v4  ;;  %v6013_v14 = vpop.eup %3452  ;;  %3472 = vpow2.f32 %v1598_v34  ;;  %v1610_v34 = vmul.f32 1.442695, %v1066_v16  ;;  %1984 = vadd.xlane.f32.xlu1 %v1983_v6  ;;  %v1072_v13 = vsub.f32 %v3987_v42, %v5537_v57  ;;  %v1602_v16 = vmul.f32 1.442695, %v1062_v31 }
 0x1cb   : > { %7539 = vst [vmem:[#allocation241_spill] sm:$0xff] %v6013_v14  ;;  %v6020_v59 = vpop.eup %3454  ;;  %3474 = vpow2.f32 %v1600_v45  ;;  %v3986_v45 = vld [vmem:[%s4236_s29 + $0x828] sm:$0xff]  ;;  %v1604_v6 = vmul.f32 1.442695, %v1063_v44  ;;  %v1991_v2 = vadd.f32 %v6005_v4, %v1990_v55  ;;  %v1606_v31 = vmul.f32 1.442695, %v1064_v54 }
 0x1cc   : > { %7540 = vst [vmem:[#allocation242_spill] sm:$0xff] %v6020_v59  ;;  %v6023_v46 = vpop.eup %3456  ;;  %3476 = vpow2.f32 %v1590_v18  ;;  %v1986_v63 = vadd.f32 %v6020_v59, %v6013_v14  ;;  %v1071_v17 = vsub.f32 %v3986_v45, %v5537_v57  ;;  %1980 = vadd.xlane.f32.xlu0 %v1979_v41  ;;  %v6035_v18 = vpop.xlane.xlu1 %1768  ;;  %v3988_v45 = vld [vmem:[%s4236_s29 + $0x838] sm:$0xff]  ;;  %v3989_v44 = vld [vmem:[%s4236_s29 + $0x810] sm:$0xff]  ;;  %v7546_v55 = vld [vmem:[#allocation173_spill] sm:$0xff] }
 0x1cd   : > { %7541 = vst [vmem:[#allocation243_spill] sm:$0xff] %v6023_v46  ;;  %v6029_v58 = vpop.eup %3458  ;;  %3478 = vpow2.f32 %v1592_v53  ;;  %v6040_v53 = vpop.xlane.xlu0 %1764  ;;  %v1073_v42 = vsub.f32 %v3988_v45, %v5537_v57  ;;  %v1068_v14 = vsub.f32 %v3989_v44, %v7546_v55  ;;  %v1622_v57 = vmul.f32 1.442695, %v1072_v13  ;;  %v3990_v45 = vld [vmem:[%s4236_s29 + $0x818] sm:$0xff] }
 0x1ce   : > { %7542 = vst [vmem:[#allocation244_spill] sm:$0xff] %v6029_v58  ;;  %v6037_v52 = vpop.eup %3460  ;;  %3480 = vpow2.f32 %v1594_v47  ;;  %v1987_v41 = vadd.f32 %v6023_v46, %v1986_v63  ;;  %1992 = vadd.xlane.f32.xlu1 %v1991_v2  ;;  %v1069_v63 = vsub.f32 %v3990_v45, %v7546_v55 }
 0x1cf   : > { %7543 = vst [vmem:[#allocation245_spill] sm:$0xff] %v6037_v52  ;;  %v6042_v11 = vpop.eup %3462  ;;  %3482 = vpow2.f32 %v1608_v38  ;;  %v1998_v59 = vadd.f32 %v6037_v52, %v6029_v58  ;;  %v1620_v38 = vmul.f32 1.442695, %v1071_v17  ;;  %v1624_v13 = vmul.f32 1.442695, %v1073_v42 }
 0x1d0   : > { %7544 = vst [vmem:[#allocation246_spill] sm:$0xff] %v6042_v11  ;;  %v6049_v47 = vpop.eup %3464  ;;  %3484 = vpow2.f32 %v1610_v34  ;;  %1988 = vadd.xlane.f32.xlu0 %v1987_v41  ;;  %v3991_v34 = vld [vmem:[%s4236_s29 + $0x820] sm:$0xff]  ;;  %v1616_v42 = vmul.f32 1.442695, %v1069_v63  ;;  %v3996_v63 = vld [vmem:[%s4236_s29 + $0x848] sm:$0xff] }
 0x1d1   : > { %7545 = vst [vmem:[#allocation247_spill] sm:$0xff] %v6049_v47  ;;  %v6053_v4 = vpop.eup %3466  ;;  %3486 = vpow2.f32 %v1612_v24  ;;  %v1070_v54 = vsub.f32 %v3991_v34, %v7546_v55  ;;  %v1999_v44 = vadd.f32 %v6042_v11, %v1998_v59  ;;  %v3992_v24 = vld [vmem:[%s4236_s29 + $0x858] sm:$0xff]  ;;  %v6068_v41 = vpop.xlane.xlu1 %1776  ;;  %v3993_v55 = vld [vmem:[%s4236_s29 + $0x860] sm:$0xff] }
 0x1d2   : > { %7547 = vst [vmem:[#allocation173_spill] sm:$0xff] %v6053_v4  ;;  %v6057_v52 = vpop.eup %3468  ;;  %3488 = vpow2.f32 %v1602_v16  ;;  %v1994_v2 = vadd.f32 %v6053_v4, %v6049_v47  ;;  %v1077_v17 = vsub.f32 %v3992_v24, %v5562_v8  ;;  %v1614_v16 = vmul.f32 1.442695, %v1068_v14  ;;  %v6075_v4 = vpop.xlane.xlu0 %1772  ;;  %v3994_v24 = vld [vmem:[%s4236_s29 + $0x868] sm:$0xff] }
 0x1d3   : > { %7548 = vst [vmem:[#allocation248_spill] sm:$0xff] %v6057_v52  ;;  %v6064_v58 = vpop.eup %3470  ;;  %3490 = vpow2.f32 %v1604_v6  ;;  %v1078_v59 = vsub.f32 %v3993_v55, %v5562_v8  ;;  %2000 = vadd.xlane.f32.xlu1 %v1999_v44  ;;  %v1079_v47 = vsub.f32 %v3994_v24, %v5562_v8  ;;  %v1618_v44 = vmul.f32 1.442695, %v1070_v54  ;;  %v3995_v55 = vld [vmem:[%s4236_s29 + $0x840] sm:$0xff]  ;;  %v3997_v54 = vld [vmem:[%s4236_s29 + $0x850] sm:$0xff] }
 0x1d4   : > { %7549 = vst [vmem:[#allocation249_spill] sm:$0xff] %v6064_v58  ;;  %v6070_v45 = vpop.eup %3472  ;;  %3492 = vpow2.f32 %v1606_v31  ;;  %v1995_v34 = vadd.f32 %v6057_v52, %v1994_v2  ;;  %v7553_v2 = vld [vmem:[#allocation76_spill] sm:$0xff] }
 0x1d5   : > { %7550 = vst [vmem:[#allocation250_spill] sm:$0xff] %v6070_v45  ;;  %v6077_v6 = vpop.eup %3474  ;;  %3494 = vpow2.f32 %v1620_v38  ;;  %v2006_v31 = vadd.f32 %v6070_v45, %v6064_v58  ;;  %v1074_v52 = vsub.f32 %v3995_v55, %v7553_v2  ;;  %v1632_v38 = vmul.f32 1.442695, %v1077_v17 }
 0x1d6   : > { %7551 = vst [vmem:[#allocation251_spill] sm:$0xff] %v6077_v6  ;;  %v6083_v14 = vpop.eup %3476  ;;  %3496 = vpow2.f32 %v1622_v57  ;;  %1996 = vadd.xlane.f32.xlu0 %v1995_v34  ;;  %v1075_v8 = vsub.f32 %v3996_v63, %v7553_v2  ;;  %v1634_v57 = vmul.f32 1.442695, %v1078_v59  ;;  %v1076_v58 = vsub.f32 %v3997_v54, %v7553_v2  ;;  %v3998_v63 = vld [vmem:[%s4236_s29 + $0x888] sm:$0xff]  ;;  %v3999_v54 = vld [vmem:[%s4236_s29 + $0x890] sm:$0xff] }
 0x1d7   : > { %7552 = vst [vmem:[#allocation252_spill] sm:$0xff] %v6083_v14  ;;  %v6087_v11 = vpop.eup %3478  ;;  %3498 = vpow2.f32 %v1624_v13  ;;  %v2007_v24 = vadd.f32 %v6077_v6, %v2006_v31  ;;  %v6098_v55 = vpop.xlane.xlu1 %1784  ;;  %v1636_v17 = vmul.f32 1.442695, %v1079_v47  ;;  %v1083_v31 = vsub.f32 %v3998_v63, %v5587_v35 }
 0x1d8   : > { %7554 = vst [vmem:[#allocation76_spill] sm:$0xff] %v6087_v11  ;;  %v6092_v45 = vpop.eup %3480  ;;  %3500 = vpow2.f32 %v1614_v16  ;;  %v2002_v34 = vadd.f32 %v6087_v11, %v6083_v14  ;;  %v6104_v16 = vpop.xlane.xlu0 %1780  ;;  %v1626_v2 = vmul.f32 1.442695, %v1074_v52  ;;  %v1084_v11 = vsub.f32 %v3999_v54, %v5587_v35  ;;  %v7560_v54 = vld [vmem:[#allocation181_spill] sm:$0xff] }
 0x1d9   : > { %7555 = vst [vmem:[#allocation253_spill] sm:$0xff] %v6092_v45  ;;  %v6100_v13 = vpop.eup %3482  ;;  %3502 = vpow2.f32 %v1616_v42  ;;  %2008 = vadd.xlane.f32.xlu1 %v2007_v24  ;;  %v1628_v47 = vmul.f32 1.442695, %v1075_v8  ;;  %v4000_v42 = vld [vmem:[%s4236_s29 + $0x898] sm:$0xff]  ;;  %v1630_v52 = vmul.f32 1.442695, %v1076_v58 }
 0x1da   : > { %7556 = vst [vmem:[#allocation254_spill] sm:$0xff] %v6100_v13  ;;  %v6106_v59 = vpop.eup %3484  ;;  %3504 = vpow2.f32 %v1618_v44  ;;  %v2003_v14 = vadd.f32 %v6092_v45, %v2002_v34  ;;  %v1085_v24 = vsub.f32 %v4000_v42, %v5587_v35  ;;  %v4001_v44 = vld [vmem:[%s4236_s29 + $0x870] sm:$0xff]  ;;  %v4002_v8 = vld [vmem:[%s4236_s29 + $0x878] sm:$0xff]  ;;  %v1646_v58 = vmul.f32 1.442695, %v1084_v11 }
 0x1db   : > { %7557 = vst [vmem:[#allocation255_spill] sm:$0xff] %v6106_v59  ;;  %v6111_v6 = vpop.eup %3486  ;;  %3506 = vpow2.f32 %v1632_v38  ;;  %v2014_v63 = vadd.f32 %v6106_v59, %v6100_v13  ;;  %v1080_v50 = vsub.f32 %v4001_v44, %v7560_v54  ;;  %v1644_v38 = vmul.f32 1.442695, %v1083_v31 }
 0x1dc   : > { %7558 = vst [vmem:[#allocation256_spill] sm:$0xff] %v6111_v6  ;;  %v6117_v46 = vpop.eup %3488  ;;  %3508 = vpow2.f32 %v1634_v57  ;;  %2004 = vadd.xlane.f32.xlu0 %v2003_v14  ;;  %v1081_v35 = vsub.f32 %v4002_v8, %v7560_v54  ;;  %v6126_v59 = vpop.xlane.xlu1 %1792  ;;  %v4003_v57 = vld [vmem:[%s4236_s29 + $0x880] sm:$0xff]  ;;  %v4004_v8 = vld [vmem:[%s4236_s29 + $0x8b8] sm:$0xff] }
 0x1dd   : > { %7559 = vst [vmem:[#allocation257_spill] sm:$0xff] %v6117_v46  ;;  %v6121_v34 = vpop.eup %3490  ;;  %3510 = vpow2.f32 %v1636_v17  ;;  %v2015_v42 = vadd.f32 %v6111_v6, %v2014_v63  ;;  %v1082_v14 = vsub.f32 %v4003_v57, %v7560_v54  ;;  %v6134_v44 = vpop.xlane.xlu0 %1788  ;;  %v1648_v63 = vmul.f32 1.442695, %v1085_v24  ;;  %v4005_v54 = vld [vmem:[%s4236_s29 + $0x8c0] sm:$0xff]  ;;  %v4006_v24 = vld [vmem:[%s4236_s29 + $0x8c8] sm:$0xff] }
 0x1de   : > { %7561 = vst [vmem:[#allocation181_spill] sm:$0xff] %v6121_v34  ;;  %v6128_v13 = vpop.eup %3492  ;;  %3512 = vpow2.f32 %v1626_v2  ;;  %v2010_v17 = vadd.f32 %v6121_v34, %v6117_v46  ;;  %v1089_v6 = vsub.f32 %v4004_v8, %v5623_v29  ;;  %v1638_v11 = vmul.f32 1.442695, %v1080_v50 }
 0x1df   : > { %7562 = vst [vmem:[#allocation258_spill] sm:$0xff] %v6128_v13  ;;  %v6136_v31 = vpop.eup %3494  ;;  %3514 = vpow2.f32 %v1628_v47  ;;  %2016 = vadd.xlane.f32.xlu1 %v2015_v42  ;;  %v1090_v57 = vsub.f32 %v4005_v54, %v5623_v29  ;;  %v1640_v47 = vmul.f32 1.442695, %v1081_v35  ;;  %v1091_v45 = vsub.f32 %v4006_v24, %v5623_v29  ;;  %v4008_v35 = vld [vmem:[%s4236_s29 + $0x8a8] sm:$0xff] }
 0x1e0   : > { %7563 = vst [vmem:[#allocation259_spill] sm:$0xff] %v6136_v31  ;;  %v6140_v2 = vpop.eup %3496  ;;  %3516 = vpow2.f32 %v1630_v52  ;;  %v2011_v34 = vadd.f32 %v6128_v13, %v2010_v17  ;;  %v1642_v50 = vmul.f32 1.442695, %v1082_v14  ;;  %v4007_v52 = vld [vmem:[%s4236_s29 + $0x8a0] sm:$0xff]  ;;  %v1087_v29 = vsub.f32 %v4008_v35, %v5625_v48  ;;  %v4009_v14 = vld [vmem:[%s4236_s29 + $0x8b0] sm:$0xff]  ;;  %v4010_v35 = vld [vmem:[%s4236_s29 + $0x8e8] sm:$0xff] }
 0x1e1   : > { %7564 = vst [vmem:[#allocation260_spill] sm:$0xff] %v6140_v2  ;;  %v6145_v46 = vpop.eup %3498  ;;  %3518 = vpow2.f32 %v1644_v38  ;;  %v2022_v42 = vadd.f32 %v6140_v2, %v6136_v31  ;;  %v1086_v54 = vsub.f32 %v4007_v52, %v5625_v48  ;;  %v1656_v38 = vmul.f32 1.442695, %v1089_v6  ;;  %v6160_v2 = vpop.xlane.xlu1 %1800 }
 0x1e2   : > { %7565 = vst [vmem:[#allocation261_spill] sm:$0xff] %v6145_v46  ;;  %v6151_v8 = vpop.eup %3500  ;;  %3520 = vpow2.f32 %v1646_v58  ;;  %2012 = vadd.xlane.f32.xlu0 %v2011_v34  ;;  %v1658_v58 = vmul.f32 1.442695, %v1090_v57  ;;  %v1088_v34 = vsub.f32 %v4009_v14, %v5625_v48  ;;  %v6168_v52 = vpop.xlane.xlu0 %1796  ;;  %v4011_v48 = vld [vmem:[%s4236_s29 + $0x8f0] sm:$0xff] }
 0x1e3   : > { %7566 = vst [vmem:[#allocation262_spill] sm:$0xff] %v6151_v8  ;;  %v6155_v17 = vpop.eup %3502  ;;  %3522 = vpow2.f32 %v1648_v63  ;;  %v2023_v24 = vadd.f32 %v6145_v46, %v2022_v42  ;;  %v1660_v42 = vmul.f32 1.442695, %v1091_v45  ;;  %v1095_v46 = vsub.f32 %v4010_v35, %v5656_v25  ;;  %v4012_v45 = vld [vmem:[%s4236_s29 + $0x8f8] sm:$0xff] }
 0x1e4   : > { %7567 = vst [vmem:[#allocation263_spill] sm:$0xff] %v6155_v17  ;;  %v6162_v31 = vpop.eup %3504  ;;  %3524 = vpow2.f32 %v1638_v11  ;;  %v2018_v63 = vadd.f32 %v6155_v17, %v6151_v8  ;;  %v1650_v57 = vmul.f32 1.442695, %v1086_v54  ;;  %v1096_v14 = vsub.f32 %v4011_v48, %v5656_v25  ;;  %v4013_v54 = vld [vmem:[%s4236_s29 + $0x8d0] sm:$0xff] }
 0x1e5   : > { %7568 = vst [vmem:[#allocation264_spill] sm:$0xff] %v6162_v31  ;;  %v6170_v6 = vpop.eup %3506  ;;  %3526 = vpow2.f32 %v1640_v47  ;;  %2024 = vadd.xlane.f32.xlu1 %v2023_v24  ;;  %v1652_v47 = vmul.f32 1.442695, %v1087_v29  ;;  %v1097_v13 = vsub.f32 %v4012_v45, %v5656_v25  ;;  %v1092_v48 = vsub.f32 %v4013_v54, %v5658_v22  ;;  %v4014_v29 = vld [vmem:[%s4236_s29 + $0x8d8] sm:$0xff] }
 0x1e6   : > { %7569 = vst [vmem:[#allocation265_spill] sm:$0xff] %v6170_v6  ;;  %v6174_v11 = vpop.eup %3508  ;;  %3528 = vpow2.f32 %v1642_v50  ;;  %v2019_v17 = vadd.f32 %v6162_v31, %v2018_v63  ;;  %v1654_v50 = vmul.f32 1.442695, %v1088_v34  ;;  %v1093_v25 = vsub.f32 %v4014_v29, %v5658_v22 }
 0x1e7   : > { %7570 = vst [vmem:[#allocation266_spill] sm:$0xff] %v6174_v11  ;;  %v6179_v8 = vpop.eup %3510  ;;  %3530 = vpow2.f32 %v1656_v38  ;;  %v2030_v24 = vadd.f32 %v6174_v11, %v6170_v6  ;;  %v6189_v63 = vpop.xlane.xlu1 %1808  ;;  %v1668_v38 = vmul.f32 1.442695, %v1095_v46  ;;  %v1670_v34 = vmul.f32 1.442695, %v1096_v14  ;;  %v4015_v6 = vld [vmem:[%s4236_s29 + $0x8e0] sm:$0xff] }
 0x1e8   : > { %7571 = vst [vmem:[#allocation267_spill] sm:$0xff] %v6179_v8  ;;  %v6185_v35 = vpop.eup %3512  ;;  %3532 = vpow2.f32 %v1658_v58  ;;  %2020 = vadd.xlane.f32.xlu0 %v2019_v17  ;;  %v6196_v11 = vpop.xlane.xlu0 %1804  ;;  %v1094_v17 = vsub.f32 %v4015_v6, %v5658_v22  ;;  %v1672_v46 = vmul.f32 1.442695, %v1097_v13 }
 0x1e9   : > { %v6191_v31 = vpop.eup %3514  ;;  %3534 = vpow2.f32 %v1660_v42  ;;  %v2031_v45 = vadd.f32 %v6179_v8, %v2030_v24  ;;  %v1662_v24 = vmul.f32 1.442695, %v1092_v48 }
 0x1ea   : > { %v6198_v58 = vpop.eup %3516  ;;  %3536 = vpow2.f32 %v1650_v57  ;;  %v2026_v54 = vadd.f32 %v6191_v31, %v6185_v35  ;;  %v1664_v57 = vmul.f32 1.442695, %v1093_v25  ;;  %v1666_v13 = vmul.f32 1.442695, %v1094_v17 }
 0x1eb   : > { %v6204_v61 = vpop.eup %3518  ;;  %3538 = vpow2.f32 %v1652_v47  ;;  %2032 = vadd.xlane.f32.xlu1 %v2031_v45 }
 0x1ec   : > { %v6206_v42 = vpop.eup %3520  ;;  %3540 = vpow2.f32 %v1654_v50  ;;  %v2027_v29 = vadd.f32 %v6198_v58, %v2026_v54  ;;  %v6213_v6 = vpop.xlane.xlu1 %1816 }
 0x1ed   : > { %v6209_v8 = vpop.eup %3522  ;;  %3542 = vpow2.f32 %v1668_v38  ;;  %v2038_v22 = vadd.f32 %v6206_v42, %v6204_v61  ;;  %v6217_v47 = vpop.xlane.xlu0 %1812 }
 0x1ee   : > { %v6215_v14 = vpop.eup %3524  ;;  %3544 = vpow2.f32 %v1670_v34  ;;  %2028 = vadd.xlane.f32.xlu0 %v2027_v29 }
 0x1ef   : > { %7572 = vst [vmem:[#allocation268_spill] sm:$0xff] %v6215_v14  ;;  %v6219_v50 = vpop.eup %3526  ;;  %3546 = vpow2.f32 %v1672_v46  ;;  %v2039_v48 = vadd.f32 %v6209_v8, %v2038_v22  ;;  %v7578_v46 = vld [vmem:[#allocation132_spill] sm:$0xff] }
 0x1f0   : > { %7573 = vst [vmem:[#allocation269_spill] sm:$0xff] %v6219_v50  ;;  %v6222_v45 = vpop.eup %3528  ;;  %3548 = vpow2.f32 %v1662_v24  ;;  %v2034_v38 = vadd.f32 %v6219_v50, %v6215_v14  ;;  %v6236_v24 = vpop.xlane.xlu1 %1824  ;;  %v7580_v50 = vld [vmem:[#allocation195_spill] sm:$0xff] }
 0x1f1   : > { %7574 = vst [vmem:[#allocation270_spill] sm:$0xff] %v6222_v45  ;;  %v6226_v25 = vpop.eup %3530  ;;  %3550 = vpow2.f32 %v1664_v57  ;;  %2040 = vadd.xlane.f32.xlu1 %v2039_v48  ;;  %v6241_v57 = vpop.xlane.xlu0 %1820 }
 0x1f2   : > { %7575 = vst [vmem:[#allocation271_spill] sm:$0xff] %v6226_v25  ;;  %v6228_v34 = vpop.eup %3532  ;;  %3552 = vpow2.f32 %v1666_v13  ;;  %v2035_v17 = vadd.f32 %v6222_v45, %v2034_v38 }
 0x1f3   : > { %7576 = vst [vmem:[#allocation272_spill] sm:$0xff] %v6228_v34  ;;  %v6231_v54 = vpop.eup %3534  ;;  %3554 = vrcp.f32 %v7578_v46  ;;  %v2046_v29 = vadd.f32 %v6228_v34, %v6226_v25  ;;  %v7592_v25 = vld [vmem:[#allocation12_spill] sm:$0xff] }
 0x1f4   : > { %7577 = vst [vmem:[#allocation273_spill] sm:$0xff] %v6231_v54  ;;  %v6238_v22 = vpop.eup %3536  ;;  %3556 = vrcp.f32 %v7580_v50  ;;  %2036 = vadd.xlane.f32.xlu0 %v2035_v17 }
 0x1f5   : > { %7579 = vst [vmem:[#allocation132_spill] sm:$0xff] %v6238_v22  ;;  %v6243_v48 = vpop.eup %3538  ;;  %3558 = vrcp.f32 %v5722_v7  ;;  %v2047_v13 = vadd.f32 %v6231_v54, %v2046_v29  ;;  %v7591_v54 = vld [vmem:[#allocation11_spill] sm:$0xff] }
 0x1f6   : > { %7581 = vst [vmem:[#allocation195_spill] sm:$0xff] %v6243_v48  ;;  %v6247_v38 = vpop.eup %3540  ;;  %3560 = vrcp.f32 %v5717_v62  ;;  %v2042_v46 = vadd.f32 %v6243_v48, %v6238_v22  ;;  %v6266_v48 = vpop.xlane.xlu0 %1828 }
 0x1f7   : > { %7582 = vst [vmem:[#allocation274_spill] sm:$0xff] %v6247_v38  ;;  %v6252_v34 = vpop.eup %3542  ;;  %3562 = vrcp.f32 %v5747_v3  ;;  %2048 = vadd.xlane.f32.xlu1 %v2047_v13  ;;  %v6259_v17 = vpop.xlane.xlu1 %1832 }
 0x1f8   : > { %7583 = vst [vmem:[#allocation275_spill] sm:$0xff] %v6252_v34  ;;  %v6255_v50 = vpop.eup %3544  ;;  %3564 = vrcp.f32 %v5752_v26  ;;  %v2043_v7 = vadd.f32 %v6247_v38, %v2042_v46 }
 0x1f9   : > { %7584 = vst [vmem:[#allocation276_spill] sm:$0xff] %v6255_v50  ;;  %v6261_v29 = vpop.eup %3546  ;;  %3566 = vrcp.f32 %v5779_v1  ;;  %v2054_v62 = vadd.f32 %v6255_v50, %v6252_v34  ;;  %v7588_v50 = vld [vmem:[#allocation17_spill] sm:$0xff]  ;;  %v7589_v34 = vld [vmem:[#allocation18_spill] sm:$0xff] }
 0x1fa   : > { %7585 = vst [vmem:[#allocation277_spill] sm:$0xff] %v6261_v29  ;;  %v6268_v22 = vpop.eup %3548  ;;  %3568 = vrcp.f32 %v5786_v15  ;;  %2044 = vadd.xlane.f32.xlu0 %v2043_v7 }
 0x1fb   : > { %7586 = vst [vmem:[#allocation278_spill] sm:$0xff] %v6268_v22  ;;  %v6271_v3 = vpop.eup %3550  ;;  %3570 = vrcp.f32 %v5811_v37  ;;  %v2055_v26 = vadd.f32 %v6261_v29, %v2054_v62  ;;  %v7590_v29 = vld [vmem:[#allocation19_spill] sm:$0xff] }
 0x1fc   : > { %7587 = vst [vmem:[#allocation279_spill] sm:$0xff] %v6271_v3  ;;  %v6275_v13 = vpop.eup %3552  ;;  %3572 = vrcp.f32 %v5818_v36  ;;  %v6281_v46 = vadd.f32 %v6271_v3, %v6268_v22  ;;  %v6283_v15 = vpop.xlane.xlu1 %1840  ;;  %v7593_v3 = vld [vmem:[#allocation13_spill] sm:$0xff] }
 0x1fd   : > { %v3555_v1 = vpop.eup %3554  ;;  %3574 = vrcp.f32 %v5839_v32  ;;  %2056 = vadd.xlane.f32.xlu1 %v2055_v26  ;;  %v6289_v36 = vpop.xlane.xlu0 %1836 }
 0x1fe   : > { %v3557_v7 = vpop.eup %3556  ;;  %v2253_v37 = vmul.f32 %v3555_v1, %v7588_v50  ;;  %v2254_v62 = vmul.f32 %v3555_v1, %v7589_v34  ;;  %v2255_v38 = vmul.f32 %v3555_v1, %v7590_v29  ;;  %3576 = vrcp.f32 %v5846_v60  ;;  %v7594_v60 = vld [vmem:[#allocation14_spill] sm:$0xff]  ;;  %v7595_v34 = vld [vmem:[#allocation15_spill] sm:$0xff] }
 0x1ff   : > { %v3559_v32 = vpop.eup %3558  ;;  %v2250_v26 = vmul.f32 %v3557_v7, %v7591_v54  ;;  %v2251_v45 = vmul.f32 %v3557_v7, %v7592_v25  ;;  %v2252_v22 = vmul.f32 %v3557_v7, %v7593_v3  ;;  %3578 = vrcp.f32 %v5873_v33  ;;  %v7596_v54 = vld [vmem:[#allocation16_spill] sm:$0xff]  ;;  %v7598_v7 = vld [vmem:[#allocation9_spill] sm:$0xff] }
 0x200   : > { %v3561_v14 = vpop.eup %3560  ;;  %2541 = vst [vmem:[%s6297_s16 + $0x18] sm:$0xff] %v2253_v37  ;;  %2542 = vst [vmem:[%s6297_s16 + $0x20] sm:$0xff] %v2254_v62  ;;  %v2259_v25 = vmul.f32 %v3559_v32, %v7594_v60  ;;  %v2260_v33 = vmul.f32 %v3559_v32, %v7595_v34  ;;  %v2261_v50 = vmul.f32 %v3559_v32, %v7596_v54  ;;  %3580 = vrcp.f32 %v5880_v56  ;;  %v7597_v3 = vld [vmem:[#allocation8_spill] sm:$0xff]  ;;  %v7599_v37 = vld [vmem:[#allocation10_spill] sm:$0xff] }
 0x201   : > { %2543 = vst [vmem:[%s6297_s16 + $0x28] sm:$0xff] %v2255_v38  ;;  %v3563_v29 = vpop.eup %3562  ;;  %2538 = vst [vmem:[%s6297_s16] sm:$0xff] %v2250_v26  ;;  %v2256_v1 = vmul.f32 %v3561_v14, %v7597_v3  ;;  %v2257_v38 = vmul.f32 %v3561_v14, %v7598_v7  ;;  %v2258_v62 = vmul.f32 %v3561_v14, %v7599_v37  ;;  %3582 = vrcp.f32 %v5905_v5  ;;  %v7600_v56 = vld [vmem:[#allocation20_spill] sm:$0xff]  ;;  %v7602_v26 = vld [vmem:[#allocation22_spill] sm:$0xff]  ;;  %v6327_v7 = vpop.xlane.xlu1 %1848 }
 0x202   : > { %2539 = vst [vmem:[%s6297_s16 + $0x8] sm:$0xff] %v2251_v45  ;;  %2540 = vst [vmem:[%s6297_s16 + $0x10] sm:$0xff] %v2252_v22  ;;  %v3565_v60 = vpop.eup %3564  ;;  %v2265_v32 = vmul.f32 %v3563_v29, %v7600_v56  ;;  %v7601_v45 = vld [vmem:[#allocation21_spill] sm:$0xff]  ;;  %v2267_v34 = vmul.f32 %v3563_v29, %v7602_v26  ;;  %3584 = vrcp.f32 %v5912_v23  ;;  %v7603_v5 = vld [vmem:[#allocation23_spill] sm:$0xff] }
 0x203   : > { %2547 = vst [vmem:[%s6297_s16 + $0x48] sm:$0xff] %v2259_v25  ;;  %2548 = vst [vmem:[%s6297_s16 + $0x50] sm:$0xff] %v2260_v33  ;;  %v2266_v22 = vmul.f32 %v3563_v29, %v7601_v45  ;;  %v3567_v54 = vpop.eup %3566  ;;  %v2262_v14 = vmul.f32 %v3565_v60, %v7603_v5  ;;  %v7604_v25 = vld [vmem:[#allocation24_spill] sm:$0xff]  ;;  %3586 = vrcp.f32 %v5935_v20  ;;  %v7606_v23 = vld [vmem:[#allocation26_spill] sm:$0xff] }
 0x204   : > { %2549 = vst [vmem:[%s6297_s16 + $0x58] sm:$0xff] %v2261_v50  ;;  %2544 = vst [vmem:[%s6297_s16 + $0x30] sm:$0xff] %v2256_v1  ;;  %v2263_v33 = vmul.f32 %v3565_v60, %v7604_v25  ;;  %v7605_v50 = vld [vmem:[#allocation25_spill] sm:$0xff]  ;;  %v3569_v29 = vpop.eup %3568  ;;  %v2271_v1 = vmul.f32 %v3567_v54, %v7606_v23  ;;  %3588 = vrcp.f32 %v5942_v0  ;;  %v7612_v0 = vld [vmem:[#allocation32_spill] sm:$0xff] }
 0x205   : > { %2545 = vst [vmem:[%s6297_s16 + $0x38] sm:$0xff] %v2257_v38  ;;  %2546 = vst [vmem:[%s6297_s16 + $0x40] sm:$0xff] %v2258_v62  ;;  %v2264_v3 = vmul.f32 %v3565_v60, %v7605_v50  ;;  %v7607_v38 = vld [vmem:[#allocation27_spill] sm:$0xff]  ;;  %v7608_v62 = vld [vmem:[#allocation28_spill] sm:$0xff]  ;;  %v6336_v60 = vpop.xlane.xlu0 %1844  ;;  %v3571_v20 = vpop.eup %3570  ;;  %3590 = vrcp.f32 %v5973_v27 }
 0x206   : > { %2553 = vst [vmem:[%s6297_s16 + $0x78] sm:$0xff] %v2265_v32  ;;  %2554 = vst [vmem:[%s6297_s16 + $0x80] sm:$0xff] %v2266_v22  ;;  %v2272_v37 = vmul.f32 %v3567_v54, %v7607_v38  ;;  %v2273_v56 = vmul.f32 %v3567_v54, %v7608_v62  ;;  %v7609_v32 = vld [vmem:[#allocation29_spill] sm:$0xff]  ;;  %v7610_v22 = vld [vmem:[#allocation30_spill] sm:$0xff]  ;;  %v3573_v54 = vpop.eup %3572  ;;  %3592 = vrcp.f32 %v5981_v28 }
 0x207   : > { %2555 = vst [vmem:[%s6297_s16 + $0x88] sm:$0xff] %v2267_v34  ;;  %2550 = vst [vmem:[%s6297_s16 + $0x60] sm:$0xff] %v2262_v14  ;;  %v2268_v45 = vmul.f32 %v3569_v29, %v7609_v32  ;;  %v2269_v26 = vmul.f32 %v3569_v29, %v7610_v22  ;;  %v7611_v34 = vld [vmem:[#allocation31_spill] sm:$0xff]  ;;  %v2277_v14 = vmul.f32 %v3571_v20, %v7612_v0  ;;  %v7613_v25 = vld [vmem:[#allocation33_spill] sm:$0xff]  ;;  %v3575_v23 = vpop.eup %3574  ;;  %3594 = vrcp.f32 %v6003_v40 }
 0x208   : > { %2551 = vst [vmem:[%s6297_s16 + $0x68] sm:$0xff] %v2263_v33  ;;  %2552 = vst [vmem:[%s6297_s16 + $0x70] sm:$0xff] %v2264_v3  ;;  %v2270_v5 = vmul.f32 %v3569_v29, %v7611_v34  ;;  %v2278_v33 = vmul.f32 %v3571_v20, %v7613_v25  ;;  %v7614_v50 = vld [vmem:[#allocation34_spill] sm:$0xff]  ;;  %v7615_v27 = vld [vmem:[#allocation35_spill] sm:$0xff]  ;;  %3596 = vrcp.f32 %v6011_v12  ;;  %v6366_v34 = vpop.xlane.xlu1 %1856 }
 0x209   : > { %2559 = vst [vmem:[%s6297_s16 + $0xa8] sm:$0xff] %v2271_v1  ;;  %2560 = vst [vmem:[%s6297_s16 + $0xb0] sm:$0xff] %v2272_v37  ;;  %v2279_v3 = vmul.f32 %v3571_v20, %v7614_v50  ;;  %v2274_v29 = vmul.f32 %v3573_v54, %v7615_v27  ;;  %v7616_v1 = vld [vmem:[#allocation36_spill] sm:$0xff]  ;;  %v7617_v37 = vld [vmem:[#allocation37_spill] sm:$0xff]  ;;  %3598 = vrcp.f32 %v6035_v18  ;;  %v6375_v50 = vpop.xlane.xlu0 %1852 }
 0x20a   : > { %2561 = vst [vmem:[%s6297_s16 + $0xb8] sm:$0xff] %v2273_v56  ;;  %2556 = vst [vmem:[%s6297_s16 + $0x90] sm:$0xff] %v2268_v45  ;;  %v2275_v38 = vmul.f32 %v3573_v54, %v7616_v1  ;;  %v2276_v62 = vmul.f32 %v3573_v54, %v7617_v37  ;;  %v3577_v56 = vpop.eup %3576  ;;  %v7618_v28 = vld [vmem:[#allocation38_spill] sm:$0xff]  ;;  %v7619_v32 = vld [vmem:[#allocation39_spill] sm:$0xff]  ;;  %3600 = vrcp.f32 %v6040_v53 }
 0x20b   : > { %2557 = vst [vmem:[%s6297_s16 + $0x98] sm:$0xff] %v2269_v26  ;;  %2558 = vst [vmem:[%s6297_s16 + $0xa0] sm:$0xff] %v2270_v5  ;;  %v2283_v20 = vmul.f32 %v3575_v23, %v7618_v28  ;;  %v2284_v45 = vmul.f32 %v3575_v23, %v7619_v32  ;;  %v7620_v22 = vld [vmem:[#allocation40_spill] sm:$0xff]  ;;  %v3579_v5 = vpop.eup %3578  ;;  %v7621_v40 = vld [vmem:[#allocation41_spill] sm:$0xff]  ;;  %3602 = vrcp.f32 %v6068_v41 }
 0x20c   : > { %2565 = vst [vmem:[%s6297_s16 + $0xd8] sm:$0xff] %v2277_v14  ;;  %2566 = vst [vmem:[%s6297_s16 + $0xe0] sm:$0xff] %v2278_v33  ;;  %v2285_v26 = vmul.f32 %v3575_v23, %v7620_v22  ;;  %v2280_v54 = vmul.f32 %v3577_v56, %v7621_v40  ;;  %v7622_v0 = vld [vmem:[#allocation42_spill] sm:$0xff]  ;;  %v7623_v25 = vld [vmem:[#allocation43_spill] sm:$0xff]  ;;  %v3581_v12 = vpop.eup %3580  ;;  %3604 = vrcp.f32 %v6075_v4 }
 0x20d   : > { %2567 = vst [vmem:[%s6297_s16 + $0xe8] sm:$0xff] %v2279_v3  ;;  %2562 = vst [vmem:[%s6297_s16 + $0xc0] sm:$0xff] %v2274_v29  ;;  %v2281_v14 = vmul.f32 %v3577_v56, %v7622_v0  ;;  %v2282_v33 = vmul.f32 %v3577_v56, %v7623_v25  ;;  %v7624_v3 = vld [vmem:[#allocation44_spill] sm:$0xff]  ;;  %v7625_v27 = vld [vmem:[#allocation45_spill] sm:$0xff]  ;;  %v3583_v37 = vpop.eup %3582  ;;  %3606 = vrcp.f32 %v6098_v55 }
 0x20e   : > { %2563 = vst [vmem:[%s6297_s16 + $0xc8] sm:$0xff] %v2275_v38  ;;  %2564 = vst [vmem:[%s6297_s16 + $0xd0] sm:$0xff] %v2276_v62  ;;  %v2289_v23 = vmul.f32 %v3579_v5, %v7624_v3  ;;  %v2290_v29 = vmul.f32 %v3579_v5, %v7625_v27  ;;  %v7626_v1 = vld [vmem:[#allocation46_spill] sm:$0xff]  ;;  %v7627_v18 = vld [vmem:[#allocation47_spill] sm:$0xff]  ;;  %v3585_v22 = vpop.eup %3584  ;;  %v6406_v27 = vpop.xlane.xlu1 %1864  ;;  %3608 = vrcp.f32 %v6104_v16 }
 0x20f   : > { %2571 = vst [vmem:[%s6297_s16 + $0x108] sm:$0xff] %v2283_v20  ;;  %2572 = vst [vmem:[%s6297_s16 + $0x110] sm:$0xff] %v2284_v45  ;;  %v2291_v38 = vmul.f32 %v3579_v5, %v7626_v1  ;;  %v2286_v62 = vmul.f32 %v3581_v12, %v7627_v18  ;;  %v7628_v56 = vld [vmem:[#allocation48_spill] sm:$0xff]  ;;  %v7629_v20 = vld [vmem:[#allocation49_spill] sm:$0xff]  ;;  %v2051_v45 = vadd.f32 %v6275_v13, %v6281_v46  ;;  %3610 = vrcp.f32 %v6126_v59 }
 0x210   : > { %2573 = vst [vmem:[%s6297_s16 + $0x118] sm:$0xff] %v2285_v26  ;;  %2568 = vst [vmem:[%s6297_s16 + $0xf0] sm:$0xff] %v2280_v54  ;;  %v2287_v28 = vmul.f32 %v3581_v12, %v7628_v56  ;;  %v2288_v32 = vmul.f32 %v3581_v12, %v7629_v20  ;;  %v7630_v53 = vld [vmem:[#allocation50_spill] sm:$0xff]  ;;  %v7631_v5 = vld [vmem:[#allocation51_spill] sm:$0xff]  ;;  %v6415_v56 = vpop.xlane.xlu0 %1860  ;;  %3612 = vrcp.f32 %v6134_v44 }
 0x211   : > { %2569 = vst [vmem:[%s6297_s16 + $0xf8] sm:$0xff] %v2281_v14  ;;  %2570 = vst [vmem:[%s6297_s16 + $0x100] sm:$0xff] %v2282_v33  ;;  %v2295_v26 = vmul.f32 %v3583_v37, %v7630_v53  ;;  %v2296_v40 = vmul.f32 %v3583_v37, %v7631_v5  ;;  %v7632_v54 = vld [vmem:[#allocation52_spill] sm:$0xff]  ;;  %v3587_v14 = vpop.eup %3586  ;;  %v7633_v46 = vld [vmem:[#allocation53_spill] sm:$0xff]  ;;  %2052 = vadd.xlane.f32.xlu0 %v2051_v45  ;;  %3614 = vrcp.f32 %v6160_v2 }
 0x212   : > { %2577 = vst [vmem:[%s6297_s16 + $0x138] sm:$0xff] %v2289_v23  ;;  %2578 = vst [vmem:[%s6297_s16 + $0x140] sm:$0xff] %v2290_v29  ;;  %v2297_v0 = vmul.f32 %v3583_v37, %v7632_v54  ;;  %v2292_v25 = vmul.f32 %v3585_v22, %v7633_v46  ;;  %v7634_v33 = vld [vmem:[#allocation54_spill] sm:$0xff]  ;;  %v7635_v3 = vld [vmem:[#allocation55_spill] sm:$0xff]  ;;  %v3589_v29 = vpop.eup %3588  ;;  %3616 = vrcp.f32 %v6168_v52 }
 0x213   : > { %2579 = vst [vmem:[%s6297_s16 + $0x148] sm:$0xff] %v2291_v38  ;;  %2574 = vst [vmem:[%s6297_s16 + $0x120] sm:$0xff] %v2286_v62  ;;  %v2293_v12 = vmul.f32 %v3585_v22, %v7634_v33  ;;  %v2294_v23 = vmul.f32 %v3585_v22, %v7635_v3  ;;  %v7636_v41 = vld [vmem:[#allocation56_spill] sm:$0xff]  ;;  %v7637_v38 = vld [vmem:[#allocation57_spill] sm:$0xff]  ;;  %v3591_v4 = vpop.eup %3590  ;;  %3618 = vrcp.f32 %v6189_v63 }
 0x214   : > { %2575 = vst [vmem:[%s6297_s16 + $0x128] sm:$0xff] %v2287_v28  ;;  %2576 = vst [vmem:[%s6297_s16 + $0x130] sm:$0xff] %v2288_v32  ;;  %v2301_v1 = vmul.f32 %v3587_v14, %v7636_v41  ;;  %v2302_v37 = vmul.f32 %v3587_v14, %v7637_v38  ;;  %v7638_v18 = vld [vmem:[#allocation58_spill] sm:$0xff]  ;;  %v7639_v28 = vld [vmem:[#allocation59_spill] sm:$0xff]  ;;  %v6461_v52 = vpop.xlane.xlu0 %1868  ;;  %3620 = vrcp.f32 %v6196_v11 }
 0x215   : > { %2583 = vst [vmem:[%s6297_s16 + $0x168] sm:$0xff] %v2295_v26  ;;  %2584 = vst [vmem:[%s6297_s16 + $0x170] sm:$0xff] %v2296_v40  ;;  %v2303_v62 = vmul.f32 %v3587_v14, %v7638_v18  ;;  %v2298_v20 = vmul.f32 %v3589_v29, %v7639_v28  ;;  %v7640_v32 = vld [vmem:[#allocation60_spill] sm:$0xff]  ;;  %v7641_v22 = vld [vmem:[#allocation61_spill] sm:$0xff]  ;;  %v3593_v26 = vpop.eup %3592  ;;  %3622 = vrcp.f32 %v6213_v6 }
 0x216   : > { %2585 = vst [vmem:[%s6297_s16 + $0x178] sm:$0xff] %v2297_v0  ;;  %2580 = vst [vmem:[%s6297_s16 + $0x150] sm:$0xff] %v2292_v25  ;;  %v2299_v45 = vmul.f32 %v3589_v29, %v7640_v32  ;;  %v2300_v53 = vmul.f32 %v3589_v29, %v7641_v22  ;;  %v7642_v55 = vld [vmem:[#allocation62_spill] sm:$0xff]  ;;  %v7643_v40 = vld [vmem:[#allocation63_spill] sm:$0xff]  ;;  %v3595_v46 = vpop.eup %3594  ;;  %v6452_v22 = vpop.xlane.xlu1 %1872  ;;  %3624 = vrcp.f32 %v6217_v47 }
 0x217   : > { %2581 = vst [vmem:[%s6297_s16 + $0x158] sm:$0xff] %v2293_v12  ;;  %2582 = vst [vmem:[%s6297_s16 + $0x160] sm:$0xff] %v2294_v23  ;;  %v2307_v5 = vmul.f32 %v3591_v4, %v7642_v55  ;;  %v2308_v54 = vmul.f32 %v3591_v4, %v7643_v40  ;;  %v7644_v0 = vld [vmem:[#allocation64_spill] sm:$0xff]  ;;  %v7645_v16 = vld [vmem:[#allocation65_spill] sm:$0xff]  ;;  %v3597_v29 = vpop.eup %3596  ;;  %3626 = vrcp.f32 %v6236_v24 }
 0x218   : > { %2589 = vst [vmem:[%s6297_s16 + $0x198] sm:$0xff] %v2301_v1  ;;  %2590 = vst [vmem:[%s6297_s16 + $0x1a0] sm:$0xff] %v2302_v37  ;;  %v2309_v14 = vmul.f32 %v3591_v4, %v7644_v0  ;;  %v2304_v25 = vmul.f32 %v3593_v26, %v7645_v16  ;;  %v7646_v33 = vld [vmem:[#allocation66_spill] sm:$0xff]  ;;  %v7647_v3 = vld [vmem:[#allocation67_spill] sm:$0xff]  ;;  %3628 = vrcp.f32 %v6241_v57 }
 0x219   : > { %2591 = vst [vmem:[%s6297_s16 + $0x1a8] sm:$0xff] %v2303_v62  ;;  %2586 = vst [vmem:[%s6297_s16 + $0x180] sm:$0xff] %v2298_v20  ;;  %v2305_v12 = vmul.f32 %v3593_v26, %v7646_v33  ;;  %v2306_v23 = vmul.f32 %v3593_v26, %v7647_v3  ;;  %v7648_v59 = vld [vmem:[#allocation68_spill] sm:$0xff]  ;;  %v7649_v1 = vld [vmem:[#allocation69_spill] sm:$0xff]  ;;  %v3599_v62 = vpop.eup %3598  ;;  %3630 = vrcp.f32 %v6259_v17 }
 0x21a   : > { %2587 = vst [vmem:[%s6297_s16 + $0x188] sm:$0xff] %v2299_v45  ;;  %2588 = vst [vmem:[%s6297_s16 + $0x190] sm:$0xff] %v2300_v53  ;;  %v2313_v41 = vmul.f32 %v3595_v46, %v7648_v59  ;;  %v2314_v38 = vmul.f32 %v3595_v46, %v7649_v1  ;;  %v7650_v37 = vld [vmem:[#allocation70_spill] sm:$0xff]  ;;  %v7651_v44 = vld [vmem:[#allocation71_spill] sm:$0xff]  ;;  %v3601_v53 = vpop.eup %3600  ;;  %3632 = vrcp.f32 %v6266_v48 }
 0x21b   : > { %2595 = vst [vmem:[%s6297_s16 + $0x1c8] sm:$0xff] %v2307_v5  ;;  %2596 = vst [vmem:[%s6297_s16 + $0x1d0] sm:$0xff] %v2308_v54  ;;  %v2315_v18 = vmul.f32 %v3595_v46, %v7650_v37  ;;  %v2310_v4 = vmul.f32 %v3597_v29, %v7651_v44  ;;  %v7652_v28 = vld [vmem:[#allocation72_spill] sm:$0xff]  ;;  %v7653_v32 = vld [vmem:[#allocation73_spill] sm:$0xff] }
 0x21c   : > { %2597 = vst [vmem:[%s6297_s16 + $0x1d8] sm:$0xff] %v2309_v14  ;;  %2592 = vst [vmem:[%s6297_s16 + $0x1b0] sm:$0xff] %v2304_v25  ;;  %v2311_v20 = vmul.f32 %v3597_v29, %v7652_v28  ;;  %v2312_v45 = vmul.f32 %v3597_v29, %v7653_v32  ;;  %v7654_v2 = vld [vmem:[#allocation75_spill] sm:$0xff]  ;;  %v7655_v55 = vld [vmem:[#allocation77_spill] sm:$0xff] }
 0x21d   : > { %2593 = vst [vmem:[%s6297_s16 + $0x1b8] sm:$0xff] %v2305_v12  ;;  %2594 = vst [vmem:[%s6297_s16 + $0x1c0] sm:$0xff] %v2306_v23  ;;  %v2319_v26 = vmul.f32 %v3599_v62, %v7654_v2  ;;  %v2320_v5 = vmul.f32 %v3599_v62, %v7655_v55  ;;  %v7656_v40 = vld [vmem:[#allocation78_spill] sm:$0xff]  ;;  %v7657_v0 = vld [vmem:[#allocation79_spill] sm:$0xff]  ;;  %v3603_v12 = vpop.eup %3602  ;;  %3634 = vrcp.f32 %v6283_v15 }
 0x21e   : > { %2601 = vst [vmem:[%s6297_s16 + $0x1f8] sm:$0xff] %v2313_v41  ;;  %2602 = vst [vmem:[%s6297_s16 + $0x200] sm:$0xff] %v2314_v38  ;;  %v2321_v54 = vmul.f32 %v3599_v62, %v7656_v40  ;;  %v2316_v14 = vmul.f32 %v3601_v53, %v7657_v0  ;;  %v7658_v46 = vld [vmem:[#allocation81_spill] sm:$0xff]  ;;  %v7659_v25 = vld [vmem:[#allocation83_spill] sm:$0xff]  ;;  %v3605_v63 = vpop.eup %3604  ;;  %3636 = vrcp.f32 %v6289_v36 }
 0x21f   : > { %2603 = vst [vmem:[%s6297_s16 + $0x208] sm:$0xff] %v2315_v18  ;;  %2598 = vst [vmem:[%s6297_s16 + $0x1e0] sm:$0xff] %v2310_v4  ;;  %v2317_v16 = vmul.f32 %v3601_v53, %v7658_v46  ;;  %v2318_v33 = vmul.f32 %v3601_v53, %v7659_v25  ;;  %v7660_v3 = vld [vmem:[#allocation84_spill] sm:$0xff]  ;;  %v7661_v29 = vld [vmem:[#allocation85_spill] sm:$0xff]  ;;  %v3607_v11 = vpop.eup %3606  ;;  %v6485_v4 = vpop.xlane.xlu1 %1880  ;;  %3638 = vrcp.f32 %v6327_v7 }
 0x220   : > { %2599 = vst [vmem:[%s6297_s16 + $0x1e8] sm:$0xff] %v2311_v20  ;;  %2600 = vst [vmem:[%s6297_s16 + $0x1f0] sm:$0xff] %v2312_v45  ;;  %v2325_v23 = vmul.f32 %v3603_v12, %v7660_v3  ;;  %v2326_v59 = vmul.f32 %v3603_v12, %v7661_v29  ;;  %v7662_v41 = vld [vmem:[#allocation86_spill] sm:$0xff]  ;;  %v7663_v38 = vld [vmem:[#allocation87_spill] sm:$0xff]  ;;  %v3609_v28 = vpop.eup %3608  ;;  %3640 = vrcp.f32 %v6336_v60 }
 0x221   : > { %2607 = vst [vmem:[%s6297_s16 + $0x228] sm:$0xff] %v2319_v26  ;;  %2608 = vst [vmem:[%s6297_s16 + $0x230] sm:$0xff] %v2320_v5  ;;  %v2327_v1 = vmul.f32 %v3603_v12, %v7662_v41  ;;  %v2322_v37 = vmul.f32 %v3605_v63, %v7663_v38  ;;  %v7664_v6 = vld [vmem:[#allocation88_spill] sm:$0xff]  ;;  %v7665_v62 = vld [vmem:[#allocation89_spill] sm:$0xff]  ;;  %v6494_v26 = vpop.xlane.xlu0 %1876  ;;  %v3611_v24 = vpop.eup %3610  ;;  %3642 = vrcp.f32 %v6366_v34 }
 0x222   : > { %2609 = vst [vmem:[%s6297_s16 + $0x238] sm:$0xff] %v2321_v54  ;;  %2604 = vst [vmem:[%s6297_s16 + $0x210] sm:$0xff] %v2316_v14  ;;  %v2323_v18 = vmul.f32 %v3605_v63, %v7664_v6  ;;  %v2324_v44 = vmul.f32 %v3605_v63, %v7665_v62  ;;  %v7666_v47 = vld [vmem:[#allocation90_spill] sm:$0xff]  ;;  %v7667_v32 = vld [vmem:[#allocation91_spill] sm:$0xff]  ;;  %v3613_v46 = vpop.eup %3612  ;;  %3644 = vrcp.f32 %v6375_v50 }
 0x223   : > { %2605 = vst [vmem:[%s6297_s16 + $0x218] sm:$0xff] %v2317_v16  ;;  %2606 = vst [vmem:[%s6297_s16 + $0x220] sm:$0xff] %v2318_v33  ;;  %v2331_v20 = vmul.f32 %v3607_v11, %v7666_v47  ;;  %v2332_v45 = vmul.f32 %v3607_v11, %v7667_v32  ;;  %v7668_v53 = vld [vmem:[#allocation92_spill] sm:$0xff]  ;;  %v7669_v55 = vld [vmem:[#allocation93_spill] sm:$0xff]  ;;  %v3615_v3 = vpop.eup %3614  ;;  %3646 = vrcp.f32 %v6406_v27 }
 0x224   : > { %2613 = vst [vmem:[%s6297_s16 + $0x258] sm:$0xff] %v2325_v23  ;;  %2614 = vst [vmem:[%s6297_s16 + $0x260] sm:$0xff] %v2326_v59  ;;  %v2333_v2 = vmul.f32 %v3607_v11, %v7668_v53  ;;  %v2328_v5 = vmul.f32 %v3609_v28, %v7669_v55  ;;  %v7670_v40 = vld [vmem:[#allocation94_spill] sm:$0xff]  ;;  %v7671_v0 = vld [vmem:[#allocation95_spill] sm:$0xff]  ;;  %v3617_v11 = vpop.eup %3616  ;;  %3648 = vrcp.f32 %v6415_v56 }
 0x225   : > { %2615 = vst [vmem:[%s6297_s16 + $0x268] sm:$0xff] %v2327_v1  ;;  %2610 = vst [vmem:[%s6297_s16 + $0x240] sm:$0xff] %v2322_v37  ;;  %v2329_v54 = vmul.f32 %v3609_v28, %v7670_v40  ;;  %v2330_v14 = vmul.f32 %v3609_v28, %v7671_v0  ;;  %v7672_v57 = vld [vmem:[#allocation96_spill] sm:$0xff]  ;;  %v7673_v25 = vld [vmem:[#allocation97_spill] sm:$0xff]  ;;  %v3619_v28 = vpop.eup %3618  ;;  %3650 = vrcp.f32 %v6452_v22 }
 0x226   : > { %2611 = vst [vmem:[%s6297_s16 + $0x248] sm:$0xff] %v2323_v18  ;;  %2612 = vst [vmem:[%s6297_s16 + $0x250] sm:$0xff] %v2324_v44  ;;  %v2337_v16 = vmul.f32 %v3611_v24, %v7672_v57  ;;  %v2338_v33 = vmul.f32 %v3611_v24, %v7673_v25  ;;  %v7674_v12 = vld [vmem:[#allocation98_spill] sm:$0xff]  ;;  %v7675_v17 = vld [vmem:[#allocation99_spill] sm:$0xff]  ;;  %v6524_v44 = vpop.xlane.xlu1 %1888  ;;  %v3621_v36 = vpop.eup %3620  ;;  %3652 = vrcp.f32 %v6461_v52 }
 0x227   : > { %2619 = vst [vmem:[%s6297_s16 + $0x288] sm:$0xff] %v2331_v20  ;;  %2620 = vst [vmem:[%s6297_s16 + $0x290] sm:$0xff] %v2332_v45  ;;  %v2339_v63 = vmul.f32 %v3611_v24, %v7674_v12  ;;  %v2334_v23 = vmul.f32 %v3613_v46, %v7675_v17  ;;  %v7676_v29 = vld [vmem:[#allocation100_spill] sm:$0xff]  ;;  %v7677_v41 = vld [vmem:[#allocation101_spill] sm:$0xff] }
 0x228   : > { %2621 = vst [vmem:[%s6297_s16 + $0x298] sm:$0xff] %v2333_v2  ;;  %2616 = vst [vmem:[%s6297_s16 + $0x270] sm:$0xff] %v2328_v5  ;;  %v2335_v59 = vmul.f32 %v3613_v46, %v7676_v29  ;;  %v2336_v1 = vmul.f32 %v3613_v46, %v7677_v41  ;;  %v7678_v48 = vld [vmem:[#allocation102_spill] sm:$0xff]  ;;  %v7679_v37 = vld [vmem:[#allocation103_spill] sm:$0xff]  ;;  %v6533_v2 = vpop.xlane.xlu0 %1884 }
 0x229   : > { %2617 = vst [vmem:[%s6297_s16 + $0x278] sm:$0xff] %v2329_v54  ;;  %2618 = vst [vmem:[%s6297_s16 + $0x280] sm:$0xff] %v2330_v14  ;;  %v2343_v38 = vmul.f32 %v3615_v3, %v7678_v48  ;;  %v2344_v6 = vmul.f32 %v3615_v3, %v7679_v37  ;;  %v7680_v18 = vld [vmem:[#allocation104_spill] sm:$0xff]  ;;  %v7681_v15 = vld [vmem:[#allocation105_spill] sm:$0xff]  ;;  %v3623_v14 = vpop.eup %3622  ;;  %3654 = vrcp.f32 %v6485_v4 }
 0x22a   : > { %2625 = vst [vmem:[%s6297_s16 + $0x2b8] sm:$0xff] %v2337_v16  ;;  %2626 = vst [vmem:[%s6297_s16 + $0x2c0] sm:$0xff] %v2338_v33  ;;  %v2345_v62 = vmul.f32 %v3615_v3, %v7680_v18  ;;  %v2340_v47 = vmul.f32 %v3617_v11, %v7681_v15  ;;  %v7682_v20 = vld [vmem:[#allocation106_spill] sm:$0xff]  ;;  %v7683_v45 = vld [vmem:[#allocation107_spill] sm:$0xff]  ;;  %v3625_v12 = vpop.eup %3624  ;;  %3656 = vrcp.f32 %v6494_v26 }
 0x22b   : > { %2627 = vst [vmem:[%s6297_s16 + $0x2c8] sm:$0xff] %v2339_v63  ;;  %2622 = vst [vmem:[%s6297_s16 + $0x2a0] sm:$0xff] %v2334_v23  ;;  %v2341_v32 = vmul.f32 %v3617_v11, %v7682_v20  ;;  %v2342_v53 = vmul.f32 %v3617_v11, %v7683_v45  ;;  %v7684_v24 = vld [vmem:[#allocation108_spill] sm:$0xff]  ;;  %v7685_v5 = vld [vmem:[#allocation109_spill] sm:$0xff] }
 0x22c   : > { %2623 = vst [vmem:[%s6297_s16 + $0x2a8] sm:$0xff] %v2335_v59  ;;  %2624 = vst [vmem:[%s6297_s16 + $0x2b0] sm:$0xff] %v2336_v1  ;;  %v2349_v55 = vmul.f32 %v3619_v28, %v7684_v24  ;;  %v2350_v40 = vmul.f32 %v3619_v28, %v7685_v5  ;;  %v7686_v54 = vld [vmem:[#allocation110_spill] sm:$0xff]  ;;  %v7687_v7 = vld [vmem:[#allocation111_spill] sm:$0xff]  ;;  %v3627_v59 = vpop.eup %3626  ;;  %3658 = vrcp.f32 %v6524_v44 }
 0x22d   : > { %2631 = vst [vmem:[%s6297_s16 + $0x2e8] sm:$0xff] %v2343_v38  ;;  %2632 = vst [vmem:[%s6297_s16 + $0x2f0] sm:$0xff] %v2344_v6  ;;  %v2351_v0 = vmul.f32 %v3619_v28, %v7686_v54  ;;  %v2346_v46 = vmul.f32 %v3621_v36, %v7687_v7  ;;  %v7688_v57 = vld [vmem:[#allocation112_spill] sm:$0xff]  ;;  %v7689_v25 = vld [vmem:[#allocation113_spill] sm:$0xff]  ;;  %v3629_v37 = vpop.eup %3628  ;;  %3660 = vrcp.f32 %v6533_v2 }
 0x22e   : > { %2633 = vst [vmem:[%s6297_s16 + $0x2f8] sm:$0xff] %v2345_v62  ;;  %2628 = vst [vmem:[%s6297_s16 + $0x2d0] sm:$0xff] %v2340_v47  ;;  %v2347_v16 = vmul.f32 %v3621_v36, %v7688_v57  ;;  %v2348_v33 = vmul.f32 %v3621_v36, %v7689_v25  ;;  %v7690_v60 = vld [vmem:[#allocation114_spill] sm:$0xff]  ;;  %v7691_v3 = vld [vmem:[#allocation116_spill] sm:$0xff]  ;;  %v1897_v47 = vpop.xlane.xlu1 %1896  ;;  %v3631_v20 = vpop.eup %3630 }
 0x22f   : > { %2629 = vst [vmem:[%s6297_s16 + $0x2d8] sm:$0xff] %v2341_v32  ;;  %2630 = vst [vmem:[%s6297_s16 + $0x2e0] sm:$0xff] %v2342_v53  ;;  %v2355_v63 = vmul.f32 %v3623_v14, %v7690_v60  ;;  %v2356_v17 = vmul.f32 %v3623_v14, %v7691_v3  ;;  %v7692_v23 = vld [vmem:[#allocation117_spill] sm:$0xff]  ;;  %v7693_v34 = vld [vmem:[#allocation118_spill] sm:$0xff]  ;;  %v3633_v5 = vpop.eup %3632  ;;  %3662 = vrcp.f32 %v1897_v47 }
 0x230   : > { %2637 = vst [vmem:[%s6297_s16 + $0x318] sm:$0xff] %v2349_v55  ;;  %2638 = vst [vmem:[%s6297_s16 + $0x320] sm:$0xff] %v2350_v40  ;;  %v2357_v29 = vmul.f32 %v3623_v14, %v7692_v23  ;;  %v2352_v41 = vmul.f32 %v3625_v12, %v7693_v34  ;;  %v7694_v1 = vld [vmem:[#allocation119_spill] sm:$0xff]  ;;  %v7695_v48 = vld [vmem:[#allocation120_spill] sm:$0xff]  ;;  %v1893_v55 = vpop.xlane.xlu0 %1892 }
 0x231   : > { %2639 = vst [vmem:[%s6297_s16 + $0x328] sm:$0xff] %v2351_v0  ;;  %2634 = vst [vmem:[%s6297_s16 + $0x300] sm:$0xff] %v2346_v46  ;;  %v2353_v11 = vmul.f32 %v3625_v12, %v7694_v1  ;;  %v2354_v38 = vmul.f32 %v3625_v12, %v7695_v48  ;;  %v7696_v50 = vld [vmem:[#allocation80_spill] sm:$0xff]  ;;  %v7697_v18 = vld [vmem:[#allocation121_spill] sm:$0xff]  ;;  %v3635_v46 = vpop.eup %3634  ;;  %3664 = vrcp.f32 %v1893_v55 }
 0x232   : > { %2635 = vst [vmem:[%s6297_s16 + $0x308] sm:$0xff] %v2347_v16  ;;  %2636 = vst [vmem:[%s6297_s16 + $0x310] sm:$0xff] %v2348_v33  ;;  %v2361_v6 = vmul.f32 %v3627_v59, %v7696_v50  ;;  %v2362_v62 = vmul.f32 %v3627_v59, %v7697_v18  ;;  %v7698_v28 = vld [vmem:[#allocation122_spill] sm:$0xff]  ;;  %v7699_v27 = vld [vmem:[#allocation123_spill] sm:$0xff]  ;;  %v3637_v60 = vpop.eup %3636 }
 0x233   : > { %2643 = vst [vmem:[%s6297_s16 + $0x348] sm:$0xff] %v2355_v63  ;;  %2644 = vst [vmem:[%s6297_s16 + $0x350] sm:$0xff] %v2356_v17  ;;  %v2363_v15 = vmul.f32 %v3627_v59, %v7698_v28  ;;  %v2358_v32 = vmul.f32 %v3629_v37, %v7699_v27  ;;  %v7700_v45 = vld [vmem:[#allocation82_spill] sm:$0xff]  ;;  %v7701_v36 = vld [vmem:[#allocation124_spill] sm:$0xff]  ;;  %v3639_v59 = vpop.eup %3638 }
 0x234   : > { %2645 = vst [vmem:[%s6297_s16 + $0x358] sm:$0xff] %v2357_v29  ;;  %2640 = vst [vmem:[%s6297_s16 + $0x330] sm:$0xff] %v2352_v41  ;;  %v2359_v53 = vmul.f32 %v3629_v37, %v7700_v45  ;;  %v2360_v24 = vmul.f32 %v3629_v37, %v7701_v36  ;;  %v7702_v56 = vld [vmem:[#allocation125_spill] sm:$0xff]  ;;  %v7703_v54 = vld [vmem:[#allocation127_spill] sm:$0xff]  ;;  %v3641_v37 = vpop.eup %3640 }
 0x235   : > { %2641 = vst [vmem:[%s6297_s16 + $0x338] sm:$0xff] %v2353_v11  ;;  %2642 = vst [vmem:[%s6297_s16 + $0x340] sm:$0xff] %v2354_v38  ;;  %v2367_v40 = vmul.f32 %v3631_v20, %v7702_v56  ;;  %v2368_v0 = vmul.f32 %v3631_v20, %v7703_v54  ;;  %v7704_v14 = vld [vmem:[#allocation128_spill] sm:$0xff]  ;;  %v7705_v22 = vld [vmem:[#allocation129_spill] sm:$0xff]  ;;  %v1905_v38 = vpop.xlane.xlu1 %1904 }
 0x236   : > { %2649 = vst [vmem:[%s6297_s16 + $0x378] sm:$0xff] %v2361_v6  ;;  %2650 = vst [vmem:[%s6297_s16 + $0x380] sm:$0xff] %v2362_v62  ;;  %v2369_v7 = vmul.f32 %v3631_v20, %v7704_v14  ;;  %v2364_v57 = vmul.f32 %v3633_v5, %v7705_v22  ;;  %v7706_v16 = vld [vmem:[#allocation131_spill] sm:$0xff]  ;;  %v7707_v33 = vld [vmem:[#allocation133_spill] sm:$0xff]  ;;  %v3643_v20 = vpop.eup %3642  ;;  %3666 = vrcp.f32 %v1905_v38 }
 0x237   : > { %2651 = vst [vmem:[%s6297_s16 + $0x388] sm:$0xff] %v2363_v15  ;;  %2646 = vst [vmem:[%s6297_s16 + $0x360] sm:$0xff] %v2358_v32  ;;  %v2365_v25 = vmul.f32 %v3633_v5, %v7706_v16  ;;  %v2366_v12 = vmul.f32 %v3633_v5, %v7707_v33  ;;  %v7708_v52 = vld [vmem:[#allocation134_spill] sm:$0xff]  ;;  %v7709_v3 = vld [vmem:[#allocation135_spill] sm:$0xff]  ;;  %v1901_v15 = vpop.xlane.xlu0 %1900 }
 0x238   : > { %2647 = vst [vmem:[%s6297_s16 + $0x368] sm:$0xff] %v2359_v53  ;;  %2648 = vst [vmem:[%s6297_s16 + $0x370] sm:$0xff] %v2360_v24  ;;  %v2373_v63 = vmul.f32 %v3635_v46, %v7708_v52  ;;  %v2374_v17 = vmul.f32 %v3635_v46, %v7709_v3  ;;  %v7710_v23 = vld [vmem:[#allocation136_spill] sm:$0xff]  ;;  %v7711_v4 = vld [vmem:[#allocation137_spill] sm:$0xff]  ;;  %v3645_v24 = vpop.eup %3644  ;;  %3668 = vrcp.f32 %v1901_v15 }
 0x239   : > { %2655 = vst [vmem:[%s6297_s16 + $0x3a8] sm:$0xff] %v2367_v40  ;;  %2656 = vst [vmem:[%s6297_s16 + $0x3b0] sm:$0xff] %v2368_v0  ;;  %v2375_v29 = vmul.f32 %v3635_v46, %v7710_v23  ;;  %v2370_v34 = vmul.f32 %v3637_v60, %v7711_v4  ;;  %v7712_v41 = vld [vmem:[#allocation138_spill] sm:$0xff]  ;;  %v7713_v11 = vld [vmem:[#allocation139_spill] sm:$0xff]  ;;  %v3647_v14 = vpop.eup %3646  ;;  %v1913_v3 = vpop.xlane.xlu1 %1912 }
 0x23a   : > { %2657 = vst [vmem:[%s6297_s16 + $0x3b8] sm:$0xff] %v2369_v7  ;;  %2652 = vst [vmem:[%s6297_s16 + $0x390] sm:$0xff] %v2364_v57  ;;  %v2371_v1 = vmul.f32 %v3637_v60, %v7712_v41  ;;  %v2372_v48 = vmul.f32 %v3637_v60, %v7713_v11  ;;  %v7714_v26 = vld [vmem:[#allocation140_spill] sm:$0xff]  ;;  %v7715_v6 = vld [vmem:[#allocation141_spill] sm:$0xff]  ;;  %3670 = vrcp.f32 %v1913_v3 }
 0x23b   : > { %2653 = vst [vmem:[%s6297_s16 + $0x398] sm:$0xff] %v2365_v25  ;;  %2654 = vst [vmem:[%s6297_s16 + $0x3a0] sm:$0xff] %v2366_v12  ;;  %v2379_v50 = vmul.f32 %v3639_v59, %v7714_v26  ;;  %v2380_v18 = vmul.f32 %v3639_v59, %v7715_v6  ;;  %v7716_v62 = vld [vmem:[#allocation142_spill] sm:$0xff]  ;;  %v7717_v44 = vld [vmem:[#allocation143_spill] sm:$0xff]  ;;  %v3649_v25 = vpop.eup %3648 }
 0x23c   : > { %2661 = vst [vmem:[%s6297_s16 + $0x3d8] sm:$0xff] %v2373_v63  ;;  %2662 = vst [vmem:[%s6297_s16 + $0x3e0] sm:$0xff] %v2374_v17  ;;  %v2381_v28 = vmul.f32 %v3639_v59, %v7716_v62  ;;  %v2376_v27 = vmul.f32 %v3641_v37, %v7717_v44  ;;  %v7718_v32 = vld [vmem:[#allocation144_spill] sm:$0xff]  ;;  %v7719_v53 = vld [vmem:[#allocation145_spill] sm:$0xff]  ;;  %v3651_v17 = vpop.eup %3650 }
 0x23d   : > { %2663 = vst [vmem:[%s6297_s16 + $0x3e8] sm:$0xff] %v2375_v29  ;;  %2658 = vst [vmem:[%s6297_s16 + $0x3c0] sm:$0xff] %v2370_v34  ;;  %v2377_v45 = vmul.f32 %v3641_v37, %v7718_v32  ;;  %v2378_v36 = vmul.f32 %v3641_v37, %v7719_v53  ;;  %v7720_v2 = vld [vmem:[#allocation146_spill] sm:$0xff]  ;;  %v7721_v56 = vld [vmem:[#allocation147_spill] sm:$0xff]  ;;  %v3653_v11 = vpop.eup %3652 }
 0x23e   : > { %2659 = vst [vmem:[%s6297_s16 + $0x3c8] sm:$0xff] %v2371_v1  ;;  %2660 = vst [vmem:[%s6297_s16 + $0x3d0] sm:$0xff] %v2372_v48  ;;  %v2385_v5 = vmul.f32 %v3643_v20, %v7720_v2  ;;  %v2386_v40 = vmul.f32 %v3643_v20, %v7721_v56  ;;  %v7722_v54 = vld [vmem:[#allocation148_spill] sm:$0xff]  ;;  %v7723_v47 = vld [vmem:[#allocation149_spill] sm:$0xff]  ;;  %v1909_v1 = vpop.xlane.xlu0 %1908 }
 0x23f   : > { %2667 = vst [vmem:[%s6297_s16 + $0x408] sm:$0xff] %v2379_v50  ;;  %2668 = vst [vmem:[%s6297_s16 + $0x410] sm:$0xff] %v2380_v18  ;;  %v2387_v0 = vmul.f32 %v3643_v20, %v7722_v54  ;;  %v2382_v7 = vmul.f32 %v3645_v24, %v7723_v47  ;;  %v7724_v46 = vld [vmem:[#allocation150_spill] sm:$0xff]  ;;  %v7725_v57 = vld [vmem:[#allocation151_spill] sm:$0xff]  ;;  %3672 = vrcp.f32 %v1909_v1  ;;  %v3655_v18 = vpop.eup %3654 }
 0x240   : > { %2669 = vst [vmem:[%s6297_s16 + $0x418] sm:$0xff] %v2381_v28  ;;  %2664 = vst [vmem:[%s6297_s16 + $0x3f0] sm:$0xff] %v2376_v27  ;;  %v2383_v22 = vmul.f32 %v3645_v24, %v7724_v46  ;;  %v2384_v16 = vmul.f32 %v3645_v24, %v7725_v57  ;;  %v7726_v33 = vld [vmem:[#allocation152_spill] sm:$0xff]  ;;  %v7727_v12 = vld [vmem:[#allocation153_spill] sm:$0xff]  ;;  %v3657_v32 = vpop.eup %3656 }
 0x241   : > { %2665 = vst [vmem:[%s6297_s16 + $0x3f8] sm:$0xff] %v2377_v45  ;;  %2666 = vst [vmem:[%s6297_s16 + $0x400] sm:$0xff] %v2378_v36  ;;  %v2391_v55 = vmul.f32 %v3647_v14, %v7726_v33  ;;  %v2392_v60 = vmul.f32 %v3647_v14, %v7727_v12  ;;  %v7728_v52 = vld [vmem:[#allocation154_spill] sm:$0xff]  ;;  %v7729_v23 = vld [vmem:[#allocation155_spill] sm:$0xff]  ;;  %v3659_v56 = vpop.eup %3658  ;;  %v1921_v12 = vpop.xlane.xlu1 %1920 }
 0x242   : > { %2673 = vst [vmem:[%s6297_s16 + $0x438] sm:$0xff] %v2385_v5  ;;  %2674 = vst [vmem:[%s6297_s16 + $0x440] sm:$0xff] %v2386_v40  ;;  %v2393_v63 = vmul.f32 %v3647_v14, %v7728_v52  ;;  %v2388_v29 = vmul.f32 %v3649_v25, %v7729_v23  ;;  %v7730_v59 = vld [vmem:[#allocation156_spill] sm:$0xff]  ;;  %v7731_v34 = vld [vmem:[#allocation157_spill] sm:$0xff]  ;;  %v3661_v46 = vpop.eup %3660  ;;  %3674 = vrcp.f32 %v1921_v12 }
 0x243   : > { %2675 = vst [vmem:[%s6297_s16 + $0x448] sm:$0xff] %v2387_v0  ;;  %2670 = vst [vmem:[%s6297_s16 + $0x420] sm:$0xff] %v2382_v7  ;;  %v2389_v4 = vmul.f32 %v3649_v25, %v7730_v59  ;;  %v2390_v41 = vmul.f32 %v3649_v25, %v7731_v34  ;;  %v7732_v48 = vld [vmem:[#allocation158_spill] sm:$0xff]  ;;  %v7733_v37 = vld [vmem:[#allocation159_spill] sm:$0xff]  ;;  %v1917_v59 = vpop.xlane.xlu0 %1916 }
 0x244   : > { %2671 = vst [vmem:[%s6297_s16 + $0x428] sm:$0xff] %v2383_v22  ;;  %2672 = vst [vmem:[%s6297_s16 + $0x430] sm:$0xff] %v2384_v16  ;;  %v2397_v38 = vmul.f32 %v3651_v17, %v7732_v48  ;;  %v2398_v26 = vmul.f32 %v3651_v17, %v7733_v37  ;;  %v7734_v50 = vld [vmem:[#allocation160_spill] sm:$0xff]  ;;  %v7735_v62 = vld [vmem:[#allocation161_spill] sm:$0xff]  ;;  %3676 = vrcp.f32 %v1917_v59 }
 0x245   : > { %2679 = vst [vmem:[%s6297_s16 + $0x468] sm:$0xff] %v2391_v55  ;;  %2680 = vst [vmem:[%s6297_s16 + $0x470] sm:$0xff] %v2392_v60  ;;  %v2399_v6 = vmul.f32 %v3651_v17, %v7734_v50  ;;  %v2394_v28 = vmul.f32 %v3653_v11, %v7735_v62  ;;  %v7736_v15 = vld [vmem:[#allocation162_spill] sm:$0xff]  ;;  %v7737_v44 = vld [vmem:[#allocation163_spill] sm:$0xff]  ;;  %v3663_v60 = vpop.eup %3662 }
 0x246   : > { %2681 = vst [vmem:[%s6297_s16 + $0x478] sm:$0xff] %v2393_v63  ;;  %2676 = vst [vmem:[%s6297_s16 + $0x450] sm:$0xff] %v2388_v29  ;;  %v2395_v20 = vmul.f32 %v3653_v11, %v7736_v15  ;;  %v2396_v27 = vmul.f32 %v3653_v11, %v7737_v44  ;;  %v7738_v45 = vld [vmem:[#allocation164_spill] sm:$0xff]  ;;  %v7739_v36 = vld [vmem:[#allocation166_spill] sm:$0xff] }
 0x247   : > { %2677 = vst [vmem:[%s6297_s16 + $0x458] sm:$0xff] %v2389_v4  ;;  %2678 = vst [vmem:[%s6297_s16 + $0x460] sm:$0xff] %v2390_v41  ;;  %v2403_v53 = vmul.f32 %v3655_v18, %v7738_v45  ;;  %v2404_v24 = vmul.f32 %v3655_v18, %v7739_v36  ;;  %v7740_v2 = vld [vmem:[#allocation167_spill] sm:$0xff]  ;;  %v7741_v40 = vld [vmem:[#allocation168_spill] sm:$0xff]  ;;  %v3665_v4 = vpop.eup %3664 }
 0x248   : > { %2685 = vst [vmem:[%s6297_s16 + $0x498] sm:$0xff] %v2397_v38  ;;  %2686 = vst [vmem:[%s6297_s16 + $0x4a0] sm:$0xff] %v2398_v26  ;;  %v2405_v5 = vmul.f32 %v3655_v18, %v7740_v2  ;;  %v2400_v54 = vmul.f32 %v3657_v32, %v7741_v40  ;;  %v7742_v0 = vld [vmem:[#allocation169_spill] sm:$0xff]  ;;  %v7743_v47 = vld [vmem:[#allocation170_spill] sm:$0xff]  ;;  %v3667_v37 = vpop.eup %3666  ;;  %v2414_v62 = vmul.f32 %v3665_v4, %v5595_v9 }
 0x249   : > { %2687 = vst [vmem:[%s6297_s16 + $0x4a8] sm:$0xff] %v2399_v6  ;;  %2682 = vst [vmem:[%s6297_s16 + $0x480] sm:$0xff] %v2394_v28  ;;  %v2401_v14 = vmul.f32 %v3657_v32, %v7742_v0  ;;  %v2402_v7 = vmul.f32 %v3657_v32, %v7743_v47  ;;  %v7744_v22 = vld [vmem:[#allocation74_spill] sm:$0xff]  ;;  %v7745_v16 = vld [vmem:[#allocation171_spill] sm:$0xff]  ;;  %v3669_v28 = vpop.eup %3668  ;;  %v2421_v15 = vmul.f32 %v3667_v37, %v5600_v43 }
 0x24a   : > { %2683 = vst [vmem:[%s6297_s16 + $0x488] sm:$0xff] %v2395_v20  ;;  %2684 = vst [vmem:[%s6297_s16 + $0x490] sm:$0xff] %v2396_v27  ;;  %v2409_v57 = vmul.f32 %v3659_v56, %v7744_v22  ;;  %v2410_v25 = vmul.f32 %v3659_v56, %v7745_v16  ;;  %v7746_v33 = vld [vmem:[#allocation172_spill] sm:$0xff]  ;;  %v7747_v52 = vld [vmem:[#allocation174_spill] sm:$0xff]  ;;  %v3671_v45 = vpop.eup %3670 }
 0x24b   : > { %2691 = vst [vmem:[%s6297_s16 + $0x4c8] sm:$0xff] %v2403_v53  ;;  %2692 = vst [vmem:[%s6297_s16 + $0x4d0] sm:$0xff] %v2404_v24  ;;  %v2411_v55 = vmul.f32 %v3659_v56, %v7746_v33  ;;  %v2406_v63 = vmul.f32 %v3661_v46, %v7747_v52  ;;  %v7748_v3 = vld [vmem:[#allocation115_spill] sm:$0xff]  ;;  %v7750_v34 = vld [vmem:[#allocation176_spill] sm:$0xff]  ;;  %v1929_v56 = vpop.xlane.xlu1 %1928  ;;  %v3673_v40 = vpop.eup %3672 }
 0x24c   : > { %2693 = vst [vmem:[%s6297_s16 + $0x4d8] sm:$0xff] %v2405_v5  ;;  %2688 = vst [vmem:[%s6297_s16 + $0x4b0] sm:$0xff] %v2400_v54  ;;  %v2407_v17 = vmul.f32 %v3661_v46, %v7748_v3  ;;  %v7749_v23 = vld [vmem:[#allocation175_spill] sm:$0xff]  ;;  %v2415_v41 = vmul.f32 %v3663_v60, %v7750_v34  ;;  %v7751_v1 = vld [vmem:[#allocation177_spill] sm:$0xff]  ;;  %3678 = vrcp.f32 %v1929_v56 }
 0x24d   : > { %2689 = vst [vmem:[%s6297_s16 + $0x4b8] sm:$0xff] %v2401_v14  ;;  %2690 = vst [vmem:[%s6297_s16 + $0x4c0] sm:$0xff] %v2402_v7  ;;  %v2408_v29 = vmul.f32 %v3661_v46, %v7749_v23  ;;  %v2416_v11 = vmul.f32 %v3663_v60, %v7751_v1  ;;  %v7752_v48 = vld [vmem:[#allocation178_spill] sm:$0xff]  ;;  %v7753_v26 = vld [vmem:[#allocation179_spill] sm:$0xff]  ;;  %v1925_v46 = vpop.xlane.xlu0 %1924 }
 0x24e   : > { %2697 = vst [vmem:[%s6297_s16 + $0x4f8] sm:$0xff] %v2409_v57  ;;  %2698 = vst [vmem:[%s6297_s16 + $0x500] sm:$0xff] %v2410_v25  ;;  %v2417_v38 = vmul.f32 %v3663_v60, %v7752_v48  ;;  %v2412_v50 = vmul.f32 %v3665_v4, %v7753_v26  ;;  %v7754_v6 = vld [vmem:[#allocation180_spill] sm:$0xff]  ;;  %v7755_v20 = vld [vmem:[#allocation182_spill] sm:$0xff]  ;;  %3680 = vrcp.f32 %v1925_v46  ;;  %v3675_v60 = vpop.eup %3674 }
 0x24f   : > { %2699 = vst [vmem:[%s6297_s16 + $0x508] sm:$0xff] %v2411_v55  ;;  %2694 = vst [vmem:[%s6297_s16 + $0x4e0] sm:$0xff] %v2406_v63  ;;  %v2413_v18 = vmul.f32 %v3665_v4, %v7754_v6  ;;  %v2422_v44 = vmul.f32 %v3667_v37, %v7755_v20  ;;  %v7756_v27 = vld [vmem:[#allocation183_spill] sm:$0xff]  ;;  %v7757_v9 = vld [vmem:[#allocation184_spill] sm:$0xff]  ;;  %v1937_v12 = vpop.xlane.xlu1 %1936  ;;  %v3677_v63 = vpop.eup %3676 }
 0x250   : > { %2695 = vst [vmem:[%s6297_s16 + $0x4e8] sm:$0xff] %v2407_v17  ;;  %2696 = vst [vmem:[%s6297_s16 + $0x4f0] sm:$0xff] %v2408_v29  ;;  %v2423_v32 = vmul.f32 %v3667_v37, %v7756_v27  ;;  %v2418_v53 = vmul.f32 %v3669_v28, %v7757_v9  ;;  %v7758_v36 = vld [vmem:[#allocation185_spill] sm:$0xff]  ;;  %v7759_v2 = vld [vmem:[#allocation186_spill] sm:$0xff]  ;;  %3682 = vrcp.f32 %v1937_v12 }
 0x251   : > { %2703 = vst [vmem:[%s6297_s16 + $0x528] sm:$0xff] %v2415_v41  ;;  %2704 = vst [vmem:[%s6297_s16 + $0x530] sm:$0xff] %v2416_v11  ;;  %v2419_v24 = vmul.f32 %v3669_v28, %v7758_v36  ;;  %v2420_v5 = vmul.f32 %v3669_v28, %v7759_v2  ;;  %v7760_v43 = vld [vmem:[#allocation187_spill] sm:$0xff]  ;;  %v7761_v0 = vld [vmem:[#allocation188_spill] sm:$0xff]  ;;  %v1933_v52 = vpop.xlane.xlu0 %1932 }
 0x252   : > { %2705 = vst [vmem:[%s6297_s16 + $0x538] sm:$0xff] %v2417_v38  ;;  %2700 = vst [vmem:[%s6297_s16 + $0x510] sm:$0xff] %v2412_v50  ;;  %v2427_v54 = vmul.f32 %v3671_v45, %v7760_v43  ;;  %v2428_v14 = vmul.f32 %v3671_v45, %v7761_v0  ;;  %v7762_v47 = vld [vmem:[#allocation189_spill] sm:$0xff]  ;;  %v7763_v22 = vld [vmem:[#allocation126_spill] sm:$0xff]  ;;  %3684 = vrcp.f32 %v1933_v52 }
 0x253   : > { %2701 = vst [vmem:[%s6297_s16 + $0x518] sm:$0xff] %v2413_v18  ;;  %2702 = vst [vmem:[%s6297_s16 + $0x520] sm:$0xff] %v2414_v62  ;;  %v2429_v7 = vmul.f32 %v3671_v45, %v7762_v47  ;;  %v2424_v57 = vmul.f32 %v3673_v40, %v7763_v22  ;;  %v7764_v16 = vld [vmem:[#allocation190_spill] sm:$0xff]  ;;  %v7765_v33 = vld [vmem:[#allocation191_spill] sm:$0xff]  ;;  %v1945_v26 = vpop.xlane.xlu1 %1944 }
 0x254   : > { %2709 = vst [vmem:[%s6297_s16 + $0x558] sm:$0xff] %v2421_v15  ;;  %2710 = vst [vmem:[%s6297_s16 + $0x560] sm:$0xff] %v2422_v44  ;;  %v2425_v25 = vmul.f32 %v3673_v40, %v7764_v16  ;;  %v2426_v55 = vmul.f32 %v3673_v40, %v7765_v33  ;;  %v7766_v3 = vld [vmem:[#allocation192_spill] sm:$0xff]  ;;  %v7767_v23 = vld [vmem:[#allocation130_spill] sm:$0xff]  ;;  %3686 = vrcp.f32 %v1945_v26 }
 0x255   : > { %2711 = vst [vmem:[%s6297_s16 + $0x568] sm:$0xff] %v2423_v32  ;;  %2706 = vst [vmem:[%s6297_s16 + $0x540] sm:$0xff] %v2418_v53  ;;  %v2433_v17 = vmul.f32 %v3675_v60, %v7766_v3  ;;  %v2434_v29 = vmul.f32 %v3675_v60, %v7767_v23  ;;  %v7768_v59 = vld [vmem:[#allocation193_spill] sm:$0xff]  ;;  %v7769_v34 = vld [vmem:[#allocation194_spill] sm:$0xff]  ;;  %v1941_v44 = vpop.xlane.xlu0 %1940 }
 0x256   : > { %2707 = vst [vmem:[%s6297_s16 + $0x548] sm:$0xff] %v2419_v24  ;;  %2708 = vst [vmem:[%s6297_s16 + $0x550] sm:$0xff] %v2420_v5  ;;  %v2435_v4 = vmul.f32 %v3675_v60, %v7768_v59  ;;  %v2430_v41 = vmul.f32 %v3677_v63, %v7769_v34  ;;  %v7770_v1 = vld [vmem:[#allocation196_spill] sm:$0xff]  ;;  %v7771_v48 = vld [vmem:[#allocation197_spill] sm:$0xff]  ;;  %v3679_v37 = vpop.eup %3678  ;;  %3688 = vrcp.f32 %v1941_v44 }
 0x257   : > { %2715 = vst [vmem:[%s6297_s16 + $0x588] sm:$0xff] %v2427_v54  ;;  %2716 = vst [vmem:[%s6297_s16 + $0x590] sm:$0xff] %v2428_v14  ;;  %v2431_v11 = vmul.f32 %v3677_v63, %v7770_v1  ;;  %v2432_v38 = vmul.f32 %v3677_v63, %v7771_v48  ;;  %v7772_v6 = vld [vmem:[#allocation198_spill] sm:$0xff]  ;;  %v7773_v62 = vld [vmem:[#allocation199_spill] sm:$0xff]  ;;  %v1953_v24 = vpop.xlane.xlu1 %1952 }
 0x258   : > { %2717 = vst [vmem:[%s6297_s16 + $0x598] sm:$0xff] %v2429_v7  ;;  %2712 = vst [vmem:[%s6297_s16 + $0x570] sm:$0xff] %v2424_v57  ;;  %v3681_v50 = vpop.eup %3680  ;;  %v2439_v18 = vmul.f32 %v3679_v37, %v7772_v6  ;;  %v2440_v28 = vmul.f32 %v3679_v37, %v7773_v62  ;;  %v7774_v15 = vld [vmem:[#allocation200_spill] sm:$0xff]  ;;  %v7775_v27 = vld [vmem:[#allocation201_spill] sm:$0xff]  ;;  %3690 = vrcp.f32 %v1953_v24 }
 0x259   : > { %2713 = vst [vmem:[%s6297_s16 + $0x578] sm:$0xff] %v2425_v25  ;;  %2714 = vst [vmem:[%s6297_s16 + $0x580] sm:$0xff] %v2426_v55  ;;  %v2441_v20 = vmul.f32 %v3679_v37, %v7774_v15  ;;  %v2436_v32 = vmul.f32 %v3681_v50, %v7775_v27  ;;  %v7776_v45 = vld [vmem:[#allocation202_spill] sm:$0xff]  ;;  %v2438_v53 = vmul.f32 %v3681_v50, %v5733_v10  ;;  %v7777_v5 = vld [vmem:[#allocation203_spill] sm:$0xff]  ;;  %v1949_v0 = vpop.xlane.xlu0 %1948 }
 0x25a   : > { %2721 = vst [vmem:[%s6297_s16 + $0x5b8] sm:$0xff] %v2433_v17  ;;  %2722 = vst [vmem:[%s6297_s16 + $0x5c0] sm:$0xff] %v2434_v29  ;;  %v2437_v9 = vmul.f32 %v3681_v50, %v7776_v45  ;;  %v3683_v36 = vpop.eup %3682  ;;  %v7778_v40 = vld [vmem:[#allocation204_spill] sm:$0xff]  ;;  %v7779_v43 = vld [vmem:[#allocation205_spill] sm:$0xff]  ;;  %3692 = vrcp.f32 %v1949_v0 }
 0x25b   : > { %2723 = vst [vmem:[%s6297_s16 + $0x5c8] sm:$0xff] %v2435_v4  ;;  %2718 = vst [vmem:[%s6297_s16 + $0x5a0] sm:$0xff] %v2430_v41  ;;  %v2445_v56 = vmul.f32 %v3683_v36, %v7777_v5  ;;  %v2446_v10 = vmul.f32 %v3683_v36, %v7778_v40  ;;  %v2447_v54 = vmul.f32 %v3683_v36, %v7779_v43  ;;  %v7780_v14 = vld [vmem:[#allocation206_spill] sm:$0xff]  ;;  %v7781_v7 = vld [vmem:[#allocation207_spill] sm:$0xff]  ;;  %v1961_v16 = vpop.xlane.xlu1 %1960 }
 0x25c   : > { %2719 = vst [vmem:[%s6297_s16 + $0x5a8] sm:$0xff] %v2431_v11  ;;  %2720 = vst [vmem:[%s6297_s16 + $0x5b0] sm:$0xff] %v2432_v38  ;;  %v3685_v2 = vpop.eup %3684  ;;  %v7782_v22 = vld [vmem:[#allocation208_spill] sm:$0xff]  ;;  %3694 = vrcp.f32 %v1961_v16  ;;  %v7783_v12 = vld [vmem:[#allocation209_spill] sm:$0xff] }
 0x25d   : > { %2727 = vst [vmem:[%s6297_s16 + $0x5e8] sm:$0xff] %v2439_v18  ;;  %2728 = vst [vmem:[%s6297_s16 + $0x5f0] sm:$0xff] %v2440_v28  ;;  %v2442_v47 = vmul.f32 %v3685_v2, %v7780_v14  ;;  %v2443_v46 = vmul.f32 %v3685_v2, %v7781_v7  ;;  %v2444_v57 = vmul.f32 %v3685_v2, %v7782_v22  ;;  %v1957_v33 = vpop.xlane.xlu0 %1956  ;;  %v7784_v52 = vld [vmem:[#allocation210_spill] sm:$0xff]  ;;  %v7785_v3 = vld [vmem:[#allocation211_spill] sm:$0xff] }
 0x25e   : > { %2729 = vst [vmem:[%s6297_s16 + $0x5f8] sm:$0xff] %v2441_v20  ;;  %2724 = vst [vmem:[%s6297_s16 + $0x5d0] sm:$0xff] %v2436_v32  ;;  %v3687_v25 = vpop.eup %3686  ;;  %3696 = vrcp.f32 %v1957_v33  ;;  %v7786_v23 = vld [vmem:[#allocation212_spill] sm:$0xff]  ;;  %v7787_v59 = vld [vmem:[#allocation213_spill] sm:$0xff] }
 0x25f   : > { %2725 = vst [vmem:[%s6297_s16 + $0x5d8] sm:$0xff] %v2437_v9  ;;  %2726 = vst [vmem:[%s6297_s16 + $0x5e0] sm:$0xff] %v2438_v53  ;;  %v2451_v60 = vmul.f32 %v3687_v25, %v7783_v12  ;;  %v2452_v63 = vmul.f32 %v3687_v25, %v7784_v52  ;;  %v2453_v17 = vmul.f32 %v3687_v25, %v7785_v3  ;;  %v7788_v34 = vld [vmem:[#allocation214_spill] sm:$0xff]  ;;  %v1969_v1 = vpop.xlane.xlu1 %1968  ;;  %v7789_v37 = vld [vmem:[#allocation215_spill] sm:$0xff] }
 0x260   : > { %2733 = vst [vmem:[%s6297_s16 + $0x618] sm:$0xff] %v2445_v56  ;;  %2734 = vst [vmem:[%s6297_s16 + $0x620] sm:$0xff] %v2446_v10  ;;  %v3689_v55 = vpop.eup %3688  ;;  %3698 = vrcp.f32 %v1969_v1  ;;  %v7790_v50 = vld [vmem:[#allocation216_spill] sm:$0xff]  ;;  %v7791_v18 = vld [vmem:[#allocation217_spill] sm:$0xff] }
 0x261   : > { %2735 = vst [vmem:[%s6297_s16 + $0x628] sm:$0xff] %v2447_v54  ;;  %2730 = vst [vmem:[%s6297_s16 + $0x600] sm:$0xff] %v2442_v47  ;;  %v2448_v29 = vmul.f32 %v3689_v55, %v7786_v23  ;;  %v2449_v4 = vmul.f32 %v3689_v55, %v7787_v59  ;;  %v2450_v41 = vmul.f32 %v3689_v55, %v7788_v34  ;;  %v1965_v11 = vpop.xlane.xlu0 %1964  ;;  %v7792_v28 = vld [vmem:[#allocation218_spill] sm:$0xff]  ;;  %v7793_v20 = vld [vmem:[#allocation219_spill] sm:$0xff] }
 0x262   : > { %2731 = vst [vmem:[%s6297_s16 + $0x608] sm:$0xff] %v2443_v46  ;;  %2732 = vst [vmem:[%s6297_s16 + $0x610] sm:$0xff] %v2444_v57  ;;  %v3691_v48 = vpop.eup %3690  ;;  %3700 = vrcp.f32 %v1965_v11  ;;  %v7794_v24 = vld [vmem:[#allocation220_spill] sm:$0xff]  ;;  %v7795_v56 = vld [vmem:[#allocation221_spill] sm:$0xff] }
 0x263   : > { %2739 = vst [vmem:[%s6297_s16 + $0x648] sm:$0xff] %v2451_v60  ;;  %2740 = vst [vmem:[%s6297_s16 + $0x650] sm:$0xff] %v2452_v63  ;;  %v2457_v26 = vmul.f32 %v3691_v48, %v7789_v37  ;;  %v2458_v6 = vmul.f32 %v3691_v48, %v7790_v50  ;;  %v2459_v62 = vmul.f32 %v3691_v48, %v7791_v18  ;;  %v1977_v32 = vpop.xlane.xlu1 %1976  ;;  %v7796_v10 = vld [vmem:[#allocation222_spill] sm:$0xff]  ;;  %v7797_v54 = vld [vmem:[#allocation223_spill] sm:$0xff] }
 0x264   : > { %2741 = vst [vmem:[%s6297_s16 + $0x658] sm:$0xff] %v2453_v17  ;;  %2736 = vst [vmem:[%s6297_s16 + $0x630] sm:$0xff] %v2448_v29  ;;  %v3693_v38 = vpop.eup %3692  ;;  %3702 = vrcp.f32 %v1977_v32  ;;  %v7798_v47 = vld [vmem:[#allocation224_spill] sm:$0xff]  ;;  %v7799_v46 = vld [vmem:[#allocation225_spill] sm:$0xff] }
 0x265   : > { %2737 = vst [vmem:[%s6297_s16 + $0x638] sm:$0xff] %v2449_v4  ;;  %2738 = vst [vmem:[%s6297_s16 + $0x640] sm:$0xff] %v2450_v41  ;;  %v2454_v15 = vmul.f32 %v3693_v38, %v7792_v28  ;;  %v2455_v44 = vmul.f32 %v3693_v38, %v7793_v20  ;;  %v2456_v27 = vmul.f32 %v3693_v38, %v5841_v19  ;;  %v1973_v45 = vpop.xlane.xlu0 %1972  ;;  %v7800_v33 = vld [vmem:[#allocation226_spill] sm:$0xff]  ;;  %v7801_v12 = vld [vmem:[#allocation227_spill] sm:$0xff] }
 0x266   : > { %2745 = vst [vmem:[%s6297_s16 + $0x678] sm:$0xff] %v2457_v26  ;;  %2746 = vst [vmem:[%s6297_s16 + $0x680] sm:$0xff] %v2458_v6  ;;  %3704 = vrcp.f32 %v1973_v45  ;;  %v3695_v9 = vpop.eup %3694  ;;  %v7803_v17 = vld [vmem:[#allocation229_spill] sm:$0xff]  ;;  %v7804_v4 = vld [vmem:[#allocation230_spill] sm:$0xff] }
 0x267   : > { %2747 = vst [vmem:[%s6297_s16 + $0x688] sm:$0xff] %v2459_v62  ;;  %2742 = vst [vmem:[%s6297_s16 + $0x660] sm:$0xff] %v2454_v15  ;;  %v2463_v36 = vmul.f32 %v3695_v9, %v5848_v30  ;;  %v2464_v19 = vmul.f32 %v3695_v9, %v5855_v21  ;;  %v2465_v2 = vmul.f32 %v3695_v9, %v7794_v24  ;;  %v1985_v5 = vpop.xlane.xlu1 %1984  ;;  %v7805_v41 = vld [vmem:[#allocation231_spill] sm:$0xff]  ;;  %v7806_v11 = vld [vmem:[#allocation232_spill] sm:$0xff] }
 0x268   : > { %2743 = vst [vmem:[%s6297_s16 + $0x668] sm:$0xff] %v2455_v44  ;;  %2744 = vst [vmem:[%s6297_s16 + $0x670] sm:$0xff] %v2456_v27  ;;  %v3697_v53 = vpop.eup %3696  ;;  %3706 = vrcp.f32 %v1985_v5  ;;  %v7807_v26 = vld [vmem:[#allocation233_spill] sm:$0xff]  ;;  %v7808_v6 = vld [vmem:[#allocation234_spill] sm:$0xff] }
 0x269   : > { %v2460_v40 = vmul.f32 %v3697_v53, %v7795_v56  ;;  %v2461_v43 = vmul.f32 %v3697_v53, %v7796_v10  ;;  %v2462_v0 = vmul.f32 %v3697_v53, %v7797_v54  ;;  %v1981_v14 = vpop.xlane.xlu0 %1980  ;;  %2751 = vst [vmem:[%s6297_s16 + $0x6a8] sm:$0xff] %v2463_v36  ;;  %2752 = vst [vmem:[%s6297_s16 + $0x6b0] sm:$0xff] %v2464_v19  ;;  %v7809_v62 = vld [vmem:[#allocation235_spill] sm:$0xff]  ;;  %v7810_v15 = vld [vmem:[#allocation236_spill] sm:$0xff] }
 0x26a   : > { %2753 = vst [vmem:[%s6297_s16 + $0x6b8] sm:$0xff] %v2465_v2  ;;  %3708 = vrcp.f32 %v1981_v14  ;;  %v3699_v30 = vpop.eup %3698  ;;  %v7811_v44 = vld [vmem:[#allocation165_spill] sm:$0xff]  ;;  %v7813_v19 = vld [vmem:[#allocation238_spill] sm:$0xff]  ;;  %v7814_v2 = vld [vmem:[#allocation239_spill] sm:$0xff] }
 0x26b   : > { %2748 = vst [vmem:[%s6297_s16 + $0x690] sm:$0xff] %v2460_v40  ;;  %2749 = vst [vmem:[%s6297_s16 + $0x698] sm:$0xff] %v2461_v43  ;;  %v2469_v7 = vmul.f32 %v3699_v30, %v7798_v47  ;;  %v2470_v22 = vmul.f32 %v3699_v30, %v7799_v46  ;;  %v2471_v57 = vmul.f32 %v3699_v30, %v5893_v49  ;;  %v1993_v16 = vpop.xlane.xlu1 %1992  ;;  %v7812_v32 = vld [vmem:[#allocation237_spill] sm:$0xff]  ;;  %v7815_v56 = vld [vmem:[#allocation240_spill] sm:$0xff] }
 0x26c   : > { %2750 = vst [vmem:[%s6297_s16 + $0x6a0] sm:$0xff] %v2462_v0  ;;  %v3701_v21 = vpop.eup %3700  ;;  %3710 = vrcp.f32 %v1993_v16  ;;  %v7816_v43 = vld [vmem:[#allocation241_spill] sm:$0xff]  ;;  %v7817_v0 = vld [vmem:[#allocation242_spill] sm:$0xff]  ;;  %v7818_v30 = vld [vmem:[#allocation243_spill] sm:$0xff] }
 0x26d   : > { %v2466_v25 = vmul.f32 %v3701_v21, %v5901_v51  ;;  %v2467_v55 = vmul.f32 %v3701_v21, %v7800_v33  ;;  %v2468_v60 = vmul.f32 %v3701_v21, %v7801_v12  ;;  %v1989_v52 = vpop.xlane.xlu0 %1988  ;;  %2757 = vst [vmem:[%s6297_s16 + $0x6d8] sm:$0xff] %v2469_v7  ;;  %2758 = vst [vmem:[%s6297_s16 + $0x6e0] sm:$0xff] %v2470_v22  ;;  %v7802_v51 = vld [vmem:[#allocation228_spill] sm:$0xff]  ;;  %v7822_v12 = vld [vmem:[#allocation247_spill] sm:$0xff] }
 0x26e   : > { %2759 = vst [vmem:[%s6297_s16 + $0x6e8] sm:$0xff] %v2471_v57  ;;  %3712 = vrcp.f32 %v1989_v52  ;;  %v3703_v63 = vpop.eup %3702  ;;  %v7819_v46 = vld [vmem:[#allocation244_spill] sm:$0xff]  ;;  %v7820_v57 = vld [vmem:[#allocation245_spill] sm:$0xff] }
 0x26f   : > { %2754 = vst [vmem:[%s6297_s16 + $0x6c0] sm:$0xff] %v2466_v25  ;;  %2755 = vst [vmem:[%s6297_s16 + $0x6c8] sm:$0xff] %v2467_v55  ;;  %v2475_v3 = vmul.f32 %v3703_v63, %v7802_v51  ;;  %v2476_v23 = vmul.f32 %v3703_v63, %v7803_v17  ;;  %v2477_v29 = vmul.f32 %v3703_v63, %v5929_v39  ;;  %v2001_v59 = vpop.xlane.xlu1 %2000  ;;  %v7821_v25 = vld [vmem:[#allocation246_spill] sm:$0xff]  ;;  %v7823_v52 = vld [vmem:[#allocation173_spill] sm:$0xff] }
 0x270   : > { %2756 = vst [vmem:[%s6297_s16 + $0x6d0] sm:$0xff] %v2468_v60  ;;  %v3705_v49 = vpop.eup %3704  ;;  %3714 = vrcp.f32 %v2001_v59  ;;  %v7826_v59 = vld [vmem:[#allocation250_spill] sm:$0xff] }
 0x271   : > { %v2472_v34 = vmul.f32 %v3705_v49, %v7804_v4  ;;  %v2473_v1 = vmul.f32 %v3705_v49, %v7805_v41  ;;  %v2474_v48 = vmul.f32 %v3705_v49, %v7806_v11  ;;  %2763 = vst [vmem:[%s6297_s16 + $0x708] sm:$0xff] %v2475_v3  ;;  %2764 = vst [vmem:[%s6297_s16 + $0x710] sm:$0xff] %v2476_v23  ;;  %v1997_v38 = vpop.xlane.xlu0 %1996  ;;  %v7824_v49 = vld [vmem:[#allocation248_spill] sm:$0xff]  ;;  %v7825_v23 = vld [vmem:[#allocation249_spill] sm:$0xff] }
 0x272   : > { %2765 = vst [vmem:[%s6297_s16 + $0x718] sm:$0xff] %v2477_v29  ;;  %v3707_v37 = vpop.eup %3706  ;;  %3716 = vrcp.f32 %v1997_v38 }
 0x273   : > { %2760 = vst [vmem:[%s6297_s16 + $0x6f0] sm:$0xff] %v2472_v34  ;;  %2761 = vst [vmem:[%s6297_s16 + $0x6f8] sm:$0xff] %v2473_v1  ;;  %v2481_v50 = vmul.f32 %v3707_v37, %v7807_v26  ;;  %v2482_v18 = vmul.f32 %v3707_v37, %v7808_v6  ;;  %v2483_v28 = vmul.f32 %v3707_v37, %v7809_v62  ;;  %v2009_v9 = vpop.xlane.xlu1 %2008  ;;  %v7827_v34 = vld [vmem:[#allocation251_spill] sm:$0xff]  ;;  %v7829_v37 = vld [vmem:[#allocation76_spill] sm:$0xff] }
 0x274   : > { %2762 = vst [vmem:[%s6297_s16 + $0x700] sm:$0xff] %v2474_v48  ;;  %v3709_v39 = vpop.eup %3708  ;;  %3718 = vrcp.f32 %v2009_v9  ;;  %v7828_v48 = vld [vmem:[#allocation252_spill] sm:$0xff]  ;;  %v7830_v26 = vld [vmem:[#allocation253_spill] sm:$0xff]  ;;  %v7831_v62 = vld [vmem:[#allocation254_spill] sm:$0xff] }
 0x275   : > { %v2478_v20 = vmul.f32 %v3709_v39, %v7810_v15  ;;  %v2479_v27 = vmul.f32 %v3709_v39, %v7811_v44  ;;  %v2480_v45 = vmul.f32 %v3709_v39, %v7812_v32  ;;  %2769 = vst [vmem:[%s6297_s16 + $0x738] sm:$0xff] %v2481_v50  ;;  %2770 = vst [vmem:[%s6297_s16 + $0x740] sm:$0xff] %v2482_v18  ;;  %v2005_v10 = vpop.xlane.xlu0 %2004  ;;  %v7832_v15 = vld [vmem:[#allocation255_spill] sm:$0xff]  ;;  %v7833_v44 = vld [vmem:[#allocation256_spill] sm:$0xff] }
 0x276   : > { %2771 = vst [vmem:[%s6297_s16 + $0x748] sm:$0xff] %v2483_v28  ;;  %v3711_v53 = vpop.eup %3710  ;;  %3720 = vrcp.f32 %v2005_v10  ;;  %v7834_v9 = vld [vmem:[#allocation257_spill] sm:$0xff] }
 0x277   : > { %2766 = vst [vmem:[%s6297_s16 + $0x720] sm:$0xff] %v2478_v20  ;;  %2767 = vst [vmem:[%s6297_s16 + $0x728] sm:$0xff] %v2479_v27  ;;  %v2487_v24 = vmul.f32 %v3711_v53, %v7813_v19  ;;  %v2488_v5 = vmul.f32 %v3711_v53, %v7814_v2  ;;  %v2489_v40 = vmul.f32 %v3711_v53, %v7815_v56  ;;  %v2017_v7 = vpop.xlane.xlu1 %2016 }
 0x278   : > { %2768 = vst [vmem:[%s6297_s16 + $0x730] sm:$0xff] %v2480_v45  ;;  %v3713_v36 = vpop.eup %3712  ;;  %3722 = vrcp.f32 %v2017_v7 }
 0x279   : > { %v2484_v54 = vmul.f32 %v3713_v36, %v7816_v43  ;;  %v2485_v14 = vmul.f32 %v3713_v36, %v7817_v0  ;;  %v2486_v21 = vmul.f32 %v3713_v36, %v7818_v30  ;;  %2775 = vst [vmem:[%s6297_s16 + $0x768] sm:$0xff] %v2487_v24  ;;  %2776 = vst [vmem:[%s6297_s16 + $0x770] sm:$0xff] %v2488_v5  ;;  %v2013_v3 = vpop.xlane.xlu0 %2012  ;;  %v7835_v36 = vld [vmem:[#allocation181_spill] sm:$0xff]  ;;  %v7836_v24 = vld [vmem:[#allocation258_spill] sm:$0xff] }
 0x27a   : > { %2777 = vst [vmem:[%s6297_s16 + $0x778] sm:$0xff] %v2489_v40  ;;  %v3715_v47 = vpop.eup %3714  ;;  %3724 = vrcp.f32 %v2013_v3  ;;  %v7837_v40 = vld [vmem:[#allocation259_spill] sm:$0xff]  ;;  %v7838_v43 = vld [vmem:[#allocation260_spill] sm:$0xff]  ;;  %v7839_v0 = vld [vmem:[#allocation261_spill] sm:$0xff] }
 0x27b   : > { %2772 = vst [vmem:[%s6297_s16 + $0x750] sm:$0xff] %v2484_v54  ;;  %2773 = vst [vmem:[%s6297_s16 + $0x758] sm:$0xff] %v2485_v14  ;;  %v2493_v22 = vmul.f32 %v3715_v47, %v7819_v46  ;;  %v2494_v16 = vmul.f32 %v3715_v47, %v7820_v57  ;;  %v2495_v33 = vmul.f32 %v3715_v47, %v7821_v25  ;;  %v2025_v1 = vpop.xlane.xlu1 %2024  ;;  %v7840_v47 = vld [vmem:[#allocation262_spill] sm:$0xff]  ;;  %v7841_v46 = vld [vmem:[#allocation263_spill] sm:$0xff] }
 0x27c   : > { %2774 = vst [vmem:[%s6297_s16 + $0x760] sm:$0xff] %v2486_v21  ;;  %v3717_v55 = vpop.eup %3716  ;;  %3726 = vrcp.f32 %v2025_v1  ;;  %v7842_v57 = vld [vmem:[#allocation264_spill] sm:$0xff] }
 0x27d   : > { %2781 = vst [vmem:[%s6297_s16 + $0x798] sm:$0xff] %v2493_v22  ;;  %2782 = vst [vmem:[%s6297_s16 + $0x7a0] sm:$0xff] %v2494_v16  ;;  %v2490_v60 = vmul.f32 %v3717_v55, %v7822_v12  ;;  %v2491_v63 = vmul.f32 %v3717_v55, %v7823_v52  ;;  %v2492_v51 = vmul.f32 %v3717_v55, %v7824_v49  ;;  %v2021_v6 = vpop.xlane.xlu0 %2020  ;;  %v7843_v55 = vld [vmem:[#allocation265_spill] sm:$0xff] }
 0x27e   : > { %2783 = vst [vmem:[%s6297_s16 + $0x7a8] sm:$0xff] %v2495_v33  ;;  %v3719_v17 = vpop.eup %3718  ;;  %3728 = vrcp.f32 %v2021_v6  ;;  %v7851_v6 = vld [vmem:[#allocation273_spill] sm:$0xff] }
 0x27f   : > { %2778 = vst [vmem:[%s6297_s16 + $0x780] sm:$0xff] %v2490_v60  ;;  %2779 = vst [vmem:[%s6297_s16 + $0x788] sm:$0xff] %v2491_v63  ;;  %v2499_v29 = vmul.f32 %v3719_v17, %v7825_v23  ;;  %v2500_v4 = vmul.f32 %v3719_v17, %v7826_v59  ;;  %v2501_v41 = vmul.f32 %v3719_v17, %v7827_v34  ;;  %v2033_v32 = vpop.xlane.xlu1 %2032  ;;  %v7844_v60 = vld [vmem:[#allocation266_spill] sm:$0xff]  ;;  %v7845_v63 = vld [vmem:[#allocation267_spill] sm:$0xff] }
 0x280   : > { %2780 = vst [vmem:[%s6297_s16 + $0x790] sm:$0xff] %v2492_v51  ;;  %v3721_v11 = vpop.eup %3720  ;;  %3730 = vrcp.f32 %v2033_v32 }
 0x281   : > { %2787 = vst [vmem:[%s6297_s16 + $0x7c8] sm:$0xff] %v2499_v29  ;;  %2788 = vst [vmem:[%s6297_s16 + $0x7d0] sm:$0xff] %v2500_v4  ;;  %v2496_v38 = vmul.f32 %v3721_v11, %v7828_v48  ;;  %v2497_v39 = vmul.f32 %v3721_v11, %v7829_v37  ;;  %v2498_v50 = vmul.f32 %v3721_v11, %v7830_v26  ;;  %v2029_v5 = vpop.xlane.xlu0 %2028  ;;  %v7847_v48 = vld [vmem:[#allocation269_spill] sm:$0xff]  ;;  %v7848_v37 = vld [vmem:[#allocation270_spill] sm:$0xff] }
 0x282   : > { %2789 = vst [vmem:[%s6297_s16 + $0x7d8] sm:$0xff] %v2501_v41  ;;  %v3723_v18 = vpop.eup %3722  ;;  %3732 = vrcp.f32 %v2029_v5  ;;  %v7850_v26 = vld [vmem:[#allocation272_spill] sm:$0xff] }
 0x283   : > { %2784 = vst [vmem:[%s6297_s16 + $0x7b0] sm:$0xff] %v2496_v38  ;;  %2785 = vst [vmem:[%s6297_s16 + $0x7b8] sm:$0xff] %v2497_v39  ;;  %v2505_v28 = vmul.f32 %v3723_v18, %v7831_v62  ;;  %v2506_v20 = vmul.f32 %v3723_v18, %v7832_v15  ;;  %v2507_v27 = vmul.f32 %v3723_v18, %v7833_v44  ;;  %v2041_v30 = vpop.xlane.xlu1 %2040 }
 0x284   : > { %2786 = vst [vmem:[%s6297_s16 + $0x7c0] sm:$0xff] %v2498_v50  ;;  %v3725_v45 = vpop.eup %3724  ;;  %3734 = vrcp.f32 %v2041_v30 }
 0x285   : > { %2793 = vst [vmem:[%s6297_s16 + $0x7f8] sm:$0xff] %v2505_v28  ;;  %2794 = vst [vmem:[%s6297_s16 + $0x800] sm:$0xff] %v2506_v20  ;;  %v2502_v53 = vmul.f32 %v3725_v45, %v7834_v9  ;;  %v2503_v19 = vmul.f32 %v3725_v45, %v7835_v36  ;;  %v2504_v2 = vmul.f32 %v3725_v45, %v7836_v24  ;;  %v2037_v25 = vpop.xlane.xlu0 %2036  ;;  %v7852_v28 = vld [vmem:[#allocation132_spill] sm:$0xff]  ;;  %v7853_v20 = vld [vmem:[#allocation195_spill] sm:$0xff] }
 0x286   : > { %2795 = vst [vmem:[%s6297_s16 + $0x808] sm:$0xff] %v2507_v27  ;;  %v3727_v56 = vpop.eup %3726  ;;  %3736 = vrcp.f32 %v2037_v25  ;;  %v7854_v27 = vld [vmem:[#allocation274_spill] sm:$0xff]  ;;  %v7855_v9 = vld [vmem:[#allocation275_spill] sm:$0xff]  ;;  %v7856_v36 = vld [vmem:[#allocation276_spill] sm:$0xff] }
 0x287   : > { %2790 = vst [vmem:[%s6297_s16 + $0x7e0] sm:$0xff] %v2502_v53  ;;  %2791 = vst [vmem:[%s6297_s16 + $0x7e8] sm:$0xff] %v2503_v19  ;;  %v2511_v10 = vmul.f32 %v3727_v56, %v7837_v40  ;;  %v2512_v54 = vmul.f32 %v3727_v56, %v7838_v43  ;;  %v2513_v14 = vmul.f32 %v3727_v56, %v7839_v0  ;;  %v2049_v51 = vpop.xlane.xlu1 %2048  ;;  %v7857_v24 = vld [vmem:[#allocation277_spill] sm:$0xff]  ;;  %v7858_v40 = vld [vmem:[#allocation278_spill] sm:$0xff] }
 0x288   : > { %2792 = vst [vmem:[%s6297_s16 + $0x7f0] sm:$0xff] %v2504_v2  ;;  %v3729_v21 = vpop.eup %3728  ;;  %3738 = vrcp.f32 %v2049_v51  ;;  %v7859_v43 = vld [vmem:[#allocation279_spill] sm:$0xff] }
 0x289   : > { %2799 = vst [vmem:[%s6297_s16 + $0x828] sm:$0xff] %v2511_v10  ;;  %2800 = vst [vmem:[%s6297_s16 + $0x830] sm:$0xff] %v2512_v54  ;;  %v2508_v7 = vmul.f32 %v3729_v21, %v7840_v47  ;;  %v2509_v22 = vmul.f32 %v3729_v21, %v7841_v46  ;;  %v2510_v16 = vmul.f32 %v3729_v21, %v7842_v57  ;;  %v2045_v59 = vpop.xlane.xlu0 %2044 }
 0x28a   : > { %2801 = vst [vmem:[%s6297_s16 + $0x838] sm:$0xff] %v2513_v14  ;;  %v3731_v33 = vpop.eup %3730  ;;  %3740 = vrcp.f32 %v2045_v59 }
 0x28b   : > { %2796 = vst [vmem:[%s6297_s16 + $0x810] sm:$0xff] %v2508_v7  ;;  %2797 = vst [vmem:[%s6297_s16 + $0x818] sm:$0xff] %v2509_v22  ;;  %v2517_v12 = vmul.f32 %v3731_v33, %v7843_v55  ;;  %v2518_v52 = vmul.f32 %v3731_v33, %v7844_v60  ;;  %v2519_v49 = vmul.f32 %v3731_v33, %v7845_v63  ;;  %v2057_v1 = vpop.xlane.xlu1 %2056 }
 0x28c   : > { %2798 = vst [vmem:[%s6297_s16 + $0x820] sm:$0xff] %v2510_v16  ;;  %v3733_v3 = vpop.eup %3732  ;;  %3742 = vrcp.f32 %v2057_v1 }
 0x28d   : > { %2805 = vst [vmem:[%s6297_s16 + $0x858] sm:$0xff] %v2517_v12  ;;  %2806 = vst [vmem:[%s6297_s16 + $0x860] sm:$0xff] %v2518_v52  ;;  %v2514_v17 = vmul.f32 %v3733_v3, %v6185_v35  ;;  %v2515_v23 = vmul.f32 %v3733_v3, %v6191_v31  ;;  %v2516_v29 = vmul.f32 %v3733_v3, %v6198_v58  ;;  %v7846_v58 = vld [vmem:[#allocation268_spill] sm:$0xff] }
 0x28e   : > { %2807 = vst [vmem:[%s6297_s16 + $0x868] sm:$0xff] %v2519_v49  ;;  %v3735_v4 = vpop.eup %3734 }
 0x28f   : > { %2802 = vst [vmem:[%s6297_s16 + $0x840] sm:$0xff] %v2514_v17  ;;  %2803 = vst [vmem:[%s6297_s16 + $0x848] sm:$0xff] %v2515_v23  ;;  %v2523_v34 = vmul.f32 %v3735_v4, %v6204_v61  ;;  %v2524_v41 = vmul.f32 %v3735_v4, %v6206_v42  ;;  %v2525_v35 = vmul.f32 %v3735_v4, %v6209_v8  ;;  %v7849_v8 = vld [vmem:[#allocation271_spill] sm:$0xff] }
 0x290   : > { %2804 = vst [vmem:[%s6297_s16 + $0x850] sm:$0xff] %v2516_v29  ;;  %v3737_v31 = vpop.eup %3736 }
 0x291   : > { %2811 = vst [vmem:[%s6297_s16 + $0x888] sm:$0xff] %v2523_v34  ;;  %2812 = vst [vmem:[%s6297_s16 + $0x890] sm:$0xff] %v2524_v41  ;;  %v2520_v11 = vmul.f32 %v3737_v31, %v7846_v58  ;;  %v2521_v38 = vmul.f32 %v3737_v31, %v7847_v48  ;;  %v2522_v39 = vmul.f32 %v3737_v31, %v7848_v37 }
 0x292   : > { %2813 = vst [vmem:[%s6297_s16 + $0x898] sm:$0xff] %v2525_v35  ;;  %v3739_v61 = vpop.eup %3738 }
 0x293   : > { %2808 = vst [vmem:[%s6297_s16 + $0x870] sm:$0xff] %v2520_v11  ;;  %2809 = vst [vmem:[%s6297_s16 + $0x878] sm:$0xff] %v2521_v38  ;;  %v2529_v42 = vmul.f32 %v3739_v61, %v7849_v8  ;;  %v2530_v50 = vmul.f32 %v3739_v61, %v7850_v26  ;;  %v2531_v18 = vmul.f32 %v3739_v61, %v7851_v6 }
 0x294   : > { %2810 = vst [vmem:[%s6297_s16 + $0x880] sm:$0xff] %v2522_v39  ;;  %v3741_v62 = vpop.eup %3740 }
 0x295   : > { %2817 = vst [vmem:[%s6297_s16 + $0x8b8] sm:$0xff] %v2529_v42  ;;  %2818 = vst [vmem:[%s6297_s16 + $0x8c0] sm:$0xff] %v2530_v50  ;;  %v2526_v15 = vmul.f32 %v3741_v62, %v7852_v28  ;;  %v2527_v44 = vmul.f32 %v3741_v62, %v7853_v20  ;;  %v2528_v32 = vmul.f32 %v3741_v62, %v7854_v27 }
 0x296   : > { %2819 = vst [vmem:[%s6297_s16 + $0x8c8] sm:$0xff] %v2531_v18  ;;  %v3743_v45 = vpop.eup %3742 }
 0x297   : > { %2814 = vst [vmem:[%s6297_s16 + $0x8a0] sm:$0xff] %v2526_v15  ;;  %2815 = vst [vmem:[%s6297_s16 + $0x8a8] sm:$0xff] %v2527_v44  ;;  %v2535_v53 = vmul.f32 %v3743_v45, %v7855_v9  ;;  %v2536_v19 = vmul.f32 %v3743_v45, %v7856_v36  ;;  %v2537_v2 = vmul.f32 %v3743_v45, %v7857_v24 }
 0x298   : > { %2816 = vst [vmem:[%s6297_s16 + $0x8b0] sm:$0xff] %v2528_v32 }
 0x299   : > { %2823 = vst [vmem:[%s6297_s16 + $0x8e8] sm:$0xff] %v2535_v53  ;;  %2824 = vst [vmem:[%s6297_s16 + $0x8f0] sm:$0xff] %v2536_v19 }
 0x29a   : > { %2825 = vst [vmem:[%s6297_s16 + $0x8f8] sm:$0xff] %v2537_v2 }
 0x29e   : > { %v2053_v5 = vpop.xlane.xlu0 %2052 }
 0x29f   : > { %3744 = vrcp.f32 %v2053_v5 }
 0x2a9   : > { %v3745_v56 = vpop.eup %3744 }
 0x2aa   : > { %v2532_v10 = vmul.f32 %v3745_v56, %v7858_v40  ;;  %v2533_v54 = vmul.f32 %v3745_v56, %v7859_v43  ;;  %v2534_v0 = vmul.f32 %v3745_v56, %v6275_v13 }
 0x2ac   : > { %2820 = vst [vmem:[%s6297_s16 + $0x8d0] sm:$0xff] %v2532_v10  ;;  %2821 = vst [vmem:[%s6297_s16 + $0x8d8] sm:$0xff] %v2533_v54 }
 0x2ad   : > { %2822 = vst [vmem:[%s6297_s16 + $0x8e0] sm:$0xff] %v2534_v0 }
 0x2ae   : > { %4059 = shalt.err (!%p4056_p3)
}
 0x2af   : > { %s4060_s11 = scalar_lea.hbm %s6935_s30, 36864  ;;  %s4064_s19 = scalar_lea.hbm %s6988_s1, 73728 }
 0x2b0   : > { %p4061_p5 = scmp.ne.s32.totalorder %s6935_s30, %s4060_s11  ;;  %p4065_p9 = scmp.lt.u32.totalorder %s6935_s30, %s6988_s1 }
 0x2b1   : > { %p4066_p0 = scmp.lt.u32.totalorder %s4064_s19, %s4060_s11  ;;  %p4068_p6 = scmp.lt.u32.totalorder %s4060_s11, %s6935_s30 }
 0x2b2   : > { %p4062_p7 = pnand %p4061_p5, %p7860_p11 }
 0x2b3   : > { %p4067_p2 = por %p4066_p0, %p4065_p9 }
 0x2b4   : > { %p4063_p8 = pneg %p4062_p7 }
 0x2b5   : > { %p4069_p12 = por %p4068_p6, %p4067_p2 }
 0x2b7   : > { %p4070_p13 = pnand %p4069_p12, %p4063_p8 }
 0x2b9   : > { %4073 = shalt.err (!%p4070_p13)
}
 0x2ba   : > { %s4118_s24 = smov 384   ;;  %s4119_s26 = smov 24  }
 0x2bb   : > { %2928 = dma.vmem_to_hbm [thread:$0]  (%p7860_p11), %s6940_s25, 36864, %s6935_s30, %s2827_s10, %s4118_s24, %s4118_s24, %s4119_s26  }
 0x2bc PF: > { %s2856_s29 = sand.u32 1, %s4100_s6   ;;  %p7861_p4 = scmp.ne.s32.totalorder %s7278_s18, 0 }
 0x2bd   : > { %p7862_p10 = scmp.ge.s32.totalorder %s4112_s9, 2  ;;  %s2857_s16 = scalar_lea.sflag [#allocation4], %s2856_s29 }
 0x2bf   : > { %p2935_p1 = pnand %p7862_p10, %p7861_p4 }
 0x2c1   : > { %4095 = dma.done.wait (!%p2935_p1), %s2857_s16, 36864  }
 0x2c2   : > { %4097 = vsyncadd (!%p2935_p1), %s2857_s16, 4294930432  ;;  %p14_p3 = scmp.ge.s32.totalorder %s4155_s12, 4   ;;  %s7863_s6 = smov %s4104_s7 }
 0x2c3   : > { %s7864_s7 = smov %s4108_s8  ;;  %s7865_s8 = smov %s4167_s15 }
 0x2c4   : > { %s7866_s9 = smov %s4155_s12  ;;  %16 = sbr.rel (!%p14_p3) target bundleno = 5 (0x5), region = 69 }
 0x2cb   :  { %2862 = vsyncpa [#allocation3], 1 }
 0x2cc   :  { %2864 = vsyncpa [#allocation3 + $0x1], 1 }
 0x2cd   :  { %2865 = vsyncpa [#allocation4], 1 }
 0x2ce   :  { %2867 = vsyncpa [#allocation4 + $0x1], 1 }

</bundles_post_ra>
